<compile_context>
chip_gen: v6e
topology: v6e:2x2x1
jax: 0.10.0
libtpu: 0.0.40
codegen_flags: <defaults>
</compile_context>

<pallas_src>
import jax
import jax.numpy as jnp
from jax import lax
from jax.experimental import pallas as pl
from jax.experimental.pallas import tpu as pltpu


def _fracture_loss_kernel(w_ref, meta_ref, pat_logits_ref, pat_tgt_ref,
                          joint_logits_ref, joint_tgt_ref, out_ref, acc_ref):
    i = pl.program_id(0)

    @pl.when(i == 0)
    def _init():
        acc_ref[0] = jnp.float32(0.0)   # running sum of per-row CE terms
        acc_ref[1] = jnp.float32(0.0)   # running sum of per-element BCE terms

    tile_b, c = pat_logits_ref.shape
    k = joint_logits_ref.shape[1]
    n_valid = meta_ref[0]

    # Row-validity mask (handles padding of the batch to a multiple of TILE_B).
    row_ids = i * tile_b + lax.broadcasted_iota(jnp.int32, (tile_b, 1), 0)
    valid = row_ids < n_valid                                          # [tb, 1]

    # ---------------- CrossEntropy partial sum ----------------
    logits = pat_logits_ref[...].astype(jnp.float32)                   # [tb, C]
    tgt = pat_tgt_ref[...]                                             # [tb, 1] i32
    class_ids = lax.broadcasted_iota(jnp.int32, (tile_b, c), 1)        # [tb, C]
    picked = jnp.sum(jnp.where(class_ids == tgt, logits, 0.0),
                     axis=-1, keepdims=True)                           # [tb, 1]
    m = jnp.max(logits, axis=-1, keepdims=True)                        # [tb, 1]
    lse = m + jnp.log(jnp.sum(jnp.exp(logits - m), axis=-1, keepdims=True))
    ce_rows = jnp.where(valid, lse - picked, 0.0)                      # [tb, 1]
    acc_ref[0] = acc_ref[0] + jnp.sum(ce_rows)

    # ---------------- BCEWithLogits partial sum ----------------
    x = joint_logits_ref[...].astype(jnp.float32)                      # [tb, K]
    z = joint_tgt_ref[...].astype(jnp.float32)                         # [tb, K]
    bce = jnp.maximum(x, 0.0) - x * z + jnp.log1p(jnp.exp(-jnp.abs(x)))
    acc_ref[1] = acc_ref[1] + jnp.sum(jnp.where(valid, bce, 0.0))

    # ---------------- running finalize (last step leaves final values) -----
    nb = n_valid.astype(jnp.float32)
    pattern_loss = acc_ref[0] / nb
    joint_loss = acc_ref[1] / (nb * jnp.float32(k))
    out_ref[0] = w_ref[0] * pattern_loss + w_ref[1] * joint_loss
    out_ref[1] = pattern_loss
    out_ref[2] = joint_loss


def fracture_loss(predictions, targets, pattern_weight=1.0, joint_weight=0.5,
                  tile_b=512):
    # TODO(synk): optional per-class weights of CrossEntropyLoss not implemented
    # (module default is class_weights=None, which is what is reproduced here).
    pat_pred = predictions['pattern']                       # [B, C], native dtype
    joint_pred = predictions['joint_involvement']           # [B, K], native dtype
    pat_tgt = targets['pattern'].astype(jnp.int32).reshape(-1, 1)

    joint_tgt = targets['joint_involvement']
    if (jnp.issubdtype(joint_tgt.dtype, jnp.integer)
            or jnp.issubdtype(joint_tgt.dtype, jnp.bool_)):
        joint_tgt = joint_tgt.astype(jnp.int8)   # hard 0/1 labels: 4x fewer HBM bytes
    # soft float labels are passed through in their native dtype

    b, c = pat_pred.shape
    k = joint_pred.shape[1]

    num_tiles = pl.cdiv(b, tile_b)
    b_pad = num_tiles * tile_b
    pad = b_pad - b
    if pad:
        pat_pred = jnp.pad(pat_pred, ((0, pad), (0, 0)))
        pat_tgt = jnp.pad(pat_tgt, ((0, pad), (0, 0)))
        joint_pred = jnp.pad(joint_pred, ((0, pad), (0, 0)))
        joint_tgt = jnp.pad(joint_tgt, ((0, pad), (0, 0)))

    weights = jnp.array([pattern_weight, joint_weight], dtype=jnp.float32)
    meta = jnp.array([b], dtype=jnp.int32)

    grid_spec = pltpu.PrefetchScalarGridSpec(
        num_scalar_prefetch=0,
        grid=(num_tiles,),
        in_specs=[
            pl.BlockSpec(memory_space=pltpu.SMEM),           # weights [2] f32
            pl.BlockSpec(memory_space=pltpu.SMEM),           # meta    [1] i32
            pl.BlockSpec((tile_b, c), lambda i: (i, 0)),     # pattern logits
            pl.BlockSpec((tile_b, 1), lambda i: (i, 0)),     # pattern targets
            pl.BlockSpec((tile_b, k), lambda i: (i, 0)),     # joint logits
            pl.BlockSpec((tile_b, k), lambda i: (i, 0)),     # joint targets
        ],
        out_specs=pl.BlockSpec(memory_space=pltpu.SMEM),     # [3] f32 scalars
        scratch_shapes=[pltpu.SMEM((2,), jnp.float32)],      # CE / BCE partial sums
    )

    out = pl.pallas_call(
        _fracture_loss_kernel,
        out_shape=jax.ShapeDtypeStruct((3,), jnp.float32),
        grid_spec=grid_spec,
        compiler_params=pltpu.CompilerParams(
            dimension_semantics=("arbitrary",),   # accumulator carried across tiles
            vmem_limit_bytes=32 * 1024 * 1024,    # explicit: fits v5e/v6e and v7x's 64 MiB
        ),
    )(weights, meta, pat_pred, pat_tgt, joint_pred, joint_tgt)

    # TODO(synk): torch's forward calls .item() for loss_dict; device scalars are
    # returned instead to avoid a host sync and keep the loss jit-able.
    # TODO(synk): no custom_vjp is defined — use the pure-JAX reference if
    # gradients through this loss are required.
    # TODO(synk): v7x 2-TensorCore sharding (leading "parallel" grid axis with
    # per-core partial sums) not implemented; single "arbitrary" axis only.
    total_loss = out[0]
    loss_dict = {'total': out[0], 'pattern': out[1], 'joint': out[2]}
    return total_loss, loss_dict


def _reference_loss(predictions, targets, pattern_weight=1.0, joint_weight=0.5):
    """Pure-JAX reference matching torch CE + BCEWithLogits semantics."""
    logits = predictions['pattern'].astype(jnp.float32)
    tgt = targets['pattern'].astype(jnp.int32)
    lse = jax.nn.logsumexp(logits, axis=-1)
    picked = jnp.take_along_axis(logits, tgt[:, None], axis=-1)[:, 0]
    ce = jnp.mean(lse - picked)

    x = predictions['joint_involvement'].astype(jnp.float32)
    z = targets['joint_involvement'].astype(jnp.float32)
    bce = jnp.mean(jnp.maximum(x, 0.0) - x * z + jnp.log1p(jnp.exp(-jnp.abs(x))))
    return pattern_weight * ce + joint_weight * bce, ce, bce


if __name__ == "__main__":
    B, C, K = 8, 5, 4   # batch, pattern classes, joint-involvement outputs
    key = jax.random.PRNGKey(0)
    k1, k2, k3, k4 = jax.random.split(key, 4)

    predictions = {
        'pattern': jax.random.normal(k1, (B, C), dtype=jnp.float32),
        'joint_involvement': jax.random.normal(k2, (B, K), dtype=jnp.float32),
    }
    targets = {
        'pattern': jax.random.randint(k3, (B,), 0, C, dtype=jnp.int32),
        'joint_involvement': jax.random.bernoulli(k4, 0.5, (B, K)).astype(jnp.int32),
    }

    total_loss, loss_dict = fracture_loss(predictions, targets,
                                          pattern_weight=1.0, joint_weight=0.5)
    total_loss = jax.block_until_ready(total_loss)

    ref_total, ref_ce, ref_bce = _reference_loss(predictions, targets, 1.0, 0.5)
    assert abs(float(ref_total) - float(loss_dict['total'])) < 1e-4
    assert abs(float(ref_ce) - float(loss_dict['pattern'])) < 1e-4
    assert abs(float(ref_bce) - float(loss_dict['joint'])) < 1e-4

    print("KERNEL_OK")
</pallas_src>

<mosaic_0001>
module attributes {stable_mosaic.version = 11 : i64} {
  func.func @_fracture_loss_kernel(%arg0: i32, %arg1: memref<2xf32, #tpu.memory_space<smem>>, %arg2: memref<1xi32, #tpu.memory_space<smem>>, %arg3: memref<512x5xf32, #tpu.memory_space<vmem>>, %arg4: memref<512x1xi32, #tpu.memory_space<vmem>>, %arg5: memref<512x4xf32, #tpu.memory_space<vmem>>, %arg6: memref<512x4xi8, #tpu.memory_space<vmem>>, %arg7: memref<3xf32, #tpu.memory_space<smem>>, %arg8: memref<2xf32, #tpu.memory_space<smem>>) attributes {dimension_semantics = [#tpu.dimension_semantics<arbitrary>], iteration_bounds = array<i64: 1>, scalar_prefetch = 0 : i64, scratch_operands = 1 : i64, tpu.core_type = #tpu.core_type<tc>, window_params = [{transform_indices = @transform_0, window_bounds = array<i64: 2>}, {transform_indices = @transform_1, window_bounds = array<i64: 1>}, {transform_indices = @transform_2, window_bounds = array<i64: 512, 5>}, {transform_indices = @transform_3, window_bounds = array<i64: 512, 1>}, {transform_indices = @transform_4, window_bounds = array<i64: 512, 4>}, {transform_indices = @transform_5, window_bounds = array<i64: 512, 4>}, {transform_indices = @transform_6, window_bounds = array<i64: 3>}]} {
    %c0_i32 = arith.constant 0 : i32
    %0 = arith.cmpi eq, %arg0, %c0_i32 : i32
    %1 = arith.extui %0 : i1 to i32
    %c0_i32_0 = arith.constant 0 : i32
    %2 = arith.cmpi ne, %1, %c0_i32_0 : i32
    scf.if %2 {
      %cst_28 = arith.constant 0.000000e+00 : f32
      %c0_29 = arith.constant 0 : index
      %76 = memref.load %arg8[%c0_29] : memref<2xf32, #tpu.memory_space<smem>>
      memref.store %cst_28, %arg8[%c0_29] : memref<2xf32, #tpu.memory_space<smem>>
      %cst_30 = arith.constant 0.000000e+00 : f32
      %c1_31 = arith.constant 1 : index
      %77 = memref.load %arg8[%c1_31] : memref<2xf32, #tpu.memory_space<smem>>
      memref.store %cst_30, %arg8[%c1_31] : memref<2xf32, #tpu.memory_space<smem>>
    } else {
    }
    %c0 = arith.constant 0 : index
    %3 = memref.load %arg2[%c0] : memref<1xi32, #tpu.memory_space<smem>>
    %c512_i32 = arith.constant 512 : i32
    %4 = arith.muli %arg0, %c512_i32 : i32
    %5 = tpu.iota {dimensions = array<i32: 0>} : vector<512x1xi32>
    %6 = vector.broadcast %4 : i32 to vector<512x1xi32>
    %7 = arith.addi %6, %5 : vector<512x1xi32>
    %8 = vector.broadcast %3 : i32 to vector<512x1xi32>
    %9 = arith.cmpi slt, %7, %8 : vector<512x1xi32>
    %c0_1 = arith.constant 0 : index
    %c0_2 = arith.constant 0 : index
    %10 = vector.load %arg3[%c0_1, %c0_2] : memref<512x5xf32, #tpu.memory_space<vmem>>, vector<512x5xf32>
    %c0_3 = arith.constant 0 : index
    %c0_4 = arith.constant 0 : index
    %11 = vector.load %arg4[%c0_3, %c0_4] : memref<512x1xi32, #tpu.memory_space<vmem>>, vector<512x1xi32>
    %12 = tpu.iota {dimensions = array<i32: 1>} : vector<512x5xi32>
    %13 = vector.broadcast %11 : vector<512x1xi32> to vector<512x5xi32>
    %14 = arith.cmpi eq, %12, %13 : vector<512x5xi32>
    %cst = arith.constant 0.000000e+00 : f32
    %15 = vector.broadcast %cst : f32 to vector<512x5xf32>
    %16 = arith.select %14, %10, %15 : vector<512x5xi1>, vector<512x5xf32>
    %cst_5 = arith.constant dense<0.000000e+00> : vector<512xf32>
    %17 = vector.multi_reduction <add>, %16, %cst_5 [1] : vector<512x5xf32> to vector<512xf32>
    %18 = vector.shape_cast %17 : vector<512xf32> to vector<512x1xf32>
    %cst_6 = arith.constant dense<0xFF800000> : vector<512xf32>
    %19 = vector.multi_reduction <maximumf>, %10, %cst_6 [1] : vector<512x5xf32> to vector<512xf32>
    %20 = vector.shape_cast %19 : vector<512xf32> to vector<512x1xf32>
    %21 = vector.broadcast %20 : vector<512x1xf32> to vector<512x5xf32>
    %22 = arith.subf %10, %21 : vector<512x5xf32>
    %23 = math.exp %22 : vector<512x5xf32>
    %cst_7 = arith.constant dense<0.000000e+00> : vector<512xf32>
    %24 = vector.multi_reduction <add>, %23, %cst_7 [1] : vector<512x5xf32> to vector<512xf32>
    %25 = vector.shape_cast %24 : vector<512xf32> to vector<512x1xf32>
    %26 = math.log %25 : vector<512x1xf32>
    %27 = arith.addf %20, %26 : vector<512x1xf32>
    %28 = arith.subf %27, %18 : vector<512x1xf32>
    %cst_8 = arith.constant 0.000000e+00 : f32
    %29 = vector.broadcast %cst_8 : f32 to vector<512x1xf32>
    %30 = arith.select %9, %28, %29 : vector<512x1xi1>, vector<512x1xf32>
    %c0_9 = arith.constant 0 : index
    %31 = memref.load %arg8[%c0_9] : memref<2xf32, #tpu.memory_space<smem>>
    %32 = vector.shape_cast %30 : vector<512x1xf32> to vector<1x512x1xf32>
    %cst_10 = arith.constant dense<0.000000e+00> : vector<1xf32>
    %33 = vector.multi_reduction <add>, %32, %cst_10 [1, 2] : vector<1x512x1xf32> to vector<1xf32>
    %34 = vector.shape_cast %33 : vector<1xf32> to vector<1x1x1xf32>
    %35 = vector.extract %34[0, 0, 0] : f32 from vector<1x1x1xf32>
    %36 = arith.addf %31, %35 : f32
    %c0_11 = arith.constant 0 : index
    %37 = memref.load %arg8[%c0_11] : memref<2xf32, #tpu.memory_space<smem>>
    memref.store %36, %arg8[%c0_11] : memref<2xf32, #tpu.memory_space<smem>>
    %c0_12 = arith.constant 0 : index
    %c0_13 = arith.constant 0 : index
    %38 = vector.load %arg5[%c0_12, %c0_13] : memref<512x4xf32, #tpu.memory_space<vmem>>, vector<512x4xf32>
    %c0_14 = arith.constant 0 : index
    %c0_15 = arith.constant 0 : index
    %39 = vector.load %arg6[%c0_14, %c0_15] : memref<512x4xi8, #tpu.memory_space<vmem>>, vector<512x4xi8>
    %40 = arith.sitofp %39 : vector<512x4xi8> to vector<512x4xf32>
    %cst_16 = arith.constant 0.000000e+00 : f32
    %41 = vector.broadcast %cst_16 : f32 to vector<512x4xf32>
    %42 = arith.maximumf %38, %41 : vector<512x4xf32>
    %43 = arith.mulf %38, %40 : vector<512x4xf32>
    %44 = arith.subf %42, %43 : vector<512x4xf32>
    %45 = math.absf %38 : vector<512x4xf32>
    %cst_17 = arith.constant 0.000000e+00 : f32
    %46 = vector.broadcast %cst_17 : f32 to vector<512x4xf32>
    %47 = arith.subf %46, %45 : vector<512x4xf32>
    %48 = math.exp %47 : vector<512x4xf32>
    %49 = math.log1p %48 : vector<512x4xf32>
    %50 = arith.addf %44, %49 : vector<512x4xf32>
    %c1 = arith.constant 1 : index
    %51 = memref.load %arg8[%c1] : memref<2xf32, #tpu.memory_space<smem>>
    %cst_18 = arith.constant 0.000000e+00 : f32
    %52 = vector.shape_cast %9 : vector<512x1xi1> to vector<512x1xi1>
    %53 = vector.broadcast %52 : vector<512x1xi1> to vector<512x4xi1>
    %54 = vector.broadcast %cst_18 : f32 to vector<512x4xf32>
    %55 = arith.select %53, %50, %54 : vector<512x4xi1>, vector<512x4xf32>
    %56 = vector.shape_cast %55 : vector<512x4xf32> to vector<1x512x4xf32>
    %cst_19 = arith.constant dense<0.000000e+00> : vector<1xf32>
    %57 = vector.multi_reduction <add>, %56, %cst_19 [1, 2] : vector<1x512x4xf32> to vector<1xf32>
    %58 = vector.shape_cast %57 : vector<1xf32> to vector<1x1x1xf32>
    %59 = vector.extract %58[0, 0, 0] : f32 from vector<1x1x1xf32>
    %60 = arith.addf %51, %59 : f32
    %c1_20 = arith.constant 1 : index
    %61 = memref.load %arg8[%c1_20] : memref<2xf32, #tpu.memory_space<smem>>
    memref.store %60, %arg8[%c1_20] : memref<2xf32, #tpu.memory_space<smem>>
    %62 = arith.sitofp %3 : i32 to f32
    %c0_21 = arith.constant 0 : index
    %63 = memref.load %arg8[%c0_21] : memref<2xf32, #tpu.memory_space<smem>>
    %64 = arith.divf %63, %62 : f32
    %c1_22 = arith.constant 1 : index
    %65 = memref.load %arg8[%c1_22] : memref<2xf32, #tpu.memory_space<smem>>
    %cst_23 = arith.constant 4.000000e+00 : f32
    %66 = arith.mulf %62, %cst_23 : f32
    %67 = arith.divf %65, %66 : f32
    %c0_24 = arith.constant 0 : index
    %68 = memref.load %arg1[%c0_24] : memref<2xf32, #tpu.memory_space<smem>>
    %69 = arith.mulf %68, %64 : f32
    %c1_25 = arith.constant 1 : index
    %70 = memref.load %arg1[%c1_25] : memref<2xf32, #tpu.memory_space<smem>>
    %71 = arith.mulf %70, %67 : f32
    %72 = arith.addf %69, %71 : f32
    %c0_26 = arith.constant 0 : index
    %73 = memref.load %arg7[%c0_26] : memref<3xf32, #tpu.memory_space<smem>>
    memref.store %72, %arg7[%c0_26] : memref<3xf32, #tpu.memory_space<smem>>
    %c1_27 = arith.constant 1 : index
    %74 = memref.load %arg7[%c1_27] : memref<3xf32, #tpu.memory_space<smem>>
    memref.store %64, %arg7[%c1_27] : memref<3xf32, #tpu.memory_space<smem>>
    %c2 = arith.constant 2 : index
    %75 = memref.load %arg7[%c2] : memref<3xf32, #tpu.memory_space<smem>>
    memref.store %67, %arg7[%c2] : memref<3xf32, #tpu.memory_space<smem>>
    return
  }
  func.func @transform_0(%arg0: i32) -> i32 {
    %c0_i32 = arith.constant 0 : i32
    %c0_i32_0 = arith.constant 0 : i32
    return %c0_i32 : i32
  }
  func.func @transform_1(%arg0: i32) -> i32 {
    %c0_i32 = arith.constant 0 : i32
    %c0_i32_0 = arith.constant 0 : i32
    return %c0_i32 : i32
  }
  func.func @transform_2(%arg0: i32) -> (i32, i32) {
    %c0_i32 = arith.constant 0 : i32
    %c0_i32_0 = arith.constant 0 : i32
    return %arg0, %c0_i32 : i32, i32
  }
  func.func @transform_3(%arg0: i32) -> (i32, i32) {
    %c0_i32 = arith.constant 0 : i32
    %c0_i32_0 = arith.constant 0 : i32
    return %arg0, %c0_i32 : i32, i32
  }
  func.func @transform_4(%arg0: i32) -> (i32, i32) {
    %c0_i32 = arith.constant 0 : i32
    %c0_i32_0 = arith.constant 0 : i32
    return %arg0, %c0_i32 : i32, i32
  }
  func.func @transform_5(%arg0: i32) -> (i32, i32) {
    %c0_i32 = arith.constant 0 : i32
    %c0_i32_0 = arith.constant 0 : i32
    return %arg0, %c0_i32 : i32, i32
  }
  func.func @transform_6(%arg0: i32) -> i32 {
    %c0_i32 = arith.constant 0 : i32
    %c0_i32_0 = arith.constant 0 : i32
    return %c0_i32 : i32
  }
}

</mosaic_0001>

<bundles_post_ra>
// kernel: tpu_custom_call.1
= control target key start
LH: loop header
LB: loop body
LE: loop exit
PB: predicated region body
PF: predicated region fallthrough
CT: control target
= control target key end

     0   :  { %12 = vsyncpa [#allocation6], 0  ;;  %s9059_s0 = inlined_call_operand.vmem [shape: f32[2], index: 0, kind: input, shape index: {}]   ;;  %s9060_s1 = inlined_call_operand.<no memory space> [shape: s32[1], index: 1, kind: input, shape index: {}]   ;;  %s9061_s2 = inlined_call_operand.vmem [shape: f32[512,5], index: 2, kind: input, shape index: {}]   ;;  %s9062_s3 = inlined_call_operand.vmem [shape: s32[512,1], index: 3, kind: input, shape index: {}]   ;;  %s9063_s4 = inlined_call_operand.vmem [shape: f32[512,4], index: 4, kind: input, shape index: {}]   ;;  %s9064_s5 = inlined_call_operand.vmem [shape: s8[512,4], index: 5, kind: input, shape index: {}]   ;;  %s9065_s6 = inlined_call_operand.hbm [shape: f32[3], index: 6, kind: output, shape index: {}]  }
   0x1   :  { %13 = vsyncpa [#allocation5], 0  ;;  %s20_s23 = sshll.u32 %s9059_s0, 4  ;;  %s21_s23 = int_to_ptr.vmem [resolvable:$true] %s20_s23 }
   0x2   :  { %s4395_s24 = scalar_lea.vmem %s21_s23, 16  ;;  %p4400_p1 = scmp.lt.s32.totalorder %s21_s23, %s21_s23 }
   0x3   :  { %p4396_p0 = scmp.ne.s32.totalorder %s21_s23, %s4395_s24  ;;  %p4401_p2 = scmp.lt.s32.totalorder %s4395_s24, %s4395_s24 }
   0x5   :  { %p4402_p3 = por %p4401_p2, %p4400_p1 }
   0x7   :  { %p4403_p4 = pnand %p4402_p3, %p4396_p0 }
   0x9   :  { %4406 = shalt.err (!%p4403_p4)
}
   0xa   :  { %s4419_s25 = smov [#allocation4]  }
   0xb   :  { %23 = dma.vmem_to_smem %s21_s23, 16, %s4419_s25, [#allocation6]  }
   0xc   :  { %4415 = dma.done.wait [#allocation6], 16  }
   0xd   :  { %4416 = vsyncadd [#allocation6], 4294967280 }
   0xe   :  { %37 = sfence }
   0xf   :  { %v309_v0 = vld [vmem:[%s9062_s3 + $0x10] sm:$0xff]  ;;  %v307_v1 = vld [vmem:[%s9062_s3] sm:$0xff]  ;;  %v4420_v2 = vmov 0   ;;  %v310_v3 = vld [vmem:[%s9062_s3 + $0x18] sm:$0xff]  ;;  %vm9139_vm0 = vcmask 39936   ;;  %s3600_s19 = scvt.s32.f32 %s9060_s1  ;;  %s3612_s21 = sld [smem:[#allocation4]] }
  0x10   :  { %3811 = vset.pattern.permute.xlu1 %v4420_v2  ;;  %3810 = vset.pattern.permute.xlu0 %v4420_v2  ;;  %v308_v4 = vld [vmem:[%s9062_s3 + $0x8] sm:$0xff]  ;;  %v311_v6 = vld [vmem:[%s9062_s3 + $0x20] sm:$0xff]  ;;  %v314_v7 = vld [vmem:[%s9062_s3 + $0x38] sm:$0xff]  ;;  %s3639_s22 = sld [smem:[#allocation4 + $0x1]]  ;;  %s4421_s0 = smov [#allocation7]  }
  0x11   :  { %380 = vperm.xlu1 %3811, %v309_v0   ;;  %374 = vperm.xlu0 %3810, %v307_v1   ;;  %v312_v5 = vld [vmem:[%s9062_s3 + $0x28] sm:$0xff]  ;;  %v313_v8 = vld [vmem:[%s9062_s3 + $0x30] sm:$0xff]  ;;  %v315_v10 = vld [vmem:[%s9062_s3 + $0x40] sm:$0xff]  ;;  %s3607_s20 = smul.f32 4.0, %s3600_s19 }
  0x12   :  { %v316_v9 = vld [vmem:[%s9062_s3 + $0x48] sm:$0xff]  ;;  %v318_v11 = vld [vmem:[%s9062_s3 + $0x58] sm:$0xff]  ;;  %v317_v12 = vld [vmem:[%s9062_s3 + $0x50] sm:$0xff] }
  0x13   :  { %v320_v13 = vld [vmem:[%s9062_s3 + $0x68] sm:$0xff]  ;;  %v319_v14 = vld [vmem:[%s9062_s3 + $0x60] sm:$0xff]  ;;  %v322_v15 = vld [vmem:[%s9062_s3 + $0x78] sm:$0xff] }
  0x14   :  { %v321_v16 = vld [vmem:[%s9062_s3 + $0x70] sm:$0xff]  ;;  %v324_v17 = vld [vmem:[%s9062_s3 + $0x88] sm:$0xff]  ;;  %v323_v18 = vld [vmem:[%s9062_s3 + $0x80] sm:$0xff] }
  0x15   :  { %383 = vperm.xlu1 %3811, %v310_v3   ;;  %377 = vperm.xlu0 %3810, %v308_v4   ;;  %v326_v19 = vld [vmem:[%s9062_s3 + $0x98] sm:$0xff]  ;;  %v325_v20 = vld [vmem:[%s9062_s3 + $0x90] sm:$0xff]  ;;  %v328_v21 = vld [vmem:[%s9062_s3 + $0xa8] sm:$0xff] }
  0x16   :  { %v327_v22 = vld [vmem:[%s9062_s3 + $0xa0] sm:$0xff]  ;;  %v330_v23 = vld [vmem:[%s9062_s3 + $0xb8] sm:$0xff]  ;;  %v329_v24 = vld [vmem:[%s9062_s3 + $0xb0] sm:$0xff] }
  0x17   :  { %v332_v25 = vld [vmem:[%s9062_s3 + $0xc8] sm:$0xff]  ;;  %v331_v26 = vld [vmem:[%s9062_s3 + $0xc0] sm:$0xff]  ;;  %v334_v27 = vld [vmem:[%s9062_s3 + $0xd8] sm:$0xff] }
  0x18   :  { %v333_v28 = vld [vmem:[%s9062_s3 + $0xd0] sm:$0xff]  ;;  %v335_v29 = vld [vmem:[%s9062_s3 + $0xe0] sm:$0xff]  ;;  %v4550_v30 = vld [vmem:[%s9061_s2 + $0x8] sm:$0xff] }
  0x19   :  { %389 = vperm.xlu1 %3811, %v312_v5   ;;  %386 = vperm.xlu0 %3810, %v311_v6   ;;  %v4555_v31 = vld [vmem:[%s9061_s2] sm:$0xff]  ;;  %v889_v32 = vsel %vm9139_vm0, %v4550_v30, -inf  ;;  %v4564_v34 = vld [vmem:[%s9061_s2 + $0x10] sm:$0xff]  ;;  %v4569_v35 = vld [vmem:[%s9061_s2 + $0x18] sm:$0xff] }
  0x1a   :  { %v886_v33 = vsel %vm9139_vm0, %v4555_v31, -inf  ;;  %v892_v36 = vsel %vm9139_vm0, %v4564_v34, -inf  ;;  %v895_v37 = vsel %vm9139_vm0, %v4569_v35, -inf  ;;  %v4578_v38 = vld [vmem:[%s9061_s2 + $0x20] sm:$0xff]  ;;  %v4583_v39 = vld [vmem:[%s9061_s2 + $0x28] sm:$0xff]  ;;  %v4592_v42 = vld [vmem:[%s9061_s2 + $0x30] sm:$0xff] }
  0x1b   :  { %v898_v40 = vsel %vm9139_vm0, %v4578_v38, -inf  ;;  %v901_v41 = vsel %vm9139_vm0, %v4583_v39, -inf  ;;  %v4597_v43 = vld [vmem:[%s9061_s2 + $0x38] sm:$0xff]  ;;  %v904_v44 = vsel %vm9139_vm0, %v4592_v42, -inf  ;;  %v4606_v46 = vld [vmem:[%s9061_s2 + $0x40] sm:$0xff]  ;;  %v4611_v47 = vld [vmem:[%s9061_s2 + $0x48] sm:$0xff] }
  0x1c   :  { %v907_v45 = vsel %vm9139_vm0, %v4597_v43, -inf  ;;  %v910_v48 = vsel %vm9139_vm0, %v4606_v46, -inf  ;;  %v913_v49 = vsel %vm9139_vm0, %v4611_v47, -inf  ;;  %v4620_v50 = vld [vmem:[%s9061_s2 + $0x50] sm:$0xff]  ;;  %v4625_v51 = vld [vmem:[%s9061_s2 + $0x58] sm:$0xff]  ;;  %v4634_v54 = vld [vmem:[%s9061_s2 + $0x60] sm:$0xff] }
  0x1d   :  { %395 = vperm.xlu1 %3811, %v314_v7   ;;  %392 = vperm.xlu0 %3810, %v313_v8   ;;  %v916_v52 = vsel %vm9139_vm0, %v4620_v50, -inf  ;;  %v919_v53 = vsel %vm9139_vm0, %v4625_v51, -inf  ;;  %v4639_v55 = vld [vmem:[%s9061_s2 + $0x68] sm:$0xff]  ;;  %v922_v56 = vsel %vm9139_vm0, %v4634_v54, -inf  ;;  %v4648_v58 = vld [vmem:[%s9061_s2 + $0x70] sm:$0xff]  ;;  %v4655_v60 = vld [vmem:[%s9061_s2 + $0x78] sm:$0xff] }
  0x1e   :  { %v925_v57 = vsel %vm9139_vm0, %v4639_v55, -inf  ;;  %v928_v59 = vsel %vm9139_vm0, %v4648_v58, -inf  ;;  %v931_v61 = vsel %vm9139_vm0, %v4655_v60, -inf  ;;  %v4662_v62 = vld [vmem:[%s9061_s2 + $0x80] sm:$0xff]  ;;  %v4669_v0 = vld [vmem:[%s9061_s2 + $0x88] sm:$0xff]  ;;  %v4676_v2 = vld [vmem:[%s9061_s2 + $0x90] sm:$0xff] }
  0x1f   :  { %v934_v63 = vsel %vm9139_vm0, %v4662_v62, -inf  ;;  %v937_v1 = vsel %vm9139_vm0, %v4669_v0, -inf  ;;  %v940_v3 = vsel %vm9139_vm0, %v4676_v2, -inf  ;;  %v4683_v4 = vld [vmem:[%s9061_s2 + $0x98] sm:$0xff]  ;;  %v4690_v6 = vld [vmem:[%s9061_s2 + $0xa0] sm:$0xff]  ;;  %v4697_v8 = vld [vmem:[%s9061_s2 + $0xa8] sm:$0xff] }
  0x20   :  { %v943_v5 = vsel %vm9139_vm0, %v4683_v4, -inf  ;;  %v946_v7 = vsel %vm9139_vm0, %v4690_v6, -inf }
  0x21   :  { %401 = vperm.xlu1 %3811, %v316_v9   ;;  %398 = vperm.xlu0 %3810, %v315_v10   ;;  %v949_v9 = vsel %vm9139_vm0, %v4697_v8, -inf  ;;  %v4704_v10 = vld [vmem:[%s9061_s2 + $0xb0] sm:$0xff] }
  0x25   :  { %407 = vperm.xlu1 %3811, %v318_v11   ;;  %404 = vperm.xlu0 %3810, %v317_v12   ;;  %v952_v11 = vsel %vm9139_vm0, %v4704_v10, -inf  ;;  %v4711_v12 = vld [vmem:[%s9061_s2 + $0xb8] sm:$0xff] }
  0x29   :  { %413 = vperm.xlu1 %3811, %v320_v13   ;;  %410 = vperm.xlu0 %3810, %v319_v14   ;;  %v955_v13 = vsel %vm9139_vm0, %v4711_v12, -inf  ;;  %v4718_v14 = vld [vmem:[%s9061_s2 + $0xc0] sm:$0xff] }
  0x2d   :  { %419 = vperm.xlu1 %3811, %v322_v15   ;;  %416 = vperm.xlu0 %3810, %v321_v16   ;;  %v4723_v15 = vld [vmem:[%s9061_s2 + $0xc8] sm:$0xff]  ;;  %v958_v16 = vsel %vm9139_vm0, %v4718_v14, -inf }
  0x31   :  { %425 = vperm.xlu1 %3811, %v324_v17   ;;  %422 = vperm.xlu0 %3810, %v323_v18   ;;  %v961_v17 = vsel %vm9139_vm0, %v4723_v15, -inf  ;;  %v4732_v18 = vld [vmem:[%s9061_s2 + $0xd0] sm:$0xff] }
  0x35   :  { %431 = vperm.xlu1 %3811, %v326_v19   ;;  %428 = vperm.xlu0 %3810, %v325_v20   ;;  %v4739_v20 = vld [vmem:[%s9061_s2 + $0xd8] sm:$0xff] }
  0x39   :  { %437 = vperm.xlu1 %3811, %v328_v21   ;;  %434 = vperm.xlu0 %3810, %v327_v22   ;;  %v964_v21 = vsel %vm9139_vm0, %v4732_v18, -inf  ;;  %v967_v22 = vsel %vm9139_vm0, %v4739_v20, -inf }
  0x3d   :  { %443 = vperm.xlu1 %3811, %v330_v23   ;;  %440 = vperm.xlu0 %3810, %v329_v24   ;;  %v4748_v23 = vld [vmem:[%s9061_s2 + $0xe8] sm:$0xff]  ;;  %v4753_v24 = vld [vmem:[%s9061_s2 + $0xe0] sm:$0xff] }
  0x41   :  { %449 = vperm.xlu1 %3811, %v332_v25   ;;  %446 = vperm.xlu0 %3810, %v331_v26   ;;  %v970_v25 = vsel %vm9139_vm0, %v4753_v24, -inf  ;;  %v973_v26 = vsel %vm9139_vm0, %v4748_v23, -inf }
  0x45   :  { %455 = vperm.xlu1 %3811, %v334_v27   ;;  %452 = vperm.xlu0 %3810, %v333_v28   ;;  %v4762_v27 = vld [vmem:[%s9061_s2 + $0xf0] sm:$0xff] }
  0x46   :  { %9157 = vst [vmem:[#allocation10_spill] sm:$0xff] %v4762_v27 }
  0x49   :  { %458 = vperm.xlu0 %3810, %v335_v29   ;;  %v4769_v29 = vld [vmem:[%s9061_s2 + $0xf8] sm:$0xff] }
  0x4a   :  { %9158 = vst [vmem:[#allocation11_spill] sm:$0xff] %v4769_v29 }
  0x68   :  { %890 = vmax.xlane.f32.xlu0 %v889_v32 }
  0x69   :  { %887 = vmax.xlane.f32.xlu1 %v886_v33  ;;  %v976_v33 = vsel %vm9139_vm0, %v4762_v27, -inf }
  0x6c   :  { %893 = vmax.xlane.f32.xlu0 %v892_v36  ;;  %v979_v36 = vsel %vm9139_vm0, %v4769_v29, -inf }
  0x6d   :  { %896 = vmax.xlane.f32.xlu1 %v895_v37  ;;  %v4780_v37 = vld [vmem:[%s9061_s2 + $0x100] sm:$0xff] }
  0x70   :  { %899 = vmax.xlane.f32.xlu0 %v898_v40  ;;  %v4785_v40 = vld [vmem:[%s9061_s2 + $0x108] sm:$0xff] }
  0x71   :  { %902 = vmax.xlane.f32.xlu1 %v901_v41 }
  0x74   :  { %905 = vmax.xlane.f32.xlu0 %v904_v44  ;;  %v982_v44 = vsel %vm9139_vm0, %v4780_v37, -inf }
  0x75   :  { %908 = vmax.xlane.f32.xlu1 %v907_v45 }
  0x78   :  { %911 = vmax.xlane.f32.xlu0 %v910_v48  ;;  %v985_v48 = vsel %vm9139_vm0, %v4785_v40, -inf }
  0x79   :  { %914 = vmax.xlane.f32.xlu1 %v913_v49  ;;  %v4798_v49 = vld [vmem:[%s9061_s2 + $0x110] sm:$0xff] }
  0x7a   :  { %9159 = vst [vmem:[#allocation12_spill] sm:$0xff] %v4798_v49 }
  0x7c   :  { %917 = vmax.xlane.f32.xlu0 %v916_v52  ;;  %v4803_v52 = vld [vmem:[%s9061_s2 + $0x118] sm:$0xff] }
  0x7d   :  { %920 = vmax.xlane.f32.xlu1 %v919_v53  ;;  %9160 = vst [vmem:[#allocation13_spill] sm:$0xff] %v4803_v52  ;;  %v988_v53 = vsel %vm9139_vm0, %v4798_v49, -inf }
  0x80   :  { %923 = vmax.xlane.f32.xlu0 %v922_v56  ;;  %v991_v56 = vsel %vm9139_vm0, %v4803_v52, -inf }
  0x81   :  { %926 = vmax.xlane.f32.xlu1 %v925_v57  ;;  %v4812_v57 = vld [vmem:[%s9061_s2 + $0x120] sm:$0xff] }
  0x82   :  { %9161 = vst [vmem:[#allocation14_spill] sm:$0xff] %v4812_v57 }
  0x84   :  { %929 = vmax.xlane.f32.xlu0 %v928_v59 }
  0x85   :  { %932 = vmax.xlane.f32.xlu1 %v931_v61  ;;  %v4819_v61 = vld [vmem:[%s9061_s2 + $0x128] sm:$0xff] }
  0x86   :  { %9162 = vst [vmem:[#allocation15_spill] sm:$0xff] %v4819_v61 }
  0x88   :  { %935 = vmax.xlane.f32.xlu0 %v934_v63 }
  0x89   :  { %938 = vmax.xlane.f32.xlu1 %v937_v1  ;;  %v994_v1 = vsel %vm9139_vm0, %v4812_v57, -inf }
  0x8c   :  { %941 = vmax.xlane.f32.xlu0 %v940_v3  ;;  %v4734_v19 = vpop.permute.xlu0 %374  ;;  %v4771_v32 = vpop.permute.xlu1 %380  ;;  %v997_v3 = vsel %vm9139_vm0, %v4819_v61, -inf }
  0x8d   :  { %944 = vmax.xlane.f32.xlu1 %v943_v5  ;;  %v281_v5 = vld [vmem:[%s9061_s2 + $0x130] sm:$0xff] }
  0x90   :  { %947 = vmax.xlane.f32.xlu0 %v946_v7  ;;  %v4764_v28 = vpop.permute.xlu0 %377  ;;  %v4791_v45 = vpop.permute.xlu1 %383  ;;  %v282_v7 = vld [vmem:[%s9061_s2 + $0x138] sm:$0xff] }
  0x91   :  { %950 = vmax.xlane.f32.xlu1 %v949_v9 }
  0x94   :  { %953 = vmax.xlane.f32.xlu0 %v952_v11  ;;  %v4787_v41 = vpop.permute.xlu0 %386  ;;  %v4821_v63 = vpop.permute.xlu1 %389  ;;  %v1000_v11 = vsel %vm9139_vm0, %v281_v5, -inf }
  0x95   :  { %956 = vmax.xlane.f32.xlu1 %v955_v13 }
  0x98   :  { %959 = vmax.xlane.f32.xlu0 %v958_v16  ;;  %v4814_v59 = vpop.permute.xlu0 %392  ;;  %v4836_v13 = vpop.permute.xlu1 %395  ;;  %v1003_v16 = vsel %vm9139_vm0, %v282_v7, -inf }
  0x99   :  { %962 = vmax.xlane.f32.xlu1 %v961_v17  ;;  %v283_v17 = vld [vmem:[%s9061_s2 + $0x140] sm:$0xff] }
  0x9c   :  { %965 = vmax.xlane.f32.xlu0 %v964_v21  ;;  %v4833_v9 = vpop.permute.xlu0 %398  ;;  %v284_v21 = vld [vmem:[%s9061_s2 + $0x148] sm:$0xff] }
  0x9d   :  { %968 = vmax.xlane.f32.xlu1 %v967_v22  ;;  %v1006_v22 = vsel %vm9139_vm0, %v283_v17, -inf }
  0xa0   :  { %971 = vmax.xlane.f32.xlu0 %v970_v25  ;;  %v1009_v25 = vsel %vm9139_vm0, %v284_v21, -inf }
  0xa1   :  { %974 = vmax.xlane.f32.xlu1 %v973_v26  ;;  %v285_v26 = vld [vmem:[%s9061_s2 + $0x150] sm:$0xff] }
  0xa4   :  { %977 = vmax.xlane.f32.xlu0 %v976_v33  ;;  %v4850_v33 = vpop.permute.xlu0 %404 }
  0xa5   :  { %980 = vmax.xlane.f32.xlu1 %v979_v36  ;;  %v286_v36 = vld [vmem:[%s9061_s2 + $0x158] sm:$0xff] }
  0xa8   :  { %983 = vmax.xlane.f32.xlu0 %v982_v44  ;;  %v4855_v44 = vpop.permute.xlu1 %401 }
  0xa9   :  { %986 = vmax.xlane.f32.xlu1 %v985_v48  ;;  %v1012_v48 = vsel %vm9139_vm0, %v285_v26, -inf }
  0xac   :  { %989 = vmax.xlane.f32.xlu0 %v988_v53  ;;  %v1015_v53 = vsel %vm9139_vm0, %v286_v36, -inf  ;;  %v4868_v7 = vpop.permute.xlu1 %407 }
  0xad   :  { %992 = vmax.xlane.f32.xlu1 %v991_v56  ;;  %v287_v56 = vld [vmem:[%s9061_s2 + $0x160] sm:$0xff] }
  0xae   :  { %v1018_v5 = vsel %vm9139_vm0, %v287_v56, -inf }
  0xb0   :  { %995 = vmax.xlane.f32.xlu0 %v994_v1  ;;  %v288_v1 = vld [vmem:[%s9061_s2 + $0x168] sm:$0xff]  ;;  %v4873_v17 = vpop.permute.xlu1 %413 }
  0xb1   :  { %998 = vmax.xlane.f32.xlu1 %v997_v3  ;;  %v4865_v3 = vpop.permute.xlu0 %410 }
  0xb4   :  { %1001 = vmax.xlane.f32.xlu0 %v1000_v11  ;;  %v1021_v11 = vsel %vm9139_vm0, %v288_v1, -inf }
  0xb5   :  { %1004 = vmax.xlane.f32.xlu1 %v1003_v16  ;;  %v4871_v16 = vpop.permute.xlu0 %416 }
  0xb8   :  { %1007 = vmax.xlane.f32.xlu0 %v1006_v22  ;;  %v4877_v22 = vpop.permute.xlu1 %419 }
  0xb9   :  { %1010 = vmax.xlane.f32.xlu1 %v1009_v25  ;;  %v4875_v21 = vpop.permute.xlu0 %422 }
  0xbc   :  { %1013 = vmax.xlane.f32.xlu0 %v1012_v48  ;;  %v4881_v26 = vpop.permute.xlu1 %425 }
  0xbd   :  { %1016 = vmax.xlane.f32.xlu1 %v1015_v53  ;;  %v4879_v25 = vpop.permute.xlu0 %428 }
  0xbe   :  { %9163 = vst [vmem:[#allocation16_spill] sm:$0xff] %v4879_v25 }
  0xc0   :  { %1019 = vmax.xlane.f32.xlu0 %v1018_v5  ;;  %v4885_v48 = vpop.permute.xlu1 %431 }
  0xc1   :  { %1022 = vmax.xlane.f32.xlu1 %v1021_v11  ;;  %v4883_v36 = vpop.permute.xlu0 %434  ;;  %9165 = vst [vmem:[#allocation18_spill] sm:$0xff] %v4885_v48 }
  0xc2   :  { %9164 = vst [vmem:[#allocation17_spill] sm:$0xff] %v4883_v36 }
  0xc4   :  { %v4889_v56 = vpop.permute.xlu1 %437 }
  0xc5   :  { %v4887_v53 = vpop.permute.xlu0 %440  ;;  %9167 = vst [vmem:[#allocation20_spill] sm:$0xff] %v4889_v56 }
  0xc6   :  { %9166 = vst [vmem:[#allocation19_spill] sm:$0xff] %v4887_v53 }
  0xc8   :  { %v4893_v5 = vpop.permute.xlu1 %443 }
  0xc9   :  { %v4891_v1 = vpop.permute.xlu0 %446  ;;  %9169 = vst [vmem:[#allocation22_spill] sm:$0xff] %v4893_v5 }
  0xca   :  { %9168 = vst [vmem:[#allocation21_spill] sm:$0xff] %v4891_v1 }
  0xcc   :  { %v4897_v61 = vpop.permute.xlu1 %449 }
  0xcd   :  { %v4895_v11 = vpop.permute.xlu0 %452  ;;  %9171 = vst [vmem:[#allocation24_spill] sm:$0xff] %v4897_v61 }
  0xce   :  { %9170 = vst [vmem:[#allocation23_spill] sm:$0xff] %v4895_v11 }
  0xd0   :  { %v4901_v57 = vpop.permute.xlu1 %455 }
  0xd1   :  { %v4899_v29 = vpop.permute.xlu0 %458  ;;  %9173 = vst [vmem:[#allocation26_spill] sm:$0xff] %v4901_v57 }
  0xd2   :  { %9172 = vst [vmem:[#allocation25_spill] sm:$0xff] %v4899_v29 }
  0xf1   :  { %v4903_v52 = vpop.xlane.xlu0 %890 }
  0xf2   :  { %9174 = vst [vmem:[#allocation27_spill] sm:$0xff] %v4903_v52  ;;  %v1079_v36 = vsub.f32 %v4550_v30, %v4903_v52  ;;  %v4907_v53 = vpop.xlane.xlu1 %887 }
  0xf3   :  { %9175 = vst [vmem:[#allocation28_spill] sm:$0xff] %v4907_v53  ;;  %v1078_v1 = vsub.f32 %v4555_v31, %v4907_v53 }
  0xf4   :  { %v1144_v56 = vmul.f32 1.442695, %v1079_v36 }
  0xf5   :  { %v1142_v5 = vmul.f32 1.442695, %v1078_v1  ;;  %v4911_v48 = vpop.xlane.xlu0 %893 }
  0xf6   :  { %9176 = vst [vmem:[#allocation29_spill] sm:$0xff] %v4911_v48  ;;  %3812 = vpow2.f32 %v1144_v56  ;;  %v1080_v29 = vsub.f32 %v4564_v34, %v4911_v48  ;;  %v4915_v11 = vpop.xlane.xlu1 %896 }
  0xf7   :  { %9177 = vst [vmem:[#allocation30_spill] sm:$0xff] %v4915_v11  ;;  %3814 = vpow2.f32 %v1142_v5  ;;  %v1081_v57 = vsub.f32 %v4569_v35, %v4915_v11 }
  0xf8   :  { %v1146_v52 = vmul.f32 1.442695, %v1080_v29 }
  0xf9   :  { %v1148_v61 = vmul.f32 1.442695, %v1081_v57  ;;  %v4919_v27 = vpop.xlane.xlu0 %899 }
  0xfa   :  { %9178 = vst [vmem:[#allocation31_spill] sm:$0xff] %v4919_v27  ;;  %3816 = vpow2.f32 %v1146_v52  ;;  %v1082_v36 = vsub.f32 %v4578_v38, %v4919_v27  ;;  %v4923_v1 = vpop.xlane.xlu1 %902 }
  0xfb   :  { %9179 = vst [vmem:[#allocation32_spill] sm:$0xff] %v4923_v1  ;;  %3818 = vpow2.f32 %v1148_v61  ;;  %v1083_v56 = vsub.f32 %v4583_v39, %v4923_v1 }
  0xfc   :  { %v1150_v48 = vmul.f32 1.442695, %v1082_v36 }
  0xfd   :  { %v4927_v53 = vpop.xlane.xlu0 %905  ;;  %v1152_v5 = vmul.f32 1.442695, %v1083_v56 }
  0xfe   :  { %9180 = vst [vmem:[#allocation33_spill] sm:$0xff] %v4927_v53  ;;  %3820 = vpow2.f32 %v1150_v48  ;;  %v1084_v29 = vsub.f32 %v4592_v42, %v4927_v53  ;;  %v4931_v57 = vpop.xlane.xlu1 %908  ;;  %v289_v48 = vld [vmem:[%s9061_s2 + $0x170] sm:$0xff] }
  0xff   :  { %9181 = vst [vmem:[#allocation34_spill] sm:$0xff] %v4931_v57  ;;  %3822 = vpow2.f32 %v1152_v5  ;;  %v1085_v27 = vsub.f32 %v4597_v43, %v4931_v57  ;;  %v1024_v53 = vsel %vm9139_vm0, %v289_v48, -inf }
 0x100   :  { %v1154_v52 = vmul.f32 1.442695, %v1084_v29 }
 0x101   :  { %v4935_v61 = vpop.xlane.xlu0 %911  ;;  %v1156_v5 = vmul.f32 1.442695, %v1085_v27 }
 0x102   :  { %9182 = vst [vmem:[#allocation35_spill] sm:$0xff] %v4935_v61  ;;  %3824 = vpow2.f32 %v1154_v52  ;;  %v1086_v29 = vsub.f32 %v4606_v46, %v4935_v61  ;;  %v4945_v1 = vpop.xlane.xlu1 %914  ;;  %v296_v61 = vld [vmem:[%s9061_s2 + $0x1a8] sm:$0xff] }
 0x103   :  { %v3813_v11 = vpop.eup %3812  ;;  %9183 = vst [vmem:[#allocation36_spill] sm:$0xff] %v4945_v1  ;;  %3826 = vpow2.f32 %v1156_v5  ;;  %v1087_v52 = vsub.f32 %v4611_v47, %v4945_v1  ;;  %v292_v1 = vld [vmem:[%s9061_s2 + $0x188] sm:$0xff] }
 0x104   :  { %v3815_v49 = vpop.eup %3814  ;;  %v1273_v36 = vsel %vm9139_vm0, %v3813_v11, 0.0 }
 0x105   :  { %1274 = vadd.xlane.f32.xlu1 %v1273_v36  ;;  %v1270_v56 = vsel %vm9139_vm0, %v3815_v49, 0.0  ;;  %v290_v36 = vld [vmem:[%s9061_s2 + $0x178] sm:$0xff]  ;;  %v1158_v49 = vmul.f32 1.442695, %v1086_v29  ;;  %v1160_v5 = vmul.f32 1.442695, %v1087_v52 }
 0x106   :  { %1271 = vadd.xlane.f32.xlu0 %v1270_v56  ;;  %v1027_v48 = vsel %vm9139_vm0, %v290_v36, -inf  ;;  %v1033_v52 = vsel %vm9139_vm0, %v292_v1, -inf  ;;  %v9084_v1 = vlaneseq }
 0x107   :  { %v3817_v57 = vpop.eup %3816  ;;  %3828 = vpow2.f32 %v1158_v49 }
 0x108   :  { %v3819_v25 = vpop.eup %3818  ;;  %v1276_v11 = vsel %vm9139_vm0, %v3817_v57, 0.0  ;;  %v291_v57 = vld [vmem:[%s9061_s2 + $0x180] sm:$0xff]  ;;  %3830 = vpow2.f32 %v1160_v5 }
 0x109   :  { %1277 = vadd.xlane.f32.xlu1 %v1276_v11  ;;  %v1279_v27 = vsel %vm9139_vm0, %v3819_v25, 0.0  ;;  %v1030_v29 = vsel %vm9139_vm0, %v291_v57, -inf  ;;  %v4960_v25 = vpop.xlane.xlu0 %917 }
 0x10a   :  { %1025 = vmax.xlane.f32.xlu0 %v1024_v53  ;;  %9184 = vst [vmem:[#allocation37_spill] sm:$0xff] %v4960_v25  ;;  %v1088_v49 = vsub.f32 %v4620_v50, %v4960_v25 }
 0x10b   :  { %v3821_v56 = vpop.eup %3820 }
 0x10c   :  { %v1282_v11 = vsel %vm9139_vm0, %v3821_v56, 0.0  ;;  %v3823_v53 = vpop.eup %3822  ;;  %v293_v56 = vld [vmem:[%s9061_s2 + $0x190] sm:$0xff] }
 0x10d   :  { %1280 = vadd.xlane.f32.xlu1 %v1279_v27  ;;  %v1285_v36 = vsel %vm9139_vm0, %v3823_v53, 0.0  ;;  %v1036_v5 = vsel %vm9139_vm0, %v293_v56, -inf  ;;  %v294_v53 = vld [vmem:[%s9061_s2 + $0x198] sm:$0xff]  ;;  %v295_v56 = vld [vmem:[%s9061_s2 + $0x1a0] sm:$0xff] }
 0x10e   :  { %1028 = vmax.xlane.f32.xlu0 %v1027_v48  ;;  %v1162_v48 = vmul.f32 1.442695, %v1088_v49  ;;  %v1039_v49 = vsel %vm9139_vm0, %v294_v53, -inf  ;;  %v1042_v53 = vsel %vm9139_vm0, %v295_v56, -inf  ;;  %v297_v56 = vld [vmem:[%s9061_s2 + $0x1b0] sm:$0xff] }
 0x10f   :  { %v3825_v27 = vpop.eup %3824 }
 0x110   :  { %v1288_v57 = vsel %vm9139_vm0, %v3825_v27, 0.0  ;;  %3832 = vpow2.f32 %v1162_v48 }
 0x111   :  { %1283 = vadd.xlane.f32.xlu1 %v1282_v11  ;;  %v3827_v11 = vpop.eup %3826 }
 0x112   :  { %1031 = vmax.xlane.f32.xlu0 %v1030_v29  ;;  %v4977_v29 = vpop.xlane.xlu1 %920  ;;  %v1291_v25 = vsel %vm9139_vm0, %v3827_v11, 0.0 }
 0x113   :  { %9185 = vst [vmem:[#allocation38_spill] sm:$0xff] %v4977_v29  ;;  %v1089_v27 = vsub.f32 %v4625_v51, %v4977_v29 }
 0x115   :  { %1286 = vadd.xlane.f32.xlu1 %v1285_v36  ;;  %v3829_v36 = vpop.eup %3828  ;;  %v1164_v29 = vmul.f32 1.442695, %v1089_v27 }
 0x116   :  { %1034 = vmax.xlane.f32.xlu0 %v1033_v52  ;;  %v4983_v52 = vpop.xlane.xlu0 %923  ;;  %v1294_v48 = vsel %vm9139_vm0, %v3829_v36, 0.0  ;;  %v1045_v36 = vsel %vm9139_vm0, %v296_v61, -inf  ;;  %v5005_v27 = vpop.xlane.xlu1 %926 }
 0x117   :  { %9186 = vst [vmem:[#allocation39_spill] sm:$0xff] %v4983_v52  ;;  %v1090_v11 = vsub.f32 %v4634_v54, %v4983_v52  ;;  %3834 = vpow2.f32 %v1164_v29  ;;  %9188 = vst [vmem:[#allocation41_spill] sm:$0xff] %v5005_v27  ;;  %v1091_v61 = vsub.f32 %v4639_v55, %v5005_v27 }
 0x119   :  { %1289 = vadd.xlane.f32.xlu1 %v1288_v57  ;;  %v4989_v57 = vand.u32 127, %v9084_v1 }
 0x11a   :  { %1037 = vmax.xlane.f32.xlu0 %v1036_v5  ;;  %v3831_v5 = vpop.eup %3830  ;;  %v5013_v29 = vpop.xlane.xlu0 %929 }
 0x11b   :  { %9187 = vst [vmem:[#allocation40_spill] sm:$0xff] %v4989_v57  ;;  %vm565_vm1 = vcmp.eq.s32.totalorder %v4989_v57, %v4734_v19  ;;  %vm566_vm2 = vcmp.eq.s32.totalorder %v4989_v57, %v4764_v28  ;;  %v1048_v19 = vsel %vm9139_vm0, %v297_v56, -inf  ;;  %9189 = vst [vmem:[#allocation42_spill] sm:$0xff] %v5013_v29  ;;  %vm567_vm3 = vcmp.eq.s32.totalorder %v4989_v57, %v4771_v32 }
 0x11c   :  { %v629_v1 = vsel %vm565_vm1, %v4555_v31, 0.0  ;;  %v1092_v28 = vsub.f32 %v4648_v58, %v5013_v29  ;;  %vm568_vm4 = vcmp.eq.s32.totalorder %v4989_v57, %v4791_v45  ;;  %vm569_vm5 = vcmp.eq.s32.totalorder %v4989_v57, %v4787_v41 }
 0x11d   :  { %1292 = vadd.xlane.f32.xlu1 %v1291_v25  ;;  %v1166_v25 = vmul.f32 1.442695, %v1090_v11  ;;  %v694_v11 = vsel %vm9139_vm0, %v629_v1, 0.0  ;;  %v633_v41 = vsel %vm569_vm5, %v4578_v38, 0.0  ;;  %vm570_vm6 = vcmp.eq.s32.totalorder %v4989_v57, %v4821_v63 }
 0x11e   :  { %1040 = vmax.xlane.f32.xlu0 %v1039_v49  ;;  %v1297_v49 = vsel %vm9139_vm0, %v3831_v5, 0.0  ;;  %v630_v5 = vsel %vm566_vm2, %v4550_v30, 0.0  ;;  %v1170_v32 = vmul.f32 1.442695, %v1092_v28  ;;  %v299_v30 = vld [vmem:[%s9061_s2 + $0x1c0] sm:$0xff]  ;;  %vm571_vm7 = vcmp.eq.s32.totalorder %v4989_v57, %v4814_v59 }
 0x11f   :  { %3836 = vpow2.f32 %v1166_v25  ;;  %v298_v25 = vld [vmem:[%s9061_s2 + $0x1b8] sm:$0xff]  ;;  %v697_v1 = vsel %vm9139_vm0, %v630_v5, 0.0  ;;  %v5040_v5 = vpop.xlane.xlu0 %935  ;;  %vm572_vm8 = vcmp.eq.s32.totalorder %v4989_v57, %v4836_v13  ;;  %vm573_vm9 = vcmp.eq.s32.totalorder %v4989_v57, %v4833_v9 }
 0x120   :  { %9191 = vst [vmem:[#allocation44_spill] sm:$0xff] %v5040_v5  ;;  %vm574_vm10 = vcmp.eq.s32.totalorder %v4989_v57, %v4855_v44  ;;  %vm575_vm11 = vcmp.eq.s32.totalorder %v4989_v57, %v4850_v33  ;;  %vm576_vm12 = vcmp.eq.s32.totalorder %v4989_v57, %v4868_v7  ;;  %vm577_vm13 = vcmp.eq.s32.totalorder %v4989_v57, %v4865_v3 }
 0x121   :  { %1295 = vadd.xlane.f32.xlu1 %v1294_v48  ;;  %v3833_v48 = vpop.eup %3832  ;;  %vm578_vm14 = vcmp.eq.s32.totalorder %v4989_v57, %v4873_v17  ;;  %vm579_vm15 = vcmp.eq.s32.totalorder %v4989_v57, %v4871_v16  ;;  %vm580_vm1 = vcmp.eq.s32.totalorder %v4989_v57, %v4877_v22  ;;  %vm581_vm2 = vcmp.eq.s32.totalorder %v4989_v57, %v4875_v21 }
 0x122   :  { %1043 = vmax.xlane.f32.xlu0 %v1042_v53  ;;  %v1300_v31 = vsel %vm9139_vm0, %v3833_v48, 0.0  ;;  %v1168_v53 = vmul.f32 1.442695, %v1091_v61  ;;  %v1054_v61 = vsel %vm9139_vm0, %v299_v30, -inf  ;;  %v301_v30 = vld [vmem:[%s9061_s2 + $0x1d0] sm:$0xff] }
 0x124   :  { %3838 = vpow2.f32 %v1168_v53  ;;  %v3835_v56 = vpop.eup %3834  ;;  %v632_v53 = vsel %vm568_vm4, %v4569_v35, 0.0 }
 0x125   :  { %1298 = vadd.xlane.f32.xlu1 %v1297_v49  ;;  %v631_v49 = vsel %vm567_vm3, %v4564_v34, 0.0  ;;  %3840 = vpow2.f32 %v1170_v32  ;;  %v703_v32 = vsel %vm9139_vm0, %v632_v53, 0.0  ;;  %vm582_vm3 = vcmp.eq.s32.totalorder %v4989_v57, %v4881_v26 }
 0x126   :  { %1046 = vmax.xlane.f32.xlu0 %v1045_v36  ;;  %v1051_v36 = vsel %vm9139_vm0, %v298_v25, -inf  ;;  %v700_v48 = vsel %vm9139_vm0, %v631_v49, 0.0  ;;  %v1094_v25 = vsub.f32 %v4662_v62, %v5040_v5 }
 0x129   :  { %695 = vadd.xlane.f32.xlu1 %v694_v11  ;;  %v1303_v11 = vsel %vm9139_vm0, %v3835_v56, 0.0 }
 0x12a   :  { %1049 = vmax.xlane.f32.xlu0 %v1048_v19  ;;  %v5032_v19 = vpop.xlane.xlu1 %932 }
 0x12b   :  { %9190 = vst [vmem:[#allocation43_spill] sm:$0xff] %v5032_v19 }
 0x12c   :  { %v3837_v34 = vpop.eup %3836 }
 0x12d   :  { %1301 = vadd.xlane.f32.xlu1 %v1300_v31  ;;  %v1093_v31 = vsub.f32 %v4655_v60, %v5032_v19  ;;  %v1306_v28 = vsel %vm9139_vm0, %v3837_v34, 0.0  ;;  %v1060_v34 = vsel %vm9139_vm0, %v301_v30, -inf  ;;  %v303_v30 = vld [vmem:[%s9061_s2 + $0x1e0] sm:$0xff] }
 0x12e   :  { %698 = vadd.xlane.f32.xlu0 %v697_v1  ;;  %v300_v1 = vld [vmem:[%s9061_s2 + $0x1c8] sm:$0xff]  ;;  %v5051_v49 = vpop.xlane.xlu1 %938 }
 0x12f   :  { %v1172_v45 = vmul.f32 1.442695, %v1093_v31  ;;  %9192 = vst [vmem:[#allocation45_spill] sm:$0xff] %v5051_v49  ;;  %v1057_v35 = vsel %vm9139_vm0, %v300_v1, -inf  ;;  %v1095_v31 = vsub.f32 %v4669_v0, %v5051_v49 }
 0x131   :  { %701 = vadd.xlane.f32.xlu1 %v700_v48  ;;  %3842 = vpow2.f32 %v1172_v45  ;;  %v3839_v56 = vpop.eup %3838  ;;  %v706_v48 = vsel %vm9139_vm0, %v633_v41, 0.0  ;;  %v634_v45 = vsel %vm570_vm6, %v4583_v39, 0.0  ;;  %v1176_v1 = vmul.f32 1.442695, %v1095_v31 }
 0x132   :  { %1052 = vmax.xlane.f32.xlu0 %v1051_v36  ;;  %v1174_v36 = vmul.f32 1.442695, %v1094_v25  ;;  %v3841_v38 = vpop.eup %3840  ;;  %v709_v41 = vsel %vm9139_vm0, %v634_v45, 0.0 }
 0x133   :  { %v1312_v25 = vsel %vm9139_vm0, %v3841_v38, 0.0 }
 0x134   :  { %3844 = vpow2.f32 %v1174_v36  ;;  %v635_v36 = vsel %vm571_vm7, %v4592_v42, 0.0 }
 0x135   :  { %1055 = vmax.xlane.f32.xlu1 %v1054_v61  ;;  %v5060_v61 = vpop.xlane.xlu1 %944  ;;  %3846 = vpow2.f32 %v1176_v1 }
 0x136   :  { %1304 = vadd.xlane.f32.xlu0 %v1303_v11  ;;  %9193 = vst [vmem:[#allocation46_spill] sm:$0xff] %v5060_v61  ;;  %v1309_v11 = vsel %vm9139_vm0, %v3839_v56, 0.0 }
 0x139   :  { %1307 = vadd.xlane.f32.xlu1 %v1306_v28  ;;  %v5068_v28 = vpop.xlane.xlu0 %941  ;;  %v5070_v53 = vpop.xlane.xlu1 %950 }
 0x13a   :  { %704 = vadd.xlane.f32.xlu0 %v703_v32  ;;  %9194 = vst [vmem:[#allocation47_spill] sm:$0xff] %v5068_v28  ;;  %9195 = vst [vmem:[#allocation48_spill] sm:$0xff] %v5070_v53  ;;  %v1096_v63 = vsub.f32 %v4676_v2, %v5068_v28  ;;  %v302_v32 = vld [vmem:[%s9061_s2 + $0x1d8] sm:$0xff] }
 0x13b   :  { %v1063_v39 = vsel %vm9139_vm0, %v302_v32, -inf  ;;  %v304_v32 = vld [vmem:[%s9061_s2 + $0x1e8] sm:$0xff] }
 0x13c   :  { %v1178_v59 = vmul.f32 1.442695, %v1096_v63  ;;  %v636_v63 = vsel %vm572_vm8, %v4597_v43, 0.0  ;;  %v1069_v43 = vsel %vm9139_vm0, %v304_v32, -inf }
 0x13d   :  { %707 = vadd.xlane.f32.xlu1 %v706_v48  ;;  %v712_v48 = vsel %vm9139_vm0, %v635_v36, 0.0  ;;  %v5096_v31 = vpop.xlane.xlu0 %947  ;;  %v637_v36 = vsel %vm573_vm9, %v4606_v46, 0.0 }
 0x13e   :  { %1058 = vmax.xlane.f32.xlu0 %v1057_v35  ;;  %v5083_v35 = vpop.xlane.xlu1 %956  ;;  %v3843_v56 = vpop.eup %3842  ;;  %3848 = vpow2.f32 %v1178_v59  ;;  %9197 = vst [vmem:[#allocation50_spill] sm:$0xff] %v5096_v31  ;;  %v1098_v13 = vsub.f32 %v4690_v6, %v5096_v31 }
 0x13f   :  { %9196 = vst [vmem:[#allocation49_spill] sm:$0xff] %v5083_v35  ;;  %v1315_v38 = vsel %vm9139_vm0, %v3843_v56, 0.0 }
 0x140   :  { %v1182_v59 = vmul.f32 1.442695, %v1098_v13  ;;  %v638_v13 = vsel %vm574_vm10, %v4611_v47, 0.0 }
 0x141   :  { %1061 = vmax.xlane.f32.xlu1 %v1060_v34  ;;  %v1066_v34 = vsel %vm9139_vm0, %v303_v30, -inf  ;;  %v3845_v42 = vpop.eup %3844  ;;  %v1099_v30 = vsub.f32 %v4697_v8, %v5070_v53  ;;  %v5119_v56 = vpop.xlane.xlu0 %953 }
 0x142   :  { %1310 = vadd.xlane.f32.xlu0 %v1309_v11  ;;  %v1097_v11 = vsub.f32 %v4683_v4, %v5060_v61  ;;  %v1318_v45 = vsel %vm9139_vm0, %v3845_v42, 0.0  ;;  %9200 = vst [vmem:[#allocation53_spill] sm:$0xff] %v5119_v56 }
 0x144   :  { %v1180_v1 = vmul.f32 1.442695, %v1097_v11 }
 0x145   :  { %1313 = vadd.xlane.f32.xlu1 %v1312_v25  ;;  %v5098_v25 = vpop.xlane.xlu1 %962 }
 0x146   :  { %710 = vadd.xlane.f32.xlu0 %v709_v41  ;;  %9198 = vst [vmem:[#allocation51_spill] sm:$0xff] %v5098_v25  ;;  %v715_v41 = vsel %vm9139_vm0, %v636_v63, 0.0  ;;  %3850 = vpow2.f32 %v1180_v1  ;;  %v5130_v1 = vpop.xlane.xlu0 %959 }
 0x147   :  { %3852 = vpow2.f32 %v1182_v59  ;;  %9202 = vst [vmem:[#allocation55_spill] sm:$0xff] %v5130_v1  ;;  %v721_v59 = vsel %vm9139_vm0, %v638_v13, 0.0 }
 0x149   :  { %713 = vadd.xlane.f32.xlu1 %v712_v48  ;;  %v5111_v9 = vpop.xlane.xlu1 %968  ;;  %v3847_v48 = vpop.eup %3846 }
 0x14a   :  { %1064 = vmax.xlane.f32.xlu0 %v1063_v39  ;;  %9199 = vst [vmem:[#allocation52_spill] sm:$0xff] %v5111_v9  ;;  %v305_v39 = vld [vmem:[%s9061_s2 + $0x1f0] sm:$0xff]  ;;  %v1321_v11 = vsel %vm9139_vm0, %v3847_v48, 0.0 }
 0x14b   :  { %v1072_v46 = vsel %vm9139_vm0, %v305_v39, -inf  ;;  %v3849_v42 = vpop.eup %3848  ;;  %v1102_v39 = vsub.f32 %v4718_v14, %v5130_v1 }
 0x14c   :  { %v1324_v44 = vsel %vm9139_vm0, %v3849_v42, 0.0 }
 0x14d   :  { %1067 = vmax.xlane.f32.xlu1 %v1066_v34  ;;  %v718_v34 = vsel %vm9139_vm0, %v637_v36, 0.0  ;;  %v5128_v63 = vpop.xlane.xlu1 %974  ;;  %v1101_v36 = vsub.f32 %v4711_v12, %v5083_v35  ;;  %v1190_v7 = vmul.f32 1.442695, %v1102_v39 }
 0x14e   :  { %1316 = vadd.xlane.f32.xlu0 %v1315_v38  ;;  %v1184_v38 = vmul.f32 1.442695, %v1099_v30  ;;  %9201 = vst [vmem:[#allocation54_spill] sm:$0xff] %v5128_v63  ;;  %v5150_v30 = vpop.xlane.xlu0 %965 }
 0x14f   :  { %9204 = vst [vmem:[#allocation57_spill] sm:$0xff] %v5150_v30  ;;  %v1104_v3 = vsub.f32 %v4732_v18, %v5150_v30 }
 0x150   :  { %3854 = vpow2.f32 %v1184_v38 }
 0x151   :  { %1319 = vadd.xlane.f32.xlu1 %v1318_v45  ;;  %v1100_v45 = vsub.f32 %v4704_v10, %v5119_v56  ;;  %v5145_v33 = vpop.xlane.xlu1 %980  ;;  %v1194_v17 = vmul.f32 1.442695, %v1104_v3  ;;  %v1107_v3 = vsub.f32 %v4748_v23, %v5128_v63 }
 0x152   :  { %716 = vadd.xlane.f32.xlu0 %v715_v41  ;;  %v306_v41 = vld [vmem:[%s9061_s2 + $0x1f8] sm:$0xff]  ;;  %9203 = vst [vmem:[#allocation56_spill] sm:$0xff] %v5145_v33 }
 0x153   :  { %v1186_v32 = vmul.f32 1.442695, %v1100_v45  ;;  %v1075_v47 = vsel %vm9139_vm0, %v306_v41, -inf  ;;  %v3851_v48 = vpop.eup %3850  ;;  %v641_v45 = vsel %vm577_vm13, %v4634_v54, 0.0 }
 0x154   :  { %v3853_v42 = vpop.eup %3852 }
 0x155   :  { %719 = vadd.xlane.f32.xlu1 %v718_v34  ;;  %3856 = vpow2.f32 %v1186_v32  ;;  %v1188_v34 = vmul.f32 1.442695, %v1101_v36  ;;  %v5158_v14 = vpop.xlane.xlu1 %986  ;;  %v730_v32 = vsel %vm9139_vm0, %v641_v45, 0.0 }
 0x156   :  { %1070 = vmax.xlane.f32.xlu0 %v1069_v43  ;;  %v639_v43 = vsel %vm575_vm11, %v4620_v50, 0.0  ;;  %v640_v50 = vsel %vm576_vm12, %v4625_v51, 0.0  ;;  %9205 = vst [vmem:[#allocation58_spill] sm:$0xff] %v5158_v14  ;;  %v5163_v51 = vpop.xlane.xlu0 %971 }
 0x157   :  { %v724_v12 = vsel %vm9139_vm0, %v639_v43, 0.0  ;;  %v727_v38 = vsel %vm9139_vm0, %v640_v50, 0.0  ;;  %3858 = vpow2.f32 %v1188_v34  ;;  %9206 = vst [vmem:[#allocation59_spill] sm:$0xff] %v5163_v51  ;;  %v1106_v34 = vsub.f32 %v4753_v24, %v5163_v51  ;;  %v354_v51 = vld [vmem:[%s9062_s3 + $0x178] sm:$0xff] }
 0x158   :  { %3860 = vpow2.f32 %v1190_v7 }
 0x159   :  { %1073 = vmax.xlane.f32.xlu1 %v1072_v46  ;;  %v1327_v46 = vsel %vm9139_vm0, %v3851_v48, 0.0  ;;  %v5174_v54 = vpop.xlane.xlu1 %992 }
 0x15a   :  { %1322 = vadd.xlane.f32.xlu0 %v1321_v11  ;;  %v1103_v11 = vsub.f32 %v4723_v15, %v5098_v25  ;;  %v642_v15 = vsel %vm578_vm14, %v4639_v55, 0.0  ;;  %9207 = vst [vmem:[#allocation60_spill] sm:$0xff] %v5174_v54  ;;  %v643_v55 = vsel %vm579_vm15, %v4648_v58, 0.0  ;;  %v644_v58 = vsel %vm580_vm1, %v4655_v60, 0.0 }
 0x15b   :  { %v733_v43 = vsel %vm9139_vm0, %v642_v15, 0.0  ;;  %v736_v39 = vsel %vm9139_vm0, %v643_v55, 0.0  ;;  %v9217_v55 = vld [vmem:[#allocation18_spill] sm:$0xff] }
 0x15c   :  { %v1192_v41 = vmul.f32 1.442695, %v1103_v11  ;;  %vm584_vm5 = vcmp.eq.s32.totalorder %v4989_v57, %v9217_v55 }
 0x15d   :  { %1325 = vadd.xlane.f32.xlu1 %v1324_v44  ;;  %v1330_v44 = vsel %vm9139_vm0, %v3853_v42, 0.0  ;;  %v3855_v13 = vpop.eup %3854  ;;  %v5187_v48 = vpop.xlane.xlu1 %998  ;;  %v1198_v42 = vmul.f32 1.442695, %v1106_v34 }
 0x15e   :  { %722 = vadd.xlane.f32.xlu0 %v721_v59  ;;  %v1333_v36 = vsel %vm9139_vm0, %v3855_v13, 0.0  ;;  %v5177_v59 = vpop.xlane.xlu0 %977  ;;  %3862 = vpow2.f32 %v1192_v41  ;;  %9209 = vst [vmem:[#allocation62_spill] sm:$0xff] %v5187_v48  ;;  %v9213_v13 = vld [vmem:[#allocation16_spill] sm:$0xff] }
 0x15f   :  { %9208 = vst [vmem:[#allocation61_spill] sm:$0xff] %v5177_v59  ;;  %3864 = vpow2.f32 %v1194_v17  ;;  %vm583_vm4 = vcmp.eq.s32.totalorder %v4989_v57, %v9213_v13 }
 0x161   :  { %725 = vadd.xlane.f32.xlu1 %v724_v12  ;;  %v5203_v21 = vpop.xlane.xlu1 %1004 }
 0x162   :  { %1076 = vmax.xlane.f32.xlu0 %v1075_v47  ;;  %v3857_v18 = vpop.eup %3856  ;;  %v1105_v47 = vsub.f32 %v4739_v20, %v5111_v9  ;;  %v5191_v20 = vpop.xlane.xlu0 %983  ;;  %9211 = vst [vmem:[#allocation64_spill] sm:$0xff] %v5203_v21 }
 0x163   :  { %v1336_v16 = vsel %vm9139_vm0, %v3857_v18, 0.0  ;;  %9210 = vst [vmem:[#allocation63_spill] sm:$0xff] %v5191_v20  ;;  %v1110_v22 = vsub.f32 %v4780_v37, %v5191_v20  ;;  %v1111_v37 = vsub.f32 %v4785_v40, %v5158_v14  ;;  %v9216_v18 = vld [vmem:[#allocation10_spill] sm:$0xff] }
 0x164   :  { %v1196_v12 = vmul.f32 1.442695, %v1105_v47  ;;  %v3859_v50 = vpop.eup %3858  ;;  %v647_v47 = vsel %vm583_vm4, %v4676_v2, 0.0  ;;  %v648_v2 = vsel %vm584_vm5, %v4683_v4, 0.0 }
 0x165   :  { %728 = vadd.xlane.f32.xlu1 %v727_v38  ;;  %v3861_v7 = vpop.eup %3860  ;;  %v1339_v24 = vsel %vm9139_vm0, %v3859_v50, 0.0  ;;  %v645_v38 = vsel %vm581_vm2, %v4662_v62, 0.0  ;;  %v1206_v60 = vmul.f32 1.442695, %v1110_v22  ;;  %v646_v62 = vsel %vm582_vm3, %v4669_v0, 0.0  ;;  %v5219_v23 = vpop.xlane.xlu1 %1010 }
 0x166   :  { %1328 = vadd.xlane.f32.xlu0 %v1327_v46  ;;  %v739_v46 = vsel %vm9139_vm0, %v644_v58, 0.0  ;;  %3866 = vpow2.f32 %v1196_v12  ;;  %v1342_v11 = vsel %vm9139_vm0, %v3861_v7, 0.0  ;;  %v742_v45 = vsel %vm9139_vm0, %v645_v38, 0.0  ;;  %9215 = vst [vmem:[#allocation16_spill] sm:$0xff] %v5219_v23  ;;  %v9218_v12 = vld [vmem:[#allocation13_spill] sm:$0xff] }
 0x167   :  { %3868 = vpow2.f32 %v1198_v42  ;;  %v1208_v15 = vmul.f32 1.442695, %v1111_v37  ;;  %v745_v17 = vsel %vm9139_vm0, %v646_v62, 0.0  ;;  %v1113_v34 = vsub.f32 %v9218_v12, %v5174_v54  ;;  %v9221_v42 = vld [vmem:[#allocation14_spill] sm:$0xff]  ;;  %v9223_v37 = vld [vmem:[#allocation11_spill] sm:$0xff] }
 0x168   :  { %3870 = vpow2.f32 %v1206_v60  ;;  %v748_v58 = vsel %vm9139_vm0, %v647_v47, 0.0  ;;  %vm3460_vm2 = vcmask 31744  }
 0x169   :  { %731 = vadd.xlane.f32.xlu1 %v730_v32  ;;  %v9214_v32 = vld [vmem:[#allocation12_spill] sm:$0xff]  ;;  %3872 = vpow2.f32 %v1208_v15  ;;  %v5238_v38 = vpop.xlane.xlu1 %1016  ;;  %v1212_v60 = vmul.f32 1.442695, %v1113_v34 }
 0x16a   :  { %1331 = vadd.xlane.f32.xlu0 %v1330_v44  ;;  %v5211_v44 = vpop.xlane.xlu0 %989  ;;  %9222 = vst [vmem:[#allocation10_spill] sm:$0xff] %v5238_v38 }
 0x16b   :  { %9212 = vst [vmem:[#allocation65_spill] sm:$0xff] %v5211_v44  ;;  %v3863_v26 = vpop.eup %3862  ;;  %v1112_v41 = vsub.f32 %v9214_v32, %v5211_v44  ;;  %v9224_v32 = vld [vmem:[#allocation17_spill] sm:$0xff] }
 0x16c   :  { %v3865_v40 = vpop.eup %3864  ;;  %v1345_v0 = vsel %vm9139_vm0, %v3863_v26, 0.0  ;;  %vm585_vm7 = vcmp.eq.s32.totalorder %v4989_v57, %v9224_v32  ;;  %v9230_v32 = vld [vmem:[#allocation22_spill] sm:$0xff] }
 0x16d   :  { %734 = vadd.xlane.f32.xlu1 %v733_v43  ;;  %v1108_v43 = vsub.f32 %v9216_v18, %v5177_v59  ;;  %vm588_vm9 = vcmp.eq.s32.totalorder %v4989_v57, %v9230_v32  ;;  %v4334_v59 = vld [vmem:[%s9061_s2 + $0x138] sm:$0xff] }
 0x16e   :  { %1334 = vadd.xlane.f32.xlu0 %v1333_v36  ;;  %v1200_v36 = vmul.f32 1.442695, %v1107_v3  ;;  %v5231_v22 = vpop.xlane.xlu0 %995 }
 0x16f   :  { %v1202_v50 = vmul.f32 1.442695, %v1108_v43  ;;  %9219 = vst [vmem:[#allocation12_spill] sm:$0xff] %v5231_v22  ;;  %v649_v43 = vsel %vm585_vm7, %v4690_v6, 0.0 }
 0x170   :  { %3874 = vpow2.f32 %v1200_v36  ;;  %v754_v55 = vsel %vm9139_vm0, %v649_v43, 0.0 }
 0x171   :  { %737 = vadd.xlane.f32.xlu1 %v736_v39  ;;  %v1348_v39 = vsel %vm9139_vm0, %v3865_v40, 0.0 }
 0x172   :  { %1337 = vadd.xlane.f32.xlu0 %v1336_v16  ;;  %v1210_v16 = vmul.f32 1.442695, %v1112_v41  ;;  %v9225_v41 = vld [vmem:[#allocation15_spill] sm:$0xff] }
 0x173   :  { %v3867_v7 = vpop.eup %3866  ;;  %v1115_v40 = vsub.f32 %v9225_v41, %v5187_v48 }
 0x174   :  { %3876 = vpow2.f32 %v1210_v16  ;;  %v1351_v4 = vsel %vm9139_vm0, %v3867_v7, 0.0  ;;  %v3869_v62 = vpop.eup %3868 }
 0x175   :  { %740 = vadd.xlane.f32.xlu1 %v739_v46  ;;  %v9220_v46 = vld [vmem:[#allocation20_spill] sm:$0xff]  ;;  %3878 = vpow2.f32 %v1202_v50  ;;  %v3871_v13 = vpop.eup %3870  ;;  %v1354_v18 = vsel %vm9139_vm0, %v3869_v62, 0.0 }
 0x176   :  { %1340 = vadd.xlane.f32.xlu0 %v1339_v24  ;;  %vm586_vm6 = vcmp.eq.s32.totalorder %v4989_v57, %v9220_v46  ;;  %v1114_v24 = vsub.f32 %v9221_v42, %v5231_v22  ;;  %3880 = vpow2.f32 %v1212_v60  ;;  %v3873_v47 = vpop.eup %3872  ;;  %v9228_v46 = vld [vmem:[#allocation19_spill] sm:$0xff] }
 0x177   :  { %v650_v3 = vsel %vm586_vm6, %v4697_v8, 0.0  ;;  %v1366_v8 = vsel %vm9139_vm0, %v3871_v13, 0.0  ;;  %v1369_v34 = vsel %vm9139_vm0, %v3873_v47, 0.0  ;;  %vm587_vm8 = vcmp.eq.s32.totalorder %v4989_v57, %v9228_v46 }
 0x178   :  { %v1214_v26 = vmul.f32 1.442695, %v1114_v24  ;;  %v757_v15 = vsel %vm9139_vm0, %v650_v3, 0.0 }
 0x179   :  { %743 = vadd.xlane.f32.xlu1 %v742_v45  ;;  %v1109_v45 = vsub.f32 %v9223_v37, %v5145_v33 }
 0x17a   :  { %1343 = vadd.xlane.f32.xlu0 %v1342_v11  ;;  %v751_v11 = vsel %vm9139_vm0, %v648_v2, 0.0  ;;  %3882 = vpow2.f32 %v1214_v26 }
 0x17b   :  { %v1204_v36 = vmul.f32 1.442695, %v1109_v45 }
 0x17d   :  { %746 = vadd.xlane.f32.xlu1 %v745_v17  ;;  %v5250_v17 = vpop.xlane.xlu1 %1022  ;;  %3884 = vpow2.f32 %v1204_v36  ;;  %v3875_v16 = vpop.eup %3874  ;;  %v4328_v36 = vld [vmem:[%s9061_s2 + $0xb8] sm:$0xff] }
 0x17e   :  { %1346 = vadd.xlane.f32.xlu0 %v1345_v0  ;;  %9226 = vst [vmem:[#allocation18_spill] sm:$0xff] %v5250_v17  ;;  %v1216_v0 = vmul.f32 1.442695, %v1115_v40  ;;  %v1357_v50 = vsel %vm9139_vm0, %v3875_v16, 0.0 }
 0x180   :  { %3886 = vpow2.f32 %v1216_v0 }
 0x181   :  { %749 = vadd.xlane.f32.xlu1 %v748_v58  ;;  %v3877_v12 = vpop.eup %3876  ;;  %v5259_v58 = vpop.xlane.xlu0 %1001 }
 0x182   :  { %1349 = vadd.xlane.f32.xlu0 %v1348_v39  ;;  %9227 = vst [vmem:[#allocation13_spill] sm:$0xff] %v5259_v58  ;;  %v3879_v6 = vpop.eup %3878  ;;  %v1372_v7 = vsel %vm9139_vm0, %v3877_v12, 0.0  ;;  %v9233_v12 = vld [vmem:[#allocation24_spill] sm:$0xff] }
 0x183   :  { %v3881_v42 = vpop.eup %3880  ;;  %v1360_v24 = vsel %vm9139_vm0, %v3879_v6, 0.0  ;;  %vm590_vm11 = vcmp.eq.s32.totalorder %v4989_v57, %v9233_v12  ;;  %v338_v12 = vld [vmem:[%s9062_s3 + $0xf8] sm:$0xff] }
 0x185   :  { %752 = vadd.xlane.f32.xlu1 %v751_v11  ;;  %v651_v11 = vsel %vm587_vm8, %v4704_v10, 0.0  ;;  %v5271_v45 = vpop.xlane.xlu0 %1007 }
 0x186   :  { %1352 = vadd.xlane.f32.xlu0 %v1351_v4  ;;  %9229 = vst [vmem:[#allocation20_spill] sm:$0xff] %v5271_v45  ;;  %v1375_v4 = vsel %vm9139_vm0, %v3881_v42, 0.0  ;;  %v760_v3 = vsel %vm9139_vm0, %v651_v11, 0.0  ;;  %v9236_v42 = vld [vmem:[#allocation23_spill] sm:$0xff] }
 0x187   :  { %v3883_v37 = vpop.eup %3882  ;;  %vm591_vm12 = vcmp.eq.s32.totalorder %v4989_v57, %v9236_v42  ;;  %v340_v42 = vld [vmem:[%s9062_s3 + $0x108] sm:$0xff] }
 0x188   :  { %v1378_v13 = vsel %vm9139_vm0, %v3883_v37, 0.0 }
 0x189   :  { %758 = vadd.xlane.f32.xlu1 %v757_v15  ;;  %v5280_v40 = vpop.xlane.xlu0 %1013 }
 0x18a   :  { %1355 = vadd.xlane.f32.xlu0 %v1354_v18  ;;  %v3885_v62 = vpop.eup %3884  ;;  %9231 = vst [vmem:[#allocation14_spill] sm:$0xff] %v5280_v40  ;;  %v652_v18 = vsel %vm588_vm9, %v4328_v36, 0.0  ;;  %v9240_v36 = vld [vmem:[#allocation25_spill] sm:$0xff] }
 0x18b   :  { %v1363_v10 = vsel %vm9139_vm0, %v3885_v62, 0.0  ;;  %v763_v0 = vsel %vm9139_vm0, %v652_v18, 0.0  ;;  %v9238_v62 = vld [vmem:[#allocation26_spill] sm:$0xff]  ;;  %vm593_vm14 = vcmp.eq.s32.totalorder %v4989_v57, %v9240_v36  ;;  %v344_v36 = vld [vmem:[%s9062_s3 + $0x128] sm:$0xff] }
 0x18c   :  { %vm592_vm13 = vcmp.eq.s32.totalorder %v4989_v57, %v9238_v62  ;;  %v5359_v62 = vld [vmem:[%s9063_s4] sm:$0xff] }
 0x18d   :  { %1367 = vadd.xlane.f32.xlu1 %v1366_v8  ;;  %v3887_v41 = vpop.eup %3886  ;;  %v9232_v8 = vld [vmem:[#allocation21_spill] sm:$0xff]  ;;  %v2179_v27 = vmax.f32 %v5359_v62, 0.0 }
 0x18e   :  { %v5256_v39 = vpop.xlane.xlu1 %1274  ;;  %755 = vadd.xlane.f32.xlu0 %v754_v55  ;;  %vm589_vm10 = vcmp.eq.s32.totalorder %v4989_v57, %v9232_v8  ;;  %v1381_v43 = vsel %vm9139_vm0, %v3887_v41, 0.0  ;;  %v4329_v55 = vld [vmem:[%s9061_s2 + $0xc0] sm:$0xff]  ;;  %v4332_v41 = vld [vmem:[%s9061_s2 + $0xd8] sm:$0xff]  ;;  %v336_v8 = vld [vmem:[%s9062_s3 + $0xe8] sm:$0xff] }
 0x18f   :  { %v653_v16 = vsel %vm589_vm10, %v4329_v55, 0.0  ;;  %v4333_v55 = vld [vmem:[%s9061_s2 + $0xe0] sm:$0xff] }
 0x191   :  { %1370 = vadd.xlane.f32.xlu1 %v1369_v34  ;;  %v5299_v34 = vpop.xlane.xlu0 %1019 }
 0x192   :  { %v5262_v2 = vpop.xlane.xlu1 %1277  ;;  %1358 = vadd.xlane.f32.xlu0 %v1357_v50  ;;  %9234 = vst [vmem:[#allocation11_spill] sm:$0xff] %v5299_v34  ;;  %v766_v50 = vsel %vm9139_vm0, %v653_v16, 0.0  ;;  %v657_v16 = vsel %vm593_vm14, %v4333_v55, 0.0 }
 0x195   :  { %1373 = vadd.xlane.f32.xlu1 %v1372_v7  ;;  %v4330_v7 = vld [vmem:[%s9061_s2 + $0xc8] sm:$0xff] }
 0x196   :  { %v5268_v60 = vpop.xlane.xlu1 %1280  ;;  %1361 = vadd.xlane.f32.xlu0 %v1360_v24  ;;  %v654_v46 = vsel %vm590_vm11, %v4330_v7, 0.0  ;;  %v5309_v24 = vpop.xlane.xlu0 %1271  ;;  %v778_v7 = vsel %vm9139_vm0, %v657_v16, 0.0 }
 0x197   :  { %v769_v11 = vsel %vm9139_vm0, %v654_v46, 0.0 }
 0x199   :  { %1376 = vadd.xlane.f32.xlu1 %v1375_v4  ;;  %v4331_v4 = vld [vmem:[%s9061_s2 + $0xd0] sm:$0xff] }
 0x19a   :  { %v5275_v26 = vpop.xlane.xlu1 %1283  ;;  %761 = vadd.xlane.f32.xlu0 %v760_v3  ;;  %v655_v3 = vsel %vm591_vm12, %v4331_v4, 0.0  ;;  %v5327_v18 = vpop.xlane.xlu0 %1025 }
 0x19b   :  { %9241 = vst [vmem:[#allocation22_spill] sm:$0xff] %v5327_v18 }
 0x19d   :  { %1379 = vadd.xlane.f32.xlu1 %v1378_v13  ;;  %v772_v13 = vsel %vm9139_vm0, %v655_v3, 0.0  ;;  %v342_v3 = vld [vmem:[%s9062_s3 + $0x118] sm:$0xff] }
 0x19e   :  { %v5283_v15 = vpop.xlane.xlu1 %1286  ;;  %1364 = vadd.xlane.f32.xlu0 %v1363_v10  ;;  %v656_v10 = vsel %vm592_vm13, %v4332_v41, 0.0  ;;  %v2371_v41 = vand.u32 2147483647, %v5359_v62 }
 0x1a0   :  { %v2435_v16 = vsub.f32 0.0, %v2371_v41  ;;  %v348_v41 = vld [vmem:[%s9062_s3 + $0x148] sm:$0xff] }
 0x1a1   :  { %1382 = vadd.xlane.f32.xlu1 %v1381_v43  ;;  %v775_v43 = vsel %vm9139_vm0, %v656_v10, 0.0  ;;  %v5367_v10 = vld [vmem:[%s9063_s4 + $0x8] sm:$0xff] }
 0x1a2   :  { %v5292_v47 = vpop.xlane.xlu1 %1289  ;;  %764 = vadd.xlane.f32.xlu0 %v763_v0  ;;  %v2499_v22 = vmul.f32 1.442695, %v2435_v16  ;;  %v5401_v16 = vld [vmem:[%s9063_s4 + $0x18] sm:$0xff] }
 0x1a4   :  { %3888 = vpow2.f32 %v2499_v22  ;;  %v5411_v22 = vld [vmem:[%s9063_s4 + $0x20] sm:$0xff] }
 0x1a6   :  { %v5302_v6 = vpop.xlane.xlu1 %1292  ;;  %767 = vadd.xlane.f32.xlu0 %v766_v50  ;;  %v5341_v50 = vpop.xlane.xlu0 %1028 }
 0x1a7   :  { %9235 = vst [vmem:[#allocation17_spill] sm:$0xff] %v5302_v6  ;;  %9243 = vst [vmem:[#allocation24_spill] sm:$0xff] %v5341_v50 }
 0x1aa   :  { %v5312_v37 = vpop.xlane.xlu1 %1295  ;;  %770 = vadd.xlane.f32.xlu0 %v769_v11  ;;  %v5351_v4 = vpop.xlane.xlu0 %1031 }
 0x1ab   :  { %9237 = vst [vmem:[#allocation15_spill] sm:$0xff] %v5312_v37  ;;  %9246 = vst [vmem:[#allocation25_spill] sm:$0xff] %v5351_v4 }
 0x1ae   :  { %v5320_v32 = vpop.xlane.xlu1 %1298  ;;  %773 = vadd.xlane.f32.xlu0 %v772_v13 }
 0x1af   :  { %9239 = vst [vmem:[#allocation19_spill] sm:$0xff] %v5320_v32 }
 0x1b2   :  { %776 = vadd.xlane.f32.xlu0 %v775_v43  ;;  %461 = vperm.xlu1 %3811, %v336_v8   ;;  %v5333_v0 = vpop.xlane.xlu1 %695  ;;  %v5372_v8 = vpop.xlane.xlu0 %1034  ;;  %v2372_v43 = vand.u32 2147483647, %v5367_v10 }
 0x1b3   :  { %9242 = vst [vmem:[#allocation21_spill] sm:$0xff] %v5333_v0  ;;  %9248 = vst [vmem:[#allocation67_spill] sm:$0xff] %v5372_v8 }
 0x1b6   :  { %779 = vadd.xlane.f32.xlu0 %v778_v7  ;;  %467 = vperm.xlu1 %3811, %v338_v12   ;;  %v5344_v46 = vpop.xlane.xlu1 %1301  ;;  %v346_v12 = vld [vmem:[%s9062_s3 + $0x138] sm:$0xff]  ;;  %v5383_v7 = vld [vmem:[%s9063_s4 + $0x10] sm:$0xff]  ;;  %v5387_v48 = vpop.xlane.xlu0 %1037 }
 0x1b7   :  { %9244 = vst [vmem:[#allocation23_spill] sm:$0xff] %v5344_v46  ;;  %9251 = vst [vmem:[#allocation70_spill] sm:$0xff] %v5387_v48 }
 0x1ba   :  { %473 = vperm.xlu1 %3811, %v340_v42   ;;  %v5349_v11 = vpop.xlane.xlu1 %701  ;;  %v2436_v42 = vsub.f32 0.0, %v2372_v43  ;;  %v350_v43 = vld [vmem:[%s9062_s3 + $0x158] sm:$0xff] }
 0x1bb   :  { %9245 = vst [vmem:[#allocation26_spill] sm:$0xff] %v5349_v11 }
 0x1bc   :  { %v2501_v54 = vmul.f32 1.442695, %v2436_v42 }
 0x1be   :  { %479 = vperm.xlu1 %3811, %v342_v3   ;;  %v5361_v13 = vpop.xlane.xlu1 %1055  ;;  %3890 = vpow2.f32 %v2501_v54  ;;  %v1117_v54 = vsub.f32 %v4334_v59, %v5203_v21  ;;  %v5433_v59 = vld [vmem:[%s9064_s5] sm:$0xff]  }
 0x1bf   :  { %9247 = vst [vmem:[#allocation66_spill] sm:$0xff] %v5361_v13  ;;  %v3642_v35 = vunpack.c.0.s8 %v5433_v59  ;;  %v3643_v28 = vunpack.c.1.s8 %v5433_v59 }
 0x1c0   :  { %v1220_v9 = vmul.f32 1.442695, %v1117_v54  ;;  %v5443_v54 = vpop.eup %3888 }
 0x1c1   :  { %v2115_v5 = vcvt.s32.f32 %v3642_v35  ;;  %v9261_v35 = vlaneseq }
 0x1c2   :  { %485 = vperm.xlu1 %3811, %v344_v36   ;;  %v5375_v55 = vpop.xlane.xlu1 %1307  ;;  %v2373_v36 = vand.u32 2147483647, %v5383_v7 }
 0x1c3   :  { %9249 = vst [vmem:[#allocation68_spill] sm:$0xff] %v5375_v55  ;;  %v5492_v29 = vshrl.u32 %v9261_v35, 7  ;;  %v4341_v35 = vld [vmem:[%s9061_s2 + $0x160] sm:$0xff]  ;;  %v2243_v52 = vmul.f32 %v2115_v5, %v5359_v62  ;;  %v2181_v5 = vmax.f32 %v5383_v7, 0.0 }
 0x1c4   :  { %v2437_v20 = vsub.f32 0.0, %v2373_v36  ;;  %v352_v36 = vld [vmem:[%s9062_s3 + $0x168] sm:$0xff] }
 0x1c5   :  { %v5615_v37 = vadd.s32 48, %v5492_v29 }
 0x1c6   :  { %491 = vperm.xlu1 %3811, %v346_v12   ;;  %v5385_v3 = vpop.xlane.xlu1 %707  ;;  %v5403_v12 = vpop.xlane.xlu0 %1040  ;;  %v2503_v42 = vmul.f32 1.442695, %v2437_v20 }
 0x1c7   :  { %9250 = vst [vmem:[#allocation69_spill] sm:$0xff] %v5385_v3  ;;  %9253 = vst [vmem:[#allocation72_spill] sm:$0xff] %v5403_v12 }
 0x1c8   :  { %3892 = vpow2.f32 %v2503_v42  ;;  %v5438_v42 = vld [vmem:[%s9063_s4 + $0x28] sm:$0xff] }
 0x1c9   :  { %3894 = vpow2.f32 %v1220_v9  ;;  %v2376_v53 = vand.u32 2147483647, %v5438_v42  ;;  %v358_v9 = vld [vmem:[%s9062_s3 + $0x198] sm:$0xff] }
 0x1ca   :  { %497 = vperm.xlu1 %3811, %v348_v41   ;;  %v5393_v44 = vpop.xlane.xlu1 %1061  ;;  %v2374_v41 = vand.u32 2147483647, %v5401_v16  ;;  %v5423_v33 = vpop.xlane.xlu0 %1043 }
 0x1cb   :  { %9252 = vst [vmem:[#allocation71_spill] sm:$0xff] %v5393_v44  ;;  %9256 = vst [vmem:[#allocation75_spill] sm:$0xff] %v5423_v33  ;;  %v5459_v61 = vpop.eup %3890  ;;  %v2440_v19 = vsub.f32 0.0, %v2376_v53 }
 0x1cc   :  { %v2438_v63 = vsub.f32 0.0, %v2374_v41  ;;  %v356_v41 = vld [vmem:[%s9062_s3 + $0x188] sm:$0xff]  ;;  %v2642_v0 = vand.u32 2147483647, %v5459_v61 }
 0x1ce   :  { %503 = vperm.xlu1 %3811, %v350_v43   ;;  %v5405_v14 = vpop.xlane.xlu1 %1313  ;;  %v2375_v43 = vand.u32 2147483647, %v5411_v22  ;;  %v5453_v1 = vpop.xlane.xlu0 %1046  ;;  %vm5636_vm3 = vcmp.lt.f32.partialorder %v2642_v0, 0.0004427343 }
 0x1cf   :  { %9254 = vst [vmem:[#allocation73_spill] sm:$0xff] %v5405_v14  ;;  %9258 = vst [vmem:[#allocation77_spill] sm:$0xff] %v5453_v1  ;;  %v367_v1 = vld [vmem:[%s9062_s3 + $0x1e0] sm:$0xff] }
 0x1d0   :  { %v2439_v30 = vsub.f32 0.0, %v2375_v43 }
 0x1d2   :  { %509 = vperm.xlu1 %3811, %v352_v36   ;;  %v5421_v20 = vpop.xlane.xlu1 %713  ;;  %v2505_v36 = vmul.f32 1.442695, %v2438_v63  ;;  %v4336_v63 = vld [vmem:[%s9061_s2 + $0x130] sm:$0xff]  ;;  %v2507_v56 = vmul.f32 1.442695, %v2439_v30  ;;  %v5494_v53 = vpop.xlane.xlu0 %1049 }
 0x1d3   :  { %9255 = vst [vmem:[#allocation74_spill] sm:$0xff] %v5421_v20  ;;  %v1116_v21 = vsub.f32 %v4336_v63, %v5259_v58  ;;  %v2627_v63 = vadd.f32 1.0, %v5443_v54  ;;  %9262 = vst [vmem:[#allocation80_spill] sm:$0xff] %v5494_v53 }
 0x1d4   :  { %3896 = vpow2.f32 %v2505_v36 }
 0x1d5   :  { %v1218_v49 = vmul.f32 1.442695, %v1116_v21  ;;  %3898 = vpow2.f32 %v2507_v56  ;;  %v360_v56 = vld [vmem:[%s9062_s3 + $0x1a8] sm:$0xff] }
 0x1d6   :  { %515 = vperm.xlu1 %3811, %v354_v51   ;;  %v5428_v25 = vpop.xlane.xlu1 %1067  ;;  %v4335_v51 = vld [vmem:[%s9061_s2 + $0x148] sm:$0xff]  ;;  %3900 = vlog2.f32 %v2627_v63  ;;  %v5524_v62 = vpop.xlane.xlu0 %698 }
 0x1d7   :  { %9257 = vst [vmem:[#allocation76_spill] sm:$0xff] %v5428_v25  ;;  %v1119_v43 = vsub.f32 %v4335_v51, %v5219_v23  ;;  %v4337_v51 = vld [vmem:[%s9061_s2 + $0x140] sm:$0xff]  ;;  %v2509_v25 = vmul.f32 1.442695, %v2440_v19  ;;  %v3647_v19 = vunpack.c.3.s8 %v5433_v59  ;;  %9264 = vst [vmem:[#allocation82_spill] sm:$0xff] %v5524_v62 }
 0x1d8   :  { %v1118_v23 = vsub.f32 %v4337_v51, %v5271_v45  ;;  %v4339_v51 = vld [vmem:[%s9061_s2 + $0x168] sm:$0xff]  ;;  %v3646_v45 = vunpack.c.2.s8 %v5433_v59  ;;  %v5533_v59 = vadd.s32 8, %v5492_v29 }
 0x1d9   :  { %v1224_v30 = vmul.f32 1.442695, %v1119_v43  ;;  %v1123_v36 = vsub.f32 %v4339_v51, %v5250_v17  ;;  %v2636_v43 = vadd.f32 1.0, %v5459_v61  ;;  %v4340_v51 = vld [vmem:[%s9061_s2 + $0x150] sm:$0xff] }
 0x1da   :  { %521 = vperm.xlu1 %3811, %v356_v41   ;;  %v5457_v31 = vpop.xlane.xlu1 %1319  ;;  %v4338_v41 = vld [vmem:[%s9061_s2 + $0x158] sm:$0xff]  ;;  %v1120_v17 = vsub.f32 %v4340_v51, %v5280_v40  ;;  %v2117_v51 = vcvt.s32.f32 %v3646_v45  ;;  %v1122_v40 = vsub.f32 %v4341_v35, %v5299_v34  ;;  %9265 = vst [vmem:[#allocation83_spill] sm:$0xff] %v5533_v59  ;;  %v363_v35 = vld [vmem:[%s9062_s3 + $0x1c0] sm:$0xff] }
 0x1db   :  { %9259 = vst [vmem:[#allocation78_spill] sm:$0xff] %v5457_v31  ;;  %v1121_v58 = vsub.f32 %v4338_v41, %v5238_v38  ;;  %v5483_v41 = vld [vmem:[%s9063_s4 + $0x30] sm:$0xff]  ;;  %v1222_v38 = vmul.f32 1.442695, %v1118_v23  ;;  %3902 = vpow2.f32 %v1224_v30  ;;  %v1232_v31 = vmul.f32 1.442695, %v1123_v36 }
 0x1dc   :  { %3904 = vpow2.f32 %v1218_v49  ;;  %v2377_v63 = vand.u32 2147483647, %v5483_v41  ;;  %v2180_v49 = vmax.f32 %v5367_v10, 0.0  ;;  %v362_v30 = vld [vmem:[%s9062_s3 + $0x1b8] sm:$0xff] }
 0x1dd   :  { %v1228_v23 = vmul.f32 1.442695, %v1121_v58  ;;  %3906 = vlog2.f32 %v2636_v43  ;;  %v2245_v43 = vmul.f32 %v2117_v51, %v5383_v7  ;;  %v5542_v51 = vsub.f32 %v2179_v27, %v2243_v52  ;;  %v5561_v52 = vld [vmem:[%s9063_s4 + $0x40] sm:$0xff] }
 0x1de   :  { %527 = vperm.xlu1 %3811, %v358_v9   ;;  %v5485_v21 = vpop.xlane.xlu1 %719  ;;  %v5499_v9 = vpop.eup %3892  ;;  %3908 = vpow2.f32 %v1222_v38  ;;  %v5521_v38 = vld [vmem:[%s9063_s4 + $0x38] sm:$0xff] }
 0x1df   :  { %9260 = vst [vmem:[#allocation79_spill] sm:$0xff] %v5485_v21  ;;  %v2116_v21 = vcvt.s32.f32 %v3643_v28  ;;  %v1226_v28 = vmul.f32 1.442695, %v1120_v17  ;;  %v2645_v45 = vadd.f32 1.0, %v5499_v9  ;;  %3910 = vpow2.f32 %v1228_v23  ;;  %v3895_v7 = vpop.eup %3894 }
 0x1e0   :  { %3912 = vpow2.f32 %v1232_v31  ;;  %v2630_v17 = vmul.f32 -0.5, %v5443_v54  ;;  %v1230_v23 = vmul.f32 1.442695, %v1122_v40  ;;  %v5538_v31 = vld [vmem:[%s9064_s5 + $0x8] sm:$0xff]   ;;  %v5545_v40 = vadd.s32 16, %v5492_v29 }
 0x1e1   :  { %v2244_v36 = vmul.f32 %v2116_v21, %v5367_v10  ;;  %v5530_v10 = vstv %s9060_s1  ;;  %3914 = vpow2.f32 %v2509_v25  ;;  %v5551_v34 = vpop.eup %3896  ;;  %v5585_v44 = vsel %vm9139_vm0, %v3895_v7, 0.0  ;;  %v5596_v7 = vld [vmem:[%s9063_s4 + $0x48] sm:$0xff] }
 0x1e2   :  { %533 = vperm.xlu1 %3811, %v360_v56   ;;  %v5508_v58 = vpop.xlane.xlu1 %1073  ;;  %v2441_v56 = vsub.f32 0.0, %v2377_v63  ;;  %3916 = vlog2.f32 %v2645_v45  ;;  %9267 = vst [vmem:[#allocation85_spill] sm:$0xff] %v5545_v40  ;;  %v2378_v63 = vand.u32 2147483647, %v5521_v38  ;;  %v2631_v27 = vadd.f32 1.0, %v2630_v17  ;;  %v5575_v20 = vpop.eup %3898 }
 0x1e3   :  { %9263 = vst [vmem:[#allocation81_spill] sm:$0xff] %v5508_v58  ;;  %3918 = vpow2.f32 %v1226_v28  ;;  %v5553_v25 = vsub.f32 %v2180_v49, %v2244_v36  ;;  %v5563_v45 = vsub.f32 %v2181_v5, %v2245_v43  ;;  %v3650_v58 = vunpack.c.0.s8 %v5538_v31  ;;  %v5577_v17 = vpop.xlane.xlu0 %1052  ;;  %v3901_v3 = vpop.eup %3900 }
 0x1e4   :  { %v2511_v14 = vmul.f32 1.442695, %v2441_v56  ;;  %3920 = vpow2.f32 %v1230_v23  ;;  %v2639_v28 = vmul.f32 -0.5, %v5459_v61  ;;  %v5568_v49 = vadd.s32 32, %v5492_v29  ;;  %9271 = vst [vmem:[#allocation89_spill] sm:$0xff] %v5577_v17  ;;  %v365_v23 = vld [vmem:[%s9062_s3 + $0x1d0] sm:$0xff] }
 0x1e5   :  { %v5571_v36 = vadd.s32 40, %v5492_v29  ;;  %v2654_v5 = vadd.f32 1.0, %v5551_v34  ;;  %v2442_v43 = vsub.f32 0.0, %v2378_v63  ;;  %v2379_v56 = vand.u32 2147483647, %v5561_v52 }
 0x1e6   :  { %539 = vperm.xlu1 %3811, %v362_v30   ;;  %v5540_v21 = vpop.xlane.xlu1 %1325  ;;  %v2118_v30 = vcvt.s32.f32 %v3647_v19  ;;  %9269 = vst [vmem:[#allocation87_spill] sm:$0xff] %v5568_v49  ;;  %v2632_v63 = vmul.f32 %v5443_v54, %v2631_v27  ;;  %v2648_v11 = vmul.f32 -0.5, %v5499_v9  ;;  %v2119_v46 = vcvt.s32.f32 %v3650_v58 }
 0x1e7   :  { %9266 = vst [vmem:[#allocation84_spill] sm:$0xff] %v5540_v21  ;;  %v5556_v21 = vadd.s32 24, %v5492_v29  ;;  %3922 = vpow2.f32 %v2511_v14  ;;  %v2640_v62 = vadd.f32 1.0, %v2639_v28  ;;  %v2629_v58 = vmul.f32 0.6931472, %v3901_v3 }
 0x1e8   :  { %v2246_v55 = vmul.f32 %v2118_v30, %v5401_v16  ;;  %v3903_v17 = vpop.eup %3902  ;;  %v3651_v30 = vunpack.c.1.s8 %v5538_v31  ;;  %3924 = vlog2.f32 %v2654_v5  ;;  %v2513_v14 = vmul.f32 1.442695, %v2442_v43 }
 0x1e9   :  { %9268 = vst [vmem:[#allocation86_spill] sm:$0xff] %v5556_v21  ;;  %v5598_v53 = vpop.eup %3904  ;;  %v2443_v13 = vsub.f32 0.0, %v2379_v56  ;;  %v5619_v3 = vsel %vm9139_vm0, %v3903_v17, 0.0  ;;  %v2649_v43 = vadd.f32 1.0, %v2648_v11  ;;  %v5621_v56 = vpop.xlane.xlu0 %1304  ;;  %vm179_vm1 = vcmp.lt.s32.totalorder %v5492_v29, %v5530_v10 }
 0x1ea   :  { %542 = vperm.xlu1 %3811, %v363_v35   ;;  %v5573_v19 = vpop.xlane.xlu1 %725  ;;  %v2633_v35 = vand.u32 2147483647, %v5443_v54  ;;  %v3907_v27 = vpop.eup %3906  ;;  %9276 = vst [vmem:[#allocation92_spill] sm:$0xff] %v5619_v3  ;;  %9277 = vst [vmem:[#allocation93_spill] sm:$0xff] %v5621_v56  ;;  %v2641_v12 = vmul.f32 %v5459_v61, %v2640_v62  ;;  %v2120_v17 = vcvt.s32.f32 %v3651_v30  ;;  %v369_v61 = vld [vmem:[%s9062_s3 + $0x1f0] sm:$0xff]  ;;  %vm180_vm4 = vcmp.lt.s32.totalorder %v5533_v59, %v5530_v10 }
 0x1eb   :  { %9270 = vst [vmem:[#allocation88_spill] sm:$0xff] %v5573_v19  ;;  %v2182_v19 = vmax.f32 %v5401_v16, 0.0  ;;  %v2663_v16 = vadd.f32 1.0, %v5575_v20  ;;  %v5608_v32 = vpop.eup %3908  ;;  %v2638_v6 = vmul.f32 0.6931472, %v3907_v27  ;;  %v2184_v27 = vmax.f32 %v5438_v42, 0.0 }
 0x1ec   :  { %9273 = vst [vmem:[#allocation91_spill] sm:$0xff] %v5608_v32  ;;  %vm5610_vm15 = vcmp.lt.f32.partialorder %v2633_v35, 0.0004427343  ;;  %v3911_v5 = vpop.eup %3910  ;;  %v2247_v32 = vmul.f32 %v2119_v46, %v5411_v22  ;;  %v3654_v35 = vunpack.c.2.s8 %v5538_v31  ;;  %vm181_vm6 = vcmp.lt.s32.totalorder %v5545_v40, %v5530_v10 }
 0x1ed   :  { %v3913_v33 = vpop.eup %3912  ;;  %3926 = vlog2.f32 %v2663_v16  ;;  %v5647_v16 = vadd.s32 56, %v5492_v29  ;;  %v5650_v0 = vsel %vm9139_vm0, %v3911_v5, 0.0  ;;  %v2644_v5 = vsel %vm5636_vm3, %v2641_v12, %v2638_v6  ;;  %v5674_v56 = vpop.xlane.xlu0 %704 }
 0x1ee   :  { %548 = vperm.xlu1 %3811, %v365_v23   ;;  %v5603_v54 = vpop.xlane.xlu1 %728  ;;  %v2380_v23 = vand.u32 2147483647, %v5596_v7  ;;  %v5632_v11 = vpop.eup %3914  ;;  %3928 = vpow2.f32 %v2513_v14  ;;  %9281 = vst [vmem:[#allocation95_spill] sm:$0xff] %v5650_v0  ;;  %v5659_v14 = vld [vmem:[%s9063_s4 + $0x50] sm:$0xff]  ;;  %v5662_v28 = vsel %vm9139_vm0, %v3913_v33, 0.0  ;;  %v2248_v0 = vmul.f32 %v2120_v17, %v5438_v42  ;;  %9286 = vst [vmem:[#allocation100_spill] sm:$0xff] %v5674_v56 }
 0x1ef   :  { %9272 = vst [vmem:[#allocation90_spill] sm:$0xff] %v5603_v54  ;;  %v5623_v54 = vsub.f32 %v2182_v19, %v2246_v55  ;;  %v2635_v55 = vsel %vm5610_vm15, %v2632_v63, %v2629_v58  ;;  %v2515_v19 = vmul.f32 1.442695, %v2443_v13  ;;  %v3917_v62 = vpop.eup %3916  ;;  %v2650_v13 = vmul.f32 %v5499_v9, %v2649_v43  ;;  %9283 = vst [vmem:[#allocation97_spill] sm:$0xff] %v5662_v28 }
 0x1f0   :  { %v2444_v63 = vsub.f32 0.0, %v2380_v23  ;;  %v5652_v30 = vpop.eup %3918  ;;  %v2121_v58 = vcvt.s32.f32 %v3654_v35  ;;  %v3203_v23 = vadd.f32 %v2635_v55, %v5542_v51  ;;  %v3655_v33 = vunpack.c.3.s8 %v5538_v31 }
 0x1f1   :  { %9282 = vst [vmem:[#allocation96_spill] sm:$0xff] %v5652_v30  ;;  %v5671_v35 = vpop.eup %3920  ;;  %v2647_v30 = vmul.f32 0.6931472, %v3917_v62  ;;  %3930 = vpow2.f32 %v2515_v19  ;;  %v9289_v6 = vmax.f32 %v5411_v22, 0.0  ;;  %v2381_v17 = vand.u32 2147483647, %v5659_v14 }
 0x1f2   :  { %554 = vperm.xlu1 %3811, %v367_v1   ;;  %v5630_v3 = vpop.xlane.xlu1 %731  ;;  %v2651_v1 = vand.u32 2147483647, %v5499_v9  ;;  %v2672_v9 = vadd.f32 1.0, %v5632_v11  ;;  %9285 = vst [vmem:[#allocation99_spill] sm:$0xff] %v5671_v35  ;;  %v2517_v42 = vmul.f32 1.442695, %v2444_v63  ;;  %v3204_v55 = vadd.f32 %v2644_v5, %v5553_v25 }
 0x1f3   :  { %9278 = vst [vmem:[#allocation94_spill] sm:$0xff] %v5630_v3  ;;  %v2657_v3 = vmul.f32 -0.5, %v5551_v34  ;;  %v5683_v12 = vsub.f32 %v9289_v6, %v2247_v32  ;;  %v2185_v46 = vmax.f32 %v5483_v41, 0.0  ;;  %v2249_v31 = vmul.f32 %v2121_v58, %v5483_v41  ;;  %v5694_v19 = vld [vmem:[%s9064_s5 + $0x10] sm:$0xff]   ;;  %v5708_v41 = vld [vmem:[%s9063_s4 + $0x58] sm:$0xff] }
 0x1f4   :  { %vm5677_vm5 = vcmp.lt.f32.partialorder %v2651_v1, 0.0004427343  ;;  %v5697_v32 = vadd.s32 64, %v5492_v29  ;;  %v5699_v22 = vpop.eup %3922  ;;  %v2666_v25 = vmul.f32 -0.5, %v5575_v20  ;;  %v5703_v62 = vsub.f32 %v2184_v27, %v2248_v0 }
 0x1f5   :  { %3932 = vlog2.f32 %v2672_v9  ;;  %v3396_v63 = vsel %vm179_vm1, %v3203_v23, 0.0  ;;  %v2653_v58 = vsel %vm5677_vm5, %v2650_v13, %v2647_v30  ;;  %v2658_v5 = vadd.f32 1.0, %v2657_v3  ;;  %v3925_v28 = vpop.eup %3924  ;;  %v5731_v30 = vld [vmem:[%s9063_s4 + $0x60] sm:$0xff] }
 0x1f6   :  { %560 = vperm.xlu1 %3811, %v369_v61   ;;  %v5669_v43 = vpop.xlane.xlu1 %734  ;;  %v2660_v61 = vand.u32 2147483647, %v5551_v34  ;;  %v2122_v6 = vcvt.s32.f32 %v3655_v33  ;;  %v2669_v0 = vand.u32 2147483647, %v5575_v20  ;;  %v3658_v27 = vunpack.c.0.s8 %v5694_v19 }
 0x1f7   :  { %9284 = vst [vmem:[#allocation98_spill] sm:$0xff] %v5669_v43  ;;  %3934 = vpow2.f32 %v2517_v42  ;;  %v2445_v9 = vsub.f32 0.0, %v2381_v17  ;;  %v3397_v35 = vsel %vm180_vm4, %v3204_v55, 0.0  ;;  %v5724_v43 = vsub.f32 %v2185_v46, %v2249_v31 }
 0x1f8   :  { %v2681_v23 = vadd.f32 1.0, %v5699_v22  ;;  %v2382_v3 = vand.u32 2147483647, %v5708_v41  ;;  %v3461_v13 = vsel %vm3460_vm2, %v3396_v63, 0.0  ;;  %v3205_v33 = vadd.f32 %v2653_v58, %v5563_v45 }
 0x1f9   :  { %vm5735_vm7 = vcmp.lt.f32.partialorder %v2660_v61, 0.0004427343  ;;  %v2667_v42 = vadd.f32 1.0, %v2666_v25  ;;  %v2656_v46 = vmul.f32 0.6931472, %v3925_v28  ;;  %v2659_v31 = vmul.f32 %v5551_v34, %v2658_v5 }
 0x1fa   :  { %v5710_v1 = vpop.xlane.xlu1 %737  ;;  %v3927_v55 = vpop.eup %3926  ;;  %v2250_v56 = vmul.f32 %v2122_v6, %v5521_v38  ;;  %v3462_v63 = vsel %vm3460_vm2, %v3397_v35, 0.0  ;;  %v2123_v45 = vcvt.s32.f32 %v3658_v27  ;;  %v2519_v61 = vmul.f32 1.442695, %v2445_v9 }
 0x1fb   :  { %9290 = vst [vmem:[#allocation101_spill] sm:$0xff] %v5710_v1  ;;  %v5722_v1 = vpop.xlane.xlu0 %1058  ;;  %v5744_v59 = vpop.eup %3928  ;;  %v2383_v58 = vand.u32 2147483647, %v5731_v30  ;;  %vm182_vm8 = vcmp.lt.s32.totalorder %v5556_v21, %v5530_v10  ;;  %vm5750_vm9 = vcmp.lt.f32.partialorder %v2669_v0, 0.0004427343  ;;  %v2675_v34 = vmul.f32 -0.5, %v5632_v11 }
 0x1fc   :  { %9291 = vst [vmem:[#allocation102_spill] sm:$0xff] %v5722_v1  ;;  %v2186_v1 = vmax.f32 %v5521_v38, 0.0  ;;  %3936 = vlog2.f32 %v2681_v23  ;;  %v2446_v28 = vsub.f32 0.0, %v2382_v3  ;;  %v3398_v38 = vsel %vm181_vm6, %v3205_v33, 0.0 }
 0x1fd   :  { %v2665_v35 = vmul.f32 0.6931472, %v3927_v55  ;;  %v2668_v5 = vmul.f32 %v5575_v20, %v2667_v42  ;;  %v2187_v6 = vmax.f32 %v5561_v52, 0.0  ;;  %v3463_v9 = vadd.f32 %v3462_v63, %v3461_v13 }
 0x1fe   :  { %v5739_v17 = vpop.xlane.xlu1 %740  ;;  %v2662_v0 = vsel %vm5735_vm7, %v2659_v31, %v2656_v46  ;;  %v2690_v23 = vadd.f32 1.0, %v5744_v59  ;;  %v5768_v3 = vadd.s32 72, %v5492_v29  ;;  %v5770_v40 = vpop.eup %3930  ;;  %vm183_vm10 = vcmp.lt.s32.totalorder %v5568_v49, %v5530_v10 }
 0x1ff   :  { %9294 = vst [vmem:[#allocation103_spill] sm:$0xff] %v5739_v17  ;;  %v5764_v17 = vpop.xlane.xlu0 %1310  ;;  %v5774_v20 = vsub.f32 %v2186_v1, %v2250_v56  ;;  %v2251_v33 = vmul.f32 %v2123_v45, %v5561_v52  ;;  %3938 = vpow2.f32 %v2519_v61  ;;  %v2447_v13 = vsub.f32 0.0, %v2383_v58 }
 0x200   :  { %9298 = vst [vmem:[#allocation105_spill] sm:$0xff] %v5764_v17  ;;  %v3464_v51 = vsel %vm3460_vm2, %v3398_v38, 0.0  ;;  %v2676_v42 = vadd.f32 1.0, %v2675_v34  ;;  %v2678_v55 = vand.u32 2147483647, %v5632_v11  ;;  %v3206_v31 = vadd.f32 %v2662_v0, %v5623_v54 }
 0x201   :  { %v2521_v46 = vmul.f32 1.442695, %v2446_v28  ;;  %v2671_v63 = vsel %vm5750_vm9, %v2668_v5, %v2665_v35  ;;  %v3662_v56 = vunpack.c.2.s8 %v5694_v19  ;;  %v2684_v45 = vmul.f32 -0.5, %v5699_v22  ;;  %v5797_v28 = vld [vmem:[%s9064_s5 + $0x18] sm:$0xff]  }
 0x202   :  { %v5760_v27 = vpop.xlane.xlu1 %743  ;;  %v3933_v52 = vpop.eup %3932  ;;  %3940 = vlog2.f32 %v2690_v23  ;;  %v2699_v61 = vadd.f32 1.0, %v5770_v40  ;;  %v5789_v58 = vadd.s32 80, %v5492_v29  ;;  %v3465_v34 = vadd.f32 %v3464_v51, %v3463_v9 }
 0x203   :  { %9297 = vst [vmem:[#allocation104_spill] sm:$0xff] %v5760_v27  ;;  %v3659_v27 = vunpack.c.1.s8 %v5694_v19  ;;  %v5791_v54 = vsub.f32 %v2187_v6, %v2251_v33  ;;  %v3663_v25 = vunpack.c.3.s8 %v5694_v19  ;;  %v2523_v38 = vmul.f32 1.442695, %v2447_v13  ;;  %v5807_v6 = vpop.xlane.xlu0 %710 }
 0x204   :  { %v5799_v35 = vpop.eup %3934  ;;  %v3207_v5 = vadd.f32 %v2671_v63, %v5683_v12  ;;  %v2677_v0 = vmul.f32 %v5632_v11, %v2676_v42  ;;  %vm5803_vm11 = vcmp.lt.f32.partialorder %v2678_v55, 0.0004427343  ;;  %9302 = vst [vmem:[#allocation107_spill] sm:$0xff] %v5807_v6  ;;  %3942 = vpow2.f32 %v2521_v46  ;;  %v5815_v12 = vld [vmem:[%s9063_s4 + $0x68] sm:$0xff] }
 0x205   :  { %v3399_v19 = vsel %vm182_vm8, %v3206_v31, 0.0  ;;  %v2674_v9 = vmul.f32 0.6931472, %v3933_v52  ;;  %v2124_v33 = vcvt.s32.f32 %v3659_v27  ;;  %v2125_v13 = vcvt.s32.f32 %v3662_v56 }
 0x206   :  { %v5784_v1 = vpop.xlane.xlu1 %746  ;;  %v2685_v51 = vadd.f32 1.0, %v2684_v45  ;;  %v2687_v42 = vand.u32 2147483647, %v5699_v22  ;;  %3944 = vlog2.f32 %v2699_v61  ;;  %v3666_v55 = vunpack.c.0.s8 %v5797_v28 }
 0x207   :  { %9299 = vst [vmem:[#allocation106_spill] sm:$0xff] %v5784_v1  ;;  %vm184_vm12 = vcmp.lt.s32.totalorder %v5571_v36, %v5530_v10  ;;  %v2188_v46 = vmax.f32 %v5596_v7, 0.0  ;;  %v2708_v27 = vadd.f32 1.0, %v5799_v35  ;;  %v2126_v31 = vcvt.s32.f32 %v3663_v25  ;;  %v5843_v6 = vpop.xlane.xlu0 %1064 }
 0x208   :  { %3946 = vpow2.f32 %v2523_v38  ;;  %v3466_v63 = vsel %vm3460_vm2, %v3399_v19, 0.0  ;;  %v3400_v56 = vsel %vm183_vm10, %v3207_v5, 0.0  ;;  %v2189_v52 = vmax.f32 %v5659_v14, 0.0  ;;  %9307 = vst [vmem:[#allocation110_spill] sm:$0xff] %v5843_v6 }
 0x209   :  { %v2384_v45 = vand.u32 2147483647, %v5815_v12  ;;  %v3937_v61 = vpop.eup %3936  ;;  %v2693_v1 = vmul.f32 -0.5, %v5744_v59  ;;  %v2252_v17 = vmul.f32 %v2124_v33, %v5596_v7  ;;  %v2190_v25 = vmax.f32 %v5708_v41, 0.0 }
 0x20a   :  { %v5817_v11 = vpop.xlane.xlu1 %749  ;;  %v2686_v19 = vmul.f32 %v5699_v22, %v2685_v51  ;;  %vm5839_vm13 = vcmp.lt.f32.partialorder %v2687_v42, 0.0004427343  ;;  %v2253_v49 = vmul.f32 %v2125_v13, %v5659_v14  ;;  %v2127_v23 = vcvt.s32.f32 %v3666_v55 }
 0x20b   :  { %9303 = vst [vmem:[#allocation108_spill] sm:$0xff] %v5817_v11  ;;  %v2680_v11 = vsel %vm5803_vm11, %v2677_v0, %v2674_v9  ;;  %v3467_v0 = vadd.f32 %v3466_v63, %v3465_v34  ;;  %v3468_v9 = vsel %vm3460_vm2, %v3400_v56, 0.0  ;;  %3948 = vlog2.f32 %v2708_v27  ;;  %v5859_v34 = vld [vmem:[%s9063_s4 + $0x70] sm:$0xff] }
 0x20c   :  { %v2254_v7 = vmul.f32 %v2126_v31, %v5708_v41  ;;  %v5848_v33 = vpop.eup %3938  ;;  %v2683_v22 = vmul.f32 0.6931472, %v3937_v61  ;;  %v2696_v51 = vand.u32 2147483647, %v5744_v59  ;;  %v2448_v42 = vsub.f32 0.0, %v2384_v45 }
 0x20d   :  { %v2694_v21 = vadd.f32 1.0, %v2693_v1  ;;  %v2702_v6 = vmul.f32 -0.5, %v5770_v40  ;;  %v2705_v14 = vand.u32 2147483647, %v5770_v40  ;;  %v5854_v13 = vsub.f32 %v2188_v46, %v2252_v17 }
 0x20e   :  { %v5836_v38 = vpop.xlane.xlu1 %752  ;;  %vm185_vm14 = vcmp.lt.s32.totalorder %v5615_v37, %v5530_v10  ;;  %v5868_v1 = vadd.s32 88, %v5492_v29  ;;  %v2255_v17 = vmul.f32 %v2127_v23, %v5731_v30  ;;  %v3469_v46 = vadd.f32 %v3468_v9, %v3467_v0  ;;  %v6418_v37 = vld [vmem:[%s9064_s5 + $0x28] sm:$0xff]  }
 0x20f   :  { %9304 = vst [vmem:[#allocation109_spill] sm:$0xff] %v5836_v38  ;;  %v3208_v38 = vadd.f32 %v2680_v11, %v5703_v62  ;;  %v5865_v62 = vsub.f32 %v2189_v52, %v2253_v49  ;;  %v2191_v11 = vmax.f32 %v5731_v30, 0.0  ;;  %v3941_v55 = vpop.eup %3940  ;;  %v2717_v27 = vadd.f32 1.0, %v5848_v33  ;;  %v5881_v52 = vpop.xlane.xlu0 %1316 }
 0x210   :  { %v5873_v31 = vsub.f32 %v2190_v25, %v2254_v7  ;;  %v3667_v63 = vunpack.c.1.s8 %v5797_v28  ;;  %v2689_v56 = vsel %vm5839_vm13, %v2686_v19, %v2683_v22  ;;  %v2525_v45 = vmul.f32 1.442695, %v2448_v42 }
 0x211   :  { %v3401_v49 = vsel %vm184_vm12, %v3208_v38, 0.0  ;;  %v2385_v30 = vand.u32 2147483647, %v5859_v34  ;;  %v5884_v61 = vpop.eup %3942  ;;  %v2695_v23 = vmul.f32 %v5744_v59, %v2694_v21  ;;  %vm5887_vm15 = vcmp.lt.f32.partialorder %v2696_v51, 0.0004427343 }
 0x212   :  { %v5861_v41 = vpop.xlane.xlu1 %758  ;;  %v2703_v0 = vadd.f32 1.0, %v2702_v6  ;;  %vm5891_vm3 = vcmp.lt.f32.partialorder %v2705_v14, 0.0004427343  ;;  %3950 = vlog2.f32 %v5256_v39  ;;  %v2692_v19 = vmul.f32 0.6931472, %v3941_v55 }
 0x213   :  { %9308 = vst [vmem:[#allocation111_spill] sm:$0xff] %v5861_v41  ;;  %v2711_v5 = vmul.f32 -0.5, %v5799_v35  ;;  %v5899_v7 = vsub.f32 %v2191_v11, %v2255_v17  ;;  %v3945_v22 = vpop.eup %3944  ;;  %v3470_v59 = vsel %vm3460_vm2, %v3401_v49, 0.0  ;;  %v3209_v21 = vadd.f32 %v2689_v56, %v5724_v43 }
 0x214   :  { %3952 = vlog2.f32 %v2717_v27  ;;  %v2128_v6 = vcvt.s32.f32 %v3667_v63  ;;  %vm186_vm5 = vcmp.lt.s32.totalorder %v5647_v16, %v5530_v10  ;;  %v2726_v42 = vadd.f32 1.0, %v5884_v61  ;;  %v5920_v63 = vpop.xlane.xlu0 %716  ;;  %v355_v16 = vld [vmem:[%s9062_s3 + $0x180] sm:$0xff] }
 0x215   :  { %v5903_v51 = vpop.eup %3946  ;;  %3954 = vpow2.f32 %v2525_v45  ;;  %v2449_v39 = vsub.f32 0.0, %v2385_v30  ;;  %v1384_v14 = vsel %vm9139_vm0, %v5598_v53, 0.0  ;;  %v2714_v11 = vand.u32 2147483647, %v5799_v35 }
 0x216   :  { %v5895_v38 = vpop.xlane.xlu1 %1367  ;;  %3956 = vlog2.f32 %v5309_v24  ;;  %v5913_v43 = vadd.s32 96, %v5492_v29  ;;  %v3670_v17 = vunpack.c.2.s8 %v5797_v28  ;;  %v2698_v27 = vsel %vm5887_vm15, %v2695_v23, %v2692_v19 }
 0x217   :  { %9313 = vst [vmem:[#allocation112_spill] sm:$0xff] %v5895_v38  ;;  %v2701_v49 = vmul.f32 0.6931472, %v3945_v22  ;;  %v2704_v53 = vmul.f32 %v5770_v40, %v2703_v0  ;;  %v2712_v56 = vadd.f32 1.0, %v2711_v5  ;;  %v3471_v24 = vadd.f32 %v3470_v59, %v3469_v46  ;;  %v4344_v0 = vld [vmem:[%s9061_s2 + $0x180] sm:$0xff] }
 0x218   :  { %v3402_v45 = vsel %vm185_vm14, %v3209_v21, 0.0  ;;  %v2735_v30 = vadd.f32 1.0, %v5903_v51  ;;  %v3949_v38 = vpop.eup %3948  ;;  %vm187_vm7 = vcmp.lt.s32.totalorder %v5697_v32, %v5530_v10  ;;  %v2720_v23 = vmul.f32 -0.5, %v5848_v33  ;;  %v4342_v21 = vld [vmem:[%s9061_s2 + $0x170] sm:$0xff] }
 0x219   :  { %3958 = vlog2.f32 %v2726_v42  ;;  %v2256_v25 = vmul.f32 %v2128_v6, %v5815_v12  ;;  %v2527_v40 = vmul.f32 1.442695, %v2449_v39  ;;  %v3210_v46 = vadd.f32 %v2698_v27, %v5774_v20  ;;  %v5958_v39 = vpop.xlane.xlu0 %1070 }
 0x21a   :  { %1385 = vadd.xlane.f32.xlu1 %v1384_v14  ;;  %v5916_v55 = vpop.xlane.xlu1 %1370  ;;  %v2192_v14 = vmax.f32 %v5815_v12, 0.0  ;;  %vm5933_vm9 = vcmp.lt.f32.partialorder %v2714_v11, 0.0004427343  ;;  %v5938_v19 = vadd.s32 104, %v5492_v29  ;;  %v2129_v5 = vcvt.s32.f32 %v3670_v17  ;;  %9319 = vst [vmem:[#allocation116_spill] sm:$0xff] %v5958_v39 }
 0x21b   :  { %9314 = vst [vmem:[#allocation113_spill] sm:$0xff] %v5916_v55  ;;  %3960 = vlog2.f32 %v5262_v2  ;;  %v3472_v59 = vsel %vm3460_vm2, %v3402_v45, 0.0  ;;  %v2707_v12 = vsel %vm5891_vm3, %v2704_v53, %v2701_v49  ;;  %v2713_v20 = vmul.f32 %v5799_v35, %v2712_v56  ;;  %v5956_v2 = vld [vmem:[%s9063_s4 + $0x78] sm:$0xff] }
 0x21c   :  { %9317 = vst [vmem:[#allocation114_spill] sm:$0xff] %v5938_v19  ;;  %v1124_v6 = vsub.f32 %v4342_v21, %v5327_v18  ;;  %v2710_v42 = vmul.f32 0.6931472, %v3949_v38  ;;  %3962 = vlog2.f32 %v2735_v30  ;;  %v2721_v9 = vadd.f32 1.0, %v2720_v23  ;;  %v4343_v56 = vld [vmem:[%s9061_s2 + $0x178] sm:$0xff] }
 0x21d   :  { %v5960_v11 = vsub.f32 %v2192_v14, %v2256_v25  ;;  %v2193_v35 = vmax.f32 %v5859_v34, 0.0  ;;  %3964 = vpow2.f32 %v2527_v40  ;;  %v3403_v38 = vsel %vm186_vm5, %v3210_v46, 0.0 }
 0x21e   :  { %1388 = vadd.xlane.f32.xlu1 %v5585_v44  ;;  %v5941_v22 = vpop.xlane.xlu1 %1373  ;;  %v2723_v44 = vand.u32 2147483647, %v5848_v33  ;;  %v3211_v17 = vadd.f32 %v2707_v12, %v5791_v54  ;;  %vm9137_vm11 = vcmp.lt.s32.totalorder %v5768_v3, %v5530_v10  ;;  %v2729_v27 = vmul.f32 -0.5, %v5884_v61 }
 0x21f   :  { %9318 = vst [vmem:[#allocation115_spill] sm:$0xff] %v5941_v22  ;;  %v2257_v49 = vmul.f32 %v2129_v5, %v5859_v34  ;;  %3966 = vlog2.f32 %v5268_v60  ;;  %v1125_v45 = vsub.f32 %v4343_v56, %v5341_v50  ;;  %v3473_v30 = vadd.f32 %v3472_v59, %v3471_v24  ;;  %v3951_v14 = vpop.eup %3950 }
 0x220   :  { %v2386_v54 = vand.u32 2147483647, %v5956_v2  ;;  %v1234_v23 = vmul.f32 1.442695, %v1124_v6  ;;  %v2716_v25 = vsel %vm5933_vm9, %v2713_v20, %v2710_v42  ;;  %vm5981_vm13 = vcmp.lt.f32.partialorder %v2723_v44, 0.0004427343 }
 0x221   :  { %v2738_v60 = vmul.f32 -0.5, %v5903_v51  ;;  %v3953_v40 = vpop.eup %3952  ;;  %v3474_v46 = vsel %vm3460_vm2, %v3403_v38, 0.0  ;;  %v5988_v5 = vmul.f32 %v5848_v33, %v2721_v9  ;;  %v2732_v24 = vand.u32 2147483647, %v5884_v61  ;;  %v6008_v38 = vpop.xlane.xlu0 %1322 }
 0x222   :  { %v5971_v53 = vpop.xlane.xlu1 %1376  ;;  %v5992_v59 = vadd.s32 112, %v5492_v29  ;;  %v5994_v12 = vpop.eup %3954  ;;  %v1126_v20 = vsub.f32 %v4344_v0, %v5351_v4  ;;  %v3404_v21 = vsel %vm187_vm7, %v3211_v17, 0.0  ;;  %v2730_v6 = vadd.f32 1.0, %v2729_v27 }
 0x223   :  { %9320 = vst [vmem:[#allocation117_spill] sm:$0xff] %v5971_v53  ;;  %v6003_v33 = vsub.f32 %v2193_v35, %v2257_v49  ;;  %v3957_v44 = vpop.eup %3956  ;;  %v1236_v9 = vmul.f32 1.442695, %v1125_v45  ;;  %3968 = vlog2.f32 %v5275_v26  ;;  %v3212_v56 = vadd.f32 %v2716_v25, %v5854_v13  ;;  %v4345_v26 = vld [vmem:[%s9061_s2 + $0x188] sm:$0xff] }
 0x224   :  { %9323 = vst [vmem:[#allocation118_spill] sm:$0xff] %v5992_v59  ;;  %v2450_v50 = vsub.f32 0.0, %v2386_v54  ;;  %3970 = vpow2.f32 %v1234_v23  ;;  %v3475_v0 = vadd.f32 %v3474_v46, %v3473_v30  ;;  %v2739_v4 = vadd.f32 1.0, %v2738_v60 }
 0x225   :  { %v2741_v18 = vand.u32 2147483647, %v5903_v51  ;;  %v1465_v17 = vmul.f32 0.6931472, %v3951_v14  ;;  %v3476_v35 = vsel %vm3460_vm2, %v3404_v21, 0.0  ;;  %v2744_v49 = vadd.f32 1.0, %v5994_v12 }
 0x226   :  { %v6005_v42 = vpop.xlane.xlu1 %1379  ;;  %v2719_v27 = vmul.f32 0.6931472, %v3953_v40  ;;  %v1463_v45 = vmul.f32 0.6931472, %v3957_v44  ;;  %v1238_v53 = vmul.f32 1.442695, %v1126_v20  ;;  %v1127_v13 = vsub.f32 %v4345_v26, %v5372_v8 }
 0x227   :  { %9324 = vst [vmem:[#allocation119_spill] sm:$0xff] %v6005_v42  ;;  %v3959_v42 = vpop.eup %3958  ;;  %vm6018_vm15 = vcmp.lt.f32.partialorder %v2732_v24, 0.0004427343  ;;  %3972 = vpow2.f32 %v1236_v9  ;;  %v3405_v14 = vsel %vm9137_vm11, %v3212_v56, 0.0  ;;  %vm189_vm3 = vcmp.lt.s32.totalorder %v5789_v58, %v5530_v10  ;;  %v9330_v21 = vld [vmem:[#allocation27_spill] sm:$0xff]  ;;  %v6041_v9 = vpop.xlane.xlu0 %722  ;;  %v6071_v26 = vld [vmem:[%s9063_s4 + $0x80] sm:$0xff] }
 0x228   :  { %v2731_v23 = vmul.f32 %v5884_v61, %v2730_v6  ;;  %v2529_v25 = vmul.f32 1.442695, %v2450_v50  ;;  %v3961_v60 = vpop.eup %3960  ;;  %3974 = vlog2.f32 %v5283_v15  ;;  %v3477_v40 = vadd.f32 %v3476_v35, %v3475_v0  ;;  %v4346_v0 = vld [vmem:[%s9061_s2 + $0x190] sm:$0xff]  ;;  %v4347_v35 = vld [vmem:[%s9061_s2 + $0xe8] sm:$0xff]  ;;  %v9337_v24 = vld [vmem:[#allocation30_spill] sm:$0xff] }
 0x229   :  { %v6032_v46 = vmul.f32 %v5903_v51, %v2739_v4  ;;  %vm6034_vm9 = vcmp.lt.f32.partialorder %v2741_v18, 0.0004427343  ;;  %v3963_v20 = vpop.eup %3962  ;;  %v6039_v44 = vadd.f32 %v1465_v17, %v9330_v21  ;;  %v2725_v50 = vsel %vm5981_vm13, %v5988_v5, %v2719_v27  ;;  %v9331_v18 = vld [vmem:[#allocation28_spill] sm:$0xff]  ;;  %v364_v58 = vld [vmem:[%s9062_s3 + $0x1c8] sm:$0xff] }
 0x22a   :  { %v6022_v54 = vpop.xlane.xlu1 %1382  ;;  %v2728_v61 = vmul.f32 0.6931472, %v3959_v42  ;;  %3976 = vlog2.f32 %v2744_v49  ;;  %v6046_v15 = vpop.eup %3964  ;;  %v1240_v4 = vmul.f32 1.442695, %v1127_v13  ;;  %v6049_v51 = vadd.f32 %v1463_v45, %v9331_v18 }
 0x22b   :  { %9327 = vst [vmem:[#allocation120_spill] sm:$0xff] %v6022_v54  ;;  %3978 = vpow2.f32 %v1238_v53  ;;  %v3478_v6 = vsel %vm3460_vm2, %v3405_v14, 0.0  ;;  %v1128_v17 = vsub.f32 %v4346_v0, %v5387_v48  ;;  %vm190_vm13 = vcmp.lt.s32.totalorder %v5868_v1, %v5530_v10  ;;  %v9334_v0 = vld [vmem:[#allocation72_spill] sm:$0xff]  ;;  %v366_v1 = vld [vmem:[%s9062_s3 + $0x1d8] sm:$0xff] }
 0x22c   :  { %v3671_v34 = vunpack.c.3.s8 %v5797_v28  ;;  %3980 = vpow2.f32 %v2529_v25  ;;  %v3967_v53 = vpop.eup %3966  ;;  %v1467_v5 = vmul.f32 0.6931472, %v3961_v60  ;;  %v3213_v42 = vadd.f32 %v2725_v50, %v5865_v62  ;;  %v6076_v60 = vpop.xlane.xlu0 %1076 }
 0x22d   :  { %3982 = vlog2.f32 %v5292_v47  ;;  %v2734_v49 = vsel %vm6018_vm15, %v2731_v23, %v2728_v61  ;;  %v2737_v45 = vmul.f32 0.6931472, %v3963_v20  ;;  %v2753_v28 = vadd.f32 1.0, %v6046_v15  ;;  %9332 = vst [vmem:[#allocation27_spill] sm:$0xff] %v6076_v60 }
 0x22e   :  { %v462_v56 = vpop.permute.xlu1 %461  ;;  %3984 = vpow2.f32 %v1240_v4  ;;  %v3479_v62 = vadd.f32 %v3478_v6, %v3477_v40  ;;  %v2747_v13 = vmul.f32 -0.5, %v5994_v12  ;;  %v2194_v14 = vmax.f32 %v5956_v2, 0.0  ;;  %v4348_v4 = vld [vmem:[%s9061_s2 + $0xf8] sm:$0xff] }
 0x22f   :  { %vm594_vm11 = vcmp.eq.s32.totalorder %v4989_v57, %v462_v56  ;;  %v1469_v30 = vmul.f32 0.6931472, %v3967_v53  ;;  %v1242_v23 = vmul.f32 1.442695, %v1128_v17  ;;  %v2130_v20 = vcvt.s32.f32 %v3671_v34  ;;  %v4349_v56 = vld [vmem:[%s9061_s2 + $0x198] sm:$0xff] }
 0x230   :  { %v658_v27 = vsel %vm594_vm11, %v4347_v35, 0.0  ;;  %vm9143_vm11 = vcmp.lt.s32.totalorder %v5913_v43, %v5530_v10  ;;  %v3969_v21 = vpop.eup %3968  ;;  %v3406_v40 = vsel %vm189_vm3, %v3213_v42, 0.0  ;;  %v3214_v50 = vadd.f32 %v2734_v49, %v5873_v31  ;;  %v9335_v53 = vld [vmem:[#allocation17_spill] sm:$0xff] }
 0x231   :  { %v781_v47 = vsel %vm9139_vm0, %v658_v27, 0.0  ;;  %v2387_v61 = vand.u32 2147483647, %v6071_v26  ;;  %v6089_v6 = vpop.eup %3970  ;;  %v1129_v17 = vsub.f32 %v4349_v56, %v9334_v0  ;;  %v2743_v34 = vsel %vm6034_vm9, %v6032_v46, %v2737_v45  ;;  %v9336_v42 = vld [vmem:[#allocation29_spill] sm:$0xff] }
 0x232   :  { %782 = vadd.xlane.f32.xlu0 %v781_v47  ;;  %v468_v25 = vpop.permute.xlu1 %467  ;;  %9333 = vst [vmem:[#allocation28_spill] sm:$0xff] %v6089_v6  ;;  %3986 = vlog2.f32 %v2753_v28  ;;  %v6101_v35 = vadd.f32 %v1467_v5, %v9336_v42  ;;  %v2748_v27 = vadd.f32 1.0, %v2747_v13  ;;  %v2750_v49 = vand.u32 2147483647, %v5994_v12  ;;  %v6107_v47 = vld [vmem:[%s9063_s4 + $0x88] sm:$0xff] }
 0x233   :  { %vm596_vm15 = vcmp.eq.s32.totalorder %v4989_v57, %v468_v25  ;;  %3988 = vlog2.f32 %v9335_v53  ;;  %v1471_v25 = vmul.f32 0.6931472, %v3969_v21  ;;  %v6110_v46 = vadd.f32 %v1469_v30, %v9337_v24  ;;  %v4350_v30 = vld [vmem:[%s9061_s2 + $0x1a0] sm:$0xff]  ;;  %v9339_v21 = vld [vmem:[#allocation75_spill] sm:$0xff]  ;;  %v6124_v53 = vpop.xlane.xlu0 %1328 }
 0x234   :  { %v660_v18 = vsel %vm596_vm15, %v4348_v4, 0.0  ;;  %v3480_v45 = vsel %vm3460_vm2, %v3406_v40, 0.0  ;;  %v2258_v28 = vmul.f32 %v2130_v20, %v5956_v2  ;;  %v6114_v4 = vpop.eup %3972  ;;  %3990 = vpow2.f32 %v1242_v23  ;;  %v9340_v23 = vld [vmem:[#allocation91_spill] sm:$0xff] }
 0x235   :  { %v787_v31 = vsel %vm9139_vm0, %v660_v18, 0.0  ;;  %9338 = vst [vmem:[#allocation17_spill] sm:$0xff] %v6114_v4  ;;  %v3407_v5 = vsel %vm190_vm13, %v3214_v50, 0.0  ;;  %v3215_v13 = vadd.f32 %v2743_v34, %v5899_v7  ;;  %v2451_v18 = vsub.f32 0.0, %v2387_v61  ;;  %v3975_v56 = vpop.eup %3974  ;;  %v9341_v50 = vld [vmem:[#allocation15_spill] sm:$0xff] }
 0x236   :  { %788 = vadd.xlane.f32.xlu1 %v787_v31  ;;  %v1244_v31 = vmul.f32 1.442695, %v1129_v17  ;;  %v1130_v40 = vsub.f32 %v4350_v30, %v9339_v21  ;;  %v2388_v2 = vand.u32 2147483647, %v6107_v47  ;;  %v1390_v20 = vsel %vm9139_vm0, %v9340_v23, 0.0  ;;  %v9345_v24 = vld [vmem:[#allocation31_spill] sm:$0xff] }
 0x237   :  { %v3977_v42 = vpop.eup %3976  ;;  %3992 = vlog2.f32 %v9341_v50  ;;  %v3481_v7 = vadd.f32 %v3480_v45, %v3479_v62  ;;  %v2749_v61 = vmul.f32 %v5994_v12, %v2748_v27  ;;  %vm6131_vm9 = vcmp.lt.f32.partialorder %v2750_v49, 0.0004427343  ;;  %v9346_v12 = vld [vmem:[#allocation19_spill] sm:$0xff]  ;;  %v6153_v49 = vld [vmem:[%s9064_s5 + $0x20] sm:$0xff]  }
 0x238   :  { %v6135_v34 = vpop.eup %3978  ;;  %v6138_v30 = vadd.f32 %v1471_v25, %v9345_v24  ;;  %v3482_v21 = vsel %vm3460_vm2, %v3407_v5, 0.0  ;;  %v2756_v23 = vmul.f32 -0.5, %v6046_v15  ;;  %v6142_v0 = vsub.f32 %v2194_v14, %v2258_v28 }
 0x239   :  { %9344 = vst [vmem:[#allocation29_spill] sm:$0xff] %v6135_v34  ;;  %v6144_v50 = vpop.eup %3980  ;;  %v1473_v62 = vmul.f32 0.6931472, %v3975_v56  ;;  %3994 = vlog2.f32 %v9346_v12  ;;  %vm1783_vm15 = vcmask 7168   ;;  %v3408_v27 = vsel %vm9143_vm11, %v3215_v13, 0.0  ;;  %v6158_v56 = vld [vmem:[%s9063_s4 + $0x90] sm:$0xff] }
 0x23a   :  { %1391 = vadd.xlane.f32.xlu1 %v1390_v20  ;;  %v2531_v25 = vmul.f32 1.442695, %v2451_v18  ;;  %v3983_v45 = vpop.eup %3982  ;;  %3996 = vpow2.f32 %v1244_v31  ;;  %v1246_v14 = vmul.f32 1.442695, %v1130_v40  ;;  %v2746_v28 = vmul.f32 0.6931472, %v3977_v42 }
 0x23b   :  { %v2452_v5 = vsub.f32 0.0, %v2388_v2  ;;  %v4351_v13 = vld [vmem:[%s9061_s2 + $0x1a8] sm:$0xff]  ;;  %v9347_v20 = vld [vmem:[#allocation77_spill] sm:$0xff]  ;;  %v3483_v12 = vadd.f32 %v3482_v21, %v3481_v7  ;;  %v2759_v48 = vand.u32 2147483647, %v6046_v15  ;;  %v6166_v18 = vadd.s32 120, %v5492_v29  ;;  %v6168_v31 = vpop.eup %3984  ;;  %v6171_v2 = vpop.xlane.xlu0 %1331 }
 0x23c   :  { %v1131_v24 = vsub.f32 %v4351_v13, %v9347_v20  ;;  %9348 = vst [vmem:[#allocation30_spill] sm:$0xff] %v6168_v31  ;;  %v3484_v40 = vsel %vm3460_vm2, %v3408_v27, 0.0  ;;  %vm192_vm0 = vcmp.lt.s32.totalorder %v5938_v19, %v5530_v10  ;;  %v2757_v42 = vadd.f32 1.0, %v2756_v23  ;;  %v9349_v21 = vld [vmem:[#allocation21_spill] sm:$0xff]  ;;  %v9350_v20 = vld [vmem:[#allocation32_spill] sm:$0xff]  ;;  %v9351_v27 = vld [vmem:[#allocation82_spill] sm:$0xff] }
 0x23d   :  { %v2762_v8 = vadd.f32 1.0, %v6144_v50  ;;  %v3674_v13 = vunpack.c.0.s8 %v6153_v49  ;;  %v1654_v7 = vsub.f32 %v6049_v51, %v9349_v21  ;;  %v6180_v34 = vadd.f32 %v1473_v62, %v9350_v20 }
 0x23e   :  { %3998 = vpow2.f32 %v2531_v25  ;;  %v2389_v31 = vand.u32 2147483647, %v6158_v56  ;;  %v1655_v57 = vsub.f32 %v6039_v44, %v9351_v27  ;;  %v2752_v23 = vsel %vm6131_vm9, %v2749_v61, %v2746_v28  ;;  %v4352_v25 = vld [vmem:[%s9061_s2 + $0x1b0] sm:$0xff]  ;;  %v9355_v28 = vld [vmem:[#allocation23_spill] sm:$0xff]  ;;  %v4353_v27 = vld [vmem:[%s9061_s2 + $0x1b8] sm:$0xff] }
 0x23f   :  { %4000 = vpow2.f32 %v1246_v14  ;;  %v2533_v4 = vmul.f32 1.442695, %v2452_v5  ;;  %v3987_v6 = vpop.eup %3986  ;;  %v1475_v54 = vmul.f32 0.6931472, %v3983_v45  ;;  %v1248_v22 = vmul.f32 1.442695, %v1131_v24 }
 0x240   :  { %v6187_v55 = vadd.f32 %v3484_v40, %v3483_v12  ;;  %vm6189_vm11 = vcmp.lt.f32.partialorder %v2759_v48, 0.0004427343  ;;  %v3989_v62 = vpop.eup %3988  ;;  %v9354_v14 = vld [vmem:[#allocation80_spill] sm:$0xff]  ;;  %v2758_v17 = vmul.f32 %v6046_v15, %v2757_v42  ;;  %4002 = vlog2.f32 %v2762_v8  ;;  %v9358_v40 = vld [vmem:[#allocation26_spill] sm:$0xff]  ;;  %v6210_v8 = vpop.xlane.xlu0 %1334 }
 0x241   :  { %v1132_v44 = vsub.f32 %v4352_v25, %v9354_v14  ;;  %v2131_v61 = vcvt.s32.f32 %v3674_v13  ;;  %v1718_v45 = vsel %vm179_vm1, %v1654_v7, 0.0  ;;  %4004 = vlog2.f32 %v9355_v28  ;;  %v6203_v20 = vpop.eup %3990  ;;  %v337_v13 = vld [vmem:[%s9062_s3 + $0xf0] sm:$0xff] }
 0x242   :  { %v3216_v48 = vadd.f32 %v2752_v23, %v5960_v11  ;;  %v2453_v5 = vsub.f32 0.0, %v2389_v31  ;;  %9356 = vst [vmem:[#allocation91_spill] sm:$0xff] %v6203_v20  ;;  %v1719_v12 = vsel %vm180_vm4, %v1655_v57, 0.0  ;;  %v1656_v15 = vsub.f32 %v6101_v35, %v9358_v40  ;;  %v9359_v11 = vld [vmem:[#allocation33_spill] sm:$0xff] }
 0x243   :  { %v2755_v42 = vmul.f32 0.6931472, %v3987_v6  ;;  %4006 = vpow2.f32 %v2533_v4  ;;  %v1477_v21 = vmul.f32 0.6931472, %v3989_v62  ;;  %v6216_v31 = vadd.f32 %v1475_v54, %v9359_v11  ;;  %v6222_v57 = vld [vmem:[%s9063_s4 + $0x98] sm:$0xff] }
 0x244   :  { %4008 = vpow2.f32 %v1248_v22  ;;  %v2195_v7 = vmax.f32 %v6071_v26, 0.0  ;;  %v3993_v35 = vpop.eup %3992  ;;  %v1784_v6 = vsel %vm1783_vm15, %v1718_v45, 0.0  ;;  %v1250_v4 = vmul.f32 1.442695, %v1132_v44  ;;  %v9360_v23 = vld [vmem:[#allocation89_spill] sm:$0xff]  ;;  %v6260_v20 = vpop.xlane.xlu0 %1337 }
 0x245   :  { %v1133_v22 = vsub.f32 %v4353_v27, %v9360_v23  ;;  %vm193_vm1 = vcmp.lt.s32.totalorder %v5992_v59, %v5530_v10  ;;  %v6232_v54 = vadd.s32 128, %v5492_v29  ;;  %v1785_v62 = vsel %vm1783_vm15, %v1719_v12, 0.0  ;;  %9365 = vst [vmem:[#allocation31_spill] sm:$0xff] %v6260_v20 }
 0x246   :  { %v3409_v25 = vsel %vm192_vm0, %v3216_v48, 0.0  ;;  %v2259_v44 = vmul.f32 %v2131_v61, %v6071_v26  ;;  %v2535_v45 = vmul.f32 1.442695, %v2453_v5  ;;  %v3995_v28 = vpop.eup %3994  ;;  %v1720_v40 = vsel %vm181_vm6, %v1656_v15, 0.0  ;;  %v339_v48 = vld [vmem:[%s9062_s3 + $0x100] sm:$0xff] }
 0x247   :  { %v2761_v11 = vsel %vm6189_vm11, %v2758_v17, %v2755_v42  ;;  %v2765_v27 = vmul.f32 -0.5, %v6144_v50  ;;  %v2390_v12 = vand.u32 2147483647, %v6222_v57  ;;  %v6249_v23 = vpop.eup %3996  ;;  %v1479_v26 = vmul.f32 0.6931472, %v3993_v35  ;;  %v4354_v61 = vld [vmem:[%s9061_s2 + $0x1c0] sm:$0xff] }
 0x248   :  { %464 = vperm.xlu0 %3810, %v337_v13   ;;  %9362 = vst [vmem:[#allocation15_spill] sm:$0xff] %v6249_v23  ;;  %v9363_v5 = vld [vmem:[#allocation66_spill] sm:$0xff]  ;;  %v3675_v17 = vunpack.c.1.s8 %v6153_v49  ;;  %4010 = vpow2.f32 %v1250_v4  ;;  %v1786_v42 = vadd.f32 %v1785_v62, %v1784_v6  ;;  %v1252_v24 = vmul.f32 1.442695, %v1133_v22  ;;  %v341_v22 = vld [vmem:[%s9062_s3 + $0x110] sm:$0xff] }
 0x249   :  { %v1134_v15 = vsub.f32 %v4354_v61, %v9363_v5  ;;  %v9364_v13 = vld [vmem:[#allocation34_spill] sm:$0xff]  ;;  %v3486_v14 = vsel %vm3460_vm2, %v3409_v25, 0.0  ;;  %v1481_v23 = vmul.f32 0.6931472, %v3995_v28  ;;  %v1787_v35 = vsel %vm1783_vm15, %v1720_v40, 0.0  ;;  %v9367_v28 = vld [vmem:[#allocation35_spill] sm:$0xff] }
 0x24a   :  { %v6256_v51 = vadd.f32 %v1477_v21, %v9364_v13  ;;  %v3217_v41 = vadd.f32 %v2761_v11, %v6003_v33  ;;  %4012 = vpow2.f32 %v2535_v45  ;;  %v2766_v21 = vadd.f32 1.0, %v2765_v27  ;;  %v9370_v5 = vld [vmem:[#allocation36_spill] sm:$0xff] }
 0x24b   :  { %v6264_v61 = vpop.eup %3998  ;;  %v6266_v13 = vsub.f32 %v2195_v7, %v2259_v44  ;;  %v2196_v4 = vmax.f32 %v6107_v47, 0.0  ;;  %v2454_v6 = vsub.f32 0.0, %v2390_v12  ;;  %v1254_v25 = vmul.f32 1.442695, %v1134_v15  ;;  %v9368_v7 = vld [vmem:[#allocation100_spill] sm:$0xff] }
 0x24c   :  { %470 = vperm.xlu0 %3810, %v339_v48   ;;  %v6272_v62 = vpop.eup %4000  ;;  %v6275_v40 = vadd.f32 %v1479_v26, %v9367_v28  ;;  %v2768_v33 = vand.u32 2147483647, %v6144_v50  ;;  %v2132_v45 = vcvt.s32.f32 %v3675_v17  ;;  %v1788_v11 = vadd.f32 %v1787_v35, %v1786_v42  ;;  %v9369_v48 = vld [vmem:[#allocation93_spill] sm:$0xff]  ;;  %v9371_v42 = vld [vmem:[#allocation68_spill] sm:$0xff] }
 0x24d   :  { %9366 = vst [vmem:[#allocation19_spill] sm:$0xff] %v6272_v62  ;;  %4014 = vpow2.f32 %v1252_v24  ;;  %v1657_v44 = vsub.f32 %v6110_v46, %v9368_v7  ;;  %v3487_v27 = vadd.f32 %v3486_v14, %v6187_v55  ;;  %v4003_v12 = vpop.eup %4002  ;;  %v6283_v20 = vadd.f32 %v1481_v23, %v9370_v5  ;;  %v6291_v24 = vpop.xlane.xlu0 %1340  ;;  %v343_v23 = vld [vmem:[%s9062_s3 + $0x120] sm:$0xff]  ;;  %v9377_v28 = vld [vmem:[#allocation69_spill] sm:$0xff] }
 0x24e   :  { %4016 = vlog2.f32 %v9369_v48  ;;  %v3410_v26 = vsel %vm193_vm1, %v3217_v41, 0.0  ;;  %v2771_v15 = vadd.f32 1.0, %v6264_v61  ;;  %v4005_v17 = vpop.eup %4004  ;;  %v2767_v46 = vmul.f32 %v6144_v50, %v2766_v21  ;;  %9372 = vst [vmem:[#allocation21_spill] sm:$0xff] %v6291_v24 }
 0x24f   :  { %4018 = vlog2.f32 %v9371_v42  ;;  %v3678_v55 = vunpack.c.2.s8 %v6153_v49  ;;  %v2537_v14 = vmul.f32 1.442695, %v2454_v6  ;;  %vm6299_vm4 = vcmp.lt.f32.partialorder %v2768_v33, 0.0004427343 }
 0x250   :  { %476 = vperm.xlu0 %3810, %v341_v22   ;;  %v6297_v5 = vpop.eup %4006  ;;  %4020 = vpow2.f32 %v1254_v25  ;;  %v2260_v35 = vmul.f32 %v2132_v45, %v6107_v47  ;;  %v6305_v50 = vadd.s32 136, %v5492_v29  ;;  %v1721_v6 = vsel %vm182_vm8, %v1657_v44, 0.0  ;;  %v4355_v47 = vld [vmem:[%s9061_s2 + $0x1c8] sm:$0xff]  ;;  %v9378_v45 = vld [vmem:[#allocation102_spill] sm:$0xff]  ;;  %v4356_v22 = vld [vmem:[%s9061_s2 + $0x1d0] sm:$0xff] }
 0x251   :  { %v6307_v21 = vpop.eup %4008  ;;  %v1658_v7 = vsub.f32 %v6138_v30, %v9377_v28  ;;  %v3488_v25 = vsel %vm3460_vm2, %v3410_v26, 0.0  ;;  %v2764_v33 = vmul.f32 0.6931472, %v4003_v12  ;;  %v1483_v48 = vmul.f32 0.6931472, %v4005_v17  ;;  %v6323_v44 = vld [vmem:[%s9063_s4 + $0xa8] sm:$0xff]  ;;  %v6348_v24 = vpop.xlane.xlu0 %1343 }
 0x252   :  { %9375 = vst [vmem:[#allocation32_spill] sm:$0xff] %v6307_v21  ;;  %v1135_v42 = vsub.f32 %v4355_v47, %v9378_v45  ;;  %4022 = vlog2.f32 %v2771_v15  ;;  %v2197_v21 = vmax.f32 %v6158_v56, 0.0  ;;  %vm194_vm6 = vcmp.lt.s32.totalorder %v6166_v18, %v5530_v10  ;;  %v345_v15 = vld [vmem:[%s9062_s3 + $0x130] sm:$0xff]  ;;  %v6746_v18 = vld [vmem:[%s9063_s4 + $0xc8] sm:$0xff] }
 0x253   :  { %v2780_v30 = vadd.f32 1.0, %v6297_v5  ;;  %v2133_v12 = vcvt.s32.f32 %v3678_v55  ;;  %v3679_v26 = vunpack.c.3.s8 %v6153_v49  ;;  %4024 = vpow2.f32 %v2537_v14  ;;  %v9381_v14 = vld [vmem:[#allocation107_spill] sm:$0xff]  ;;  %v9384_v55 = vld [vmem:[#allocation105_spill] sm:$0xff] }
 0x254   :  { %482 = vperm.xlu0 %3810, %v343_v23   ;;  %v1789_v17 = vsel %vm1783_vm15, %v1721_v6, 0.0  ;;  %v9379_v23 = vld [vmem:[#allocation71_spill] sm:$0xff]  ;;  %v6337_v47 = vadd.f32 %v3488_v25, %v3487_v27  ;;  %v6339_v45 = vsub.f32 %v2196_v4, %v2260_v35  ;;  %v1722_v49 = vsel %vm183_vm10, %v1658_v7, 0.0  ;;  %v9383_v25 = vld [vmem:[#allocation37_spill] sm:$0xff] }
 0x255   :  { %v1136_v28 = vsub.f32 %v4356_v22, %v9379_v23  ;;  %v1659_v62 = vsub.f32 %v6180_v34, %v9381_v14  ;;  %v2770_v6 = vsel %vm6299_vm4, %v2767_v46, %v2764_v33  ;;  %v2392_v59 = vand.u32 2147483647, %v6323_v44  ;;  %v6351_v19 = vpop.eup %4010 }
 0x256   :  { %9382 = vst [vmem:[#allocation82_spill] sm:$0xff] %v6351_v19  ;;  %v1256_v27 = vmul.f32 1.442695, %v1135_v42  ;;  %v6354_v4 = vadd.f32 %v1483_v48, %v9383_v25  ;;  %v2774_v35 = vmul.f32 -0.5, %v6264_v61  ;;  %v6358_v7 = vadd.s32 144, %v5492_v29  ;;  %v347_v42 = vld [vmem:[%s9062_s3 + $0x140] sm:$0xff] }
 0x257   :  { %v6360_v34 = vpop.eup %4012  ;;  %v1790_v41 = vadd.f32 %v1789_v17, %v1788_v11  ;;  %4026 = vlog2.f32 %v2780_v30  ;;  %v2261_v46 = vmul.f32 %v2133_v12, %v6158_v56  ;;  %v2134_v33 = vcvt.s32.f32 %v3679_v26  ;;  %v9385_v11 = vld [vmem:[#allocation74_spill] sm:$0xff] }
 0x258   :  { %488 = vperm.xlu0 %3810, %v345_v15   ;;  %v1791_v48 = vsel %vm1783_vm15, %v1722_v49, 0.0  ;;  %v1258_v22 = vmul.f32 1.442695, %v1136_v28  ;;  %4028 = vlog2.f32 %v9384_v55  ;;  %v3218_v14 = vadd.f32 %v2770_v6, %v6142_v0  ;;  %v6378_v26 = vld [vmem:[%s9063_s4 + $0xa0] sm:$0xff]  ;;  %v6385_v6 = vpop.xlane.xlu0 %1346 }
 0x259   :  { %v1723_v15 = vsel %vm184_vm12, %v1659_v62, 0.0  ;;  %v1660_v30 = vsub.f32 %v6216_v31, %v9385_v11  ;;  %v2198_v56 = vmax.f32 %v6222_v57, 0.0  ;;  %v2456_v12 = vsub.f32 0.0, %v2392_v59  ;;  %v9387_v31 = vld [vmem:[#allocation73_spill] sm:$0xff]  ;;  %9388 = vst [vmem:[#allocation83_spill] sm:$0xff] %v6385_v6 }
 0x25a   :  { %v6380_v17 = vpop.eup %4014  ;;  %4030 = vpow2.f32 %v1256_v27  ;;  %v2775_v28 = vadd.f32 1.0, %v2774_v35  ;;  %v2777_v0 = vand.u32 2147483647, %v6264_v61  ;;  %v2789_v36 = vadd.f32 1.0, %v6360_v34  ;;  %v349_v27 = vld [vmem:[%s9062_s3 + $0x150] sm:$0xff] }
 0x25b   :  { %9386 = vst [vmem:[#allocation23_spill] sm:$0xff] %v6380_v17  ;;  %v4017_v62 = vpop.eup %4016  ;;  %v1792_v49 = vadd.f32 %v1791_v48, %v1790_v41  ;;  %4032 = vlog2.f32 %v9387_v31  ;;  %v6387_v59 = vsub.f32 %v2197_v21, %v2261_v46  ;;  %v2262_v25 = vmul.f32 %v2134_v33, %v6222_v57  ;;  %v4357_v21 = vld [vmem:[%s9061_s2 + $0x1d8] sm:$0xff]  ;;  %v9390_v46 = vld [vmem:[#allocation110_spill] sm:$0xff] }
 0x25c   :  { %494 = vperm.xlu0 %3810, %v347_v42   ;;  %v4019_v35 = vpop.eup %4018  ;;  %4034 = vpow2.f32 %v1258_v22  ;;  %v1793_v55 = vsel %vm1783_vm15, %v1723_v15, 0.0  ;;  %v3411_v41 = vsel %vm194_vm6, %v3218_v14, 0.0  ;;  %v2391_v42 = vand.u32 2147483647, %v6378_v26  ;;  %v6435_v17 = vpop.xlane.xlu0 %1349 }
 0x25d   :  { %v6398_v48 = vpop.eup %4020  ;;  %v1724_v57 = vsel %vm185_vm14, %v1660_v30, 0.0  ;;  %v1137_v33 = vsub.f32 %v4357_v21, %v9390_v46  ;;  %v2783_v22 = vmul.f32 -0.5, %v6297_v5  ;;  %v2541_v15 = vmul.f32 1.442695, %v2456_v12 }
 0x25e   :  { %9389 = vst [vmem:[#allocation26_spill] sm:$0xff] %v6398_v48  ;;  %v1485_v11 = vmul.f32 0.6931472, %v4017_v62  ;;  %v6409_v14 = vmul.f32 %v6264_v61, %v2775_v28  ;;  %vm6411_vm8 = vcmp.lt.f32.partialorder %v2777_v0, 0.0004427343  ;;  %4036 = vlog2.f32 %v2789_v36  ;;  %v351_v28 = vld [vmem:[%s9062_s3 + $0x160] sm:$0xff] }
 0x25f   :  { %v4023_v30 = vpop.eup %4022  ;;  %v1487_v21 = vmul.f32 0.6931472, %v4019_v35  ;;  %v3490_v46 = vsel %vm3460_vm2, %v3411_v41, 0.0  ;;  %v6421_v12 = vsub.f32 %v2198_v56, %v2262_v25  ;;  %v3683_v61 = vunpack.c.1.s8 %v6418_v37  ;;  %v4358_v56 = vld [vmem:[%s9061_s2 + $0x1e0] sm:$0xff]  ;;  %v9393_v25 = vld [vmem:[#allocation76_spill] sm:$0xff] }
 0x260   :  { %500 = vperm.xlu0 %3810, %v349_v27   ;;  %v6427_v0 = vpop.eup %4024  ;;  %v1794_v36 = vadd.f32 %v1793_v55, %v1792_v49  ;;  %v1795_v62 = vsel %vm1783_vm15, %v1724_v57, 0.0  ;;  %v2786_v23 = vand.u32 2147483647, %v6297_v5  ;;  %v2455_v27 = vsub.f32 0.0, %v2391_v42  ;;  %v9394_v49 = vld [vmem:[#allocation38_spill] sm:$0xff] }
 0x261   :  { %v1260_v48 = vmul.f32 1.442695, %v1137_v33  ;;  %v1138_v35 = vsub.f32 %v4358_v56, %v9393_v25  ;;  %v2784_v41 = vadd.f32 1.0, %v2783_v22  ;;  %4038 = vpow2.f32 %v2541_v15  ;;  %v9395_v33 = vld [vmem:[#allocation39_spill] sm:$0xff] }
 0x262   :  { %v1661_v19 = vsub.f32 %v6256_v51, %v5920_v63  ;;  %v6440_v55 = vadd.f32 %v1485_v11, %v9394_v49  ;;  %v2773_v57 = vmul.f32 0.6931472, %v4023_v30  ;;  %v6443_v42 = vadd.s32 152, %v5492_v29  ;;  %v353_v63 = vld [vmem:[%s9062_s3 + $0x170] sm:$0xff] }
 0x263   :  { %4040 = vlog2.f32 %v5881_v52  ;;  %v6447_v6 = vadd.f32 %v1487_v21, %v9395_v33  ;;  %v6450_v22 = vadd.f32 %v3490_v46, %v6337_v47  ;;  %v2798_v15 = vadd.f32 1.0, %v6427_v0  ;;  %v6464_v47 = vld [vmem:[%s9063_s4 + $0xb0] sm:$0xff] }
 0x264   :  { %506 = vperm.xlu0 %3810, %v351_v28   ;;  %v4027_v51 = vpop.eup %4026  ;;  %v1796_v11 = vadd.f32 %v1795_v62, %v1794_v36  ;;  %vm6456_vm10 = vcmp.lt.f32.partialorder %v2786_v23, 0.0004427343  ;;  %v2792_v52 = vmul.f32 -0.5, %v6360_v34  ;;  %v2539_v28 = vmul.f32 1.442695, %v2455_v27  ;;  %v9398_v62 = vld [vmem:[#allocation78_spill] sm:$0xff] }
 0x265   :  { %v4029_v46 = vpop.eup %4028  ;;  %4042 = vpow2.f32 %v1260_v48  ;;  %v1262_v21 = vmul.f32 1.442695, %v1138_v35  ;;  %vm195_vm12 = vcmp.lt.s32.totalorder %v6232_v54, %v5530_v10  ;;  %v2785_v36 = vmul.f32 %v6297_v5, %v2784_v41  ;;  %v9399_v35 = vld [vmem:[#allocation79_spill] sm:$0xff] }
 0x266   :  { %v2136_v23 = vcvt.s32.f32 %v3683_v61  ;;  %4044 = vlog2.f32 %v9398_v62  ;;  %v1725_v27 = vsel %vm186_vm5, %v1661_v19, 0.0  ;;  %v2779_v56 = vsel %vm6411_vm8, %v6409_v14, %v2773_v57  ;;  %v6481_v61 = vpop.xlane.xlu0 %1352  ;;  %v361_v62 = vld [vmem:[%s9062_s3 + $0x1b0] sm:$0xff] }
 0x267   :  { %v2795_v49 = vand.u32 2147483647, %v6360_v34  ;;  %v6477_v48 = vpop.eup %4030  ;;  %v1662_v33 = vsub.f32 %v6275_v40, %v9399_v35  ;;  %v2782_v5 = vmul.f32 0.6931472, %v4027_v51  ;;  %4046 = vlog2.f32 %v2798_v15  ;;  %v4359_v40 = vld [vmem:[%s9061_s2 + $0x1e8] sm:$0xff] }
 0x268   :  { %512 = vperm.xlu0 %3810, %v353_v63   ;;  %v2393_v41 = vand.u32 2147483647, %v6464_v47  ;;  %v4033_v19 = vpop.eup %4032  ;;  %v1489_v14 = vmul.f32 0.6931472, %v4029_v46  ;;  %v2793_v31 = vadd.f32 1.0, %v2792_v52  ;;  %v3682_v57 = vunpack.c.0.s8 %v6418_v37 }
 0x269   :  { %4048 = vpow2.f32 %v2539_v28  ;;  %v6488_v63 = vpop.eup %4034  ;;  %v1139_v15 = vsub.f32 %v4359_v40, %v5958_v39  ;;  %vm196_vm14 = vcmp.lt.s32.totalorder %v6305_v50, %v5530_v10  ;;  %v2200_v51 = vmax.f32 %v6323_v44, 0.0  ;;  %v6788_v50 = vld [vmem:[%s9063_s4 + $0xd0] sm:$0xff] }
 0x26a   :  { %9400 = vst [vmem:[#allocation33_spill] sm:$0xff] %v6488_v63  ;;  %4050 = vpow2.f32 %v1262_v21  ;;  %v2264_v46 = vmul.f32 %v2136_v23, %v6323_v44  ;;  %v1797_v52 = vsel %vm1783_vm15, %v1725_v27, 0.0  ;;  %v3219_v28 = vadd.f32 %v2779_v56, %v6266_v13  ;;  %v357_v13 = vld [vmem:[%s9062_s3 + $0x190] sm:$0xff]  ;;  %v9403_v56 = vld [vmem:[#allocation81_spill] sm:$0xff] }
 0x26b   :  { %vm6500_vm5 = vcmp.lt.f32.partialorder %v2795_v49, 0.0004427343  ;;  %v6505_v21 = vadd.s32 168, %v5492_v29  ;;  %v4037_v35 = vpop.eup %4036  ;;  %v1491_v40 = vmul.f32 0.6931472, %v4033_v19  ;;  %v1726_v25 = vsel %vm187_vm7, %v1662_v33, 0.0 }
 0x26c   :  { %518 = vperm.xlu0 %3810, %v355_v16   ;;  %v2788_v44 = vsel %vm6456_vm10, %v2785_v36, %v2782_v5  ;;  %v2457_v23 = vsub.f32 0.0, %v2393_v41  ;;  %v4360_v27 = vld [vmem:[%s9061_s2 + $0x1f0] sm:$0xff]  ;;  %v9404_v16 = vld [vmem:[#allocation41_spill] sm:$0xff]  ;;  %v2794_v32 = vmul.f32 %v6360_v34, %v2793_v31  ;;  %v2135_v33 = vcvt.s32.f32 %v3682_v57  ;;  %v6526_v5 = vpop.xlane.xlu0 %1355 }
 0x26d   :  { %v1140_v49 = vsub.f32 %v4360_v27, %v9403_v56  ;;  %v6520_v19 = vadd.f32 %v1489_v14, %v9404_v16  ;;  %v1798_v39 = vadd.f32 %v1797_v52, %v1796_v11  ;;  %v1264_v30 = vmul.f32 1.442695, %v1139_v15 }
 0x26e   :  { %4052 = vlog2.f32 %v6008_v38  ;;  %v6524_v36 = vsub.f32 %v2200_v51, %v2264_v46  ;;  %v6528_v41 = vpop.eup %4038  ;;  %v1799_v63 = vsel %vm1783_vm15, %v1726_v25, 0.0  ;;  %v3412_v14 = vsel %vm195_vm12, %v3219_v28, 0.0  ;;  %v9405_v38 = vld [vmem:[#allocation42_spill] sm:$0xff] }
 0x26f   :  { %v3220_v27 = vadd.f32 %v2788_v44, %v6339_v45  ;;  %v2791_v34 = vmul.f32 0.6931472, %v4037_v35  ;;  %v1663_v11 = vsub.f32 %v6283_v20, %v6041_v9  ;;  %v6538_v31 = vadd.f32 %v1491_v40, %v9405_v38  ;;  %v359_v25 = vld [vmem:[%s9062_s3 + $0x1a0] sm:$0xff]  ;;  %v9407_v44 = vld [vmem:[#allocation84_spill] sm:$0xff] }
 0x270   :  { %524 = vperm.xlu0 %3810, %v357_v13   ;;  %v2801_v57 = vmul.f32 -0.5, %v6427_v0  ;;  %v2543_v15 = vmul.f32 1.442695, %v2457_v23  ;;  %v4041_v51 = vpop.eup %4040  ;;  %v1266_v46 = vmul.f32 1.442695, %v1140_v49  ;;  %vm197_vm7 = vcmp.lt.s32.totalorder %v6358_v7, %v5530_v10  ;;  %v9408_v23 = vld [vmem:[#allocation88_spill] sm:$0xff] }
 0x271   :  { %v2804_v45 = vand.u32 2147483647, %v6427_v0  ;;  %v2199_v52 = vmax.f32 %v6378_v26, 0.0  ;;  %v2263_v9 = vmul.f32 %v2135_v33, %v6378_v26  ;;  %v1800_v20 = vadd.f32 %v1799_v63, %v1798_v39  ;;  %v6833_v7 = vld [vmem:[%s9063_s4 + $0xd8] sm:$0xff] }
 0x272   :  { %4054 = vpow2.f32 %v1264_v30  ;;  %v3492_v28 = vsel %vm3460_vm2, %v3412_v14, 0.0  ;;  %v2816_v35 = vadd.f32 1.0, %v6528_v41  ;;  %v6551_v40 = vpop.eup %4042  ;;  %v1664_v13 = vsub.f32 %v6354_v4, %v9408_v23  ;;  %v6564_v30 = vpop.xlane.xlu0 %755  ;;  %v6569_v4 = vld [vmem:[%s9063_s4 + $0xb8] sm:$0xff] }
 0x273   :  { %9406 = vst [vmem:[#allocation85_spill] sm:$0xff] %v6551_v40  ;;  %4056 = vlog2.f32 %v9407_v44  ;;  %v3413_v49 = vsel %vm196_vm14, %v3220_v27, 0.0  ;;  %v2797_v26 = vsel %vm6500_vm5, %v2794_v32, %v2791_v34  ;;  %v4045_v39 = vpop.eup %4044  ;;  %v1493_v63 = vmul.f32 0.6931472, %v4041_v51  ;;  %v9412_v51 = vld [vmem:[#allocation90_spill] sm:$0xff] }
 0x274   :  { %530 = vperm.xlu0 %3810, %v359_v25   ;;  %vm9409_vm11 = vcmp.lt.s32.totalorder %v5768_v3, %v5530_v10  ;;  %v2802_v33 = vadd.f32 1.0, %v2801_v57  ;;  %4058 = vpow2.f32 %v2543_v15  ;;  %v4047_v32 = vpop.eup %4046  ;;  %v3493_v14 = vadd.f32 %v3492_v28, %v6450_v22 }
 0x275   :  { %v1727_v16 = vsel %vm9409_vm11, %v1663_v11, 0.0  ;;  %4060 = vpow2.f32 %v1266_v46  ;;  %vm6575_vm9 = vcmp.lt.f32.partialorder %v2804_v45, 0.0004427343  ;;  %v6579_v27 = vsub.f32 %v2199_v52, %v2263_v9  ;;  %v9413_v9 = vld [vmem:[#allocation43_spill] sm:$0xff] }
 0x276   :  { %v6581_v34 = vpop.eup %4048  ;;  %v3494_v11 = vsel %vm3460_vm2, %v3413_v49, 0.0  ;;  %v3221_v38 = vadd.f32 %v2797_v26, %v6387_v59  ;;  %4062 = vlog2.f32 %v2816_v35  ;;  %v6586_v57 = vadd.s32 160, %v5492_v29  ;;  %v4361_v59 = vld [vmem:[%s9061_s2 + $0x1f8] sm:$0xff] }
 0x277   :  { %v6588_v15 = vpop.eup %4050  ;;  %v1801_v22 = vsel %vm1783_vm15, %v1727_v16, 0.0  ;;  %v1728_v25 = vsel %vm189_vm3, %v1664_v13, 0.0  ;;  %v1665_v46 = vsub.f32 %v6440_v55, %v9412_v51  ;;  %v2394_v45 = vand.u32 2147483647, %v6569_v4 }
 0x278   :  { %536 = vperm.xlu0 %3810, %v361_v62   ;;  %v1141_v52 = vsub.f32 %v4361_v59, %v6076_v60  ;;  %v6602_v28 = vadd.f32 %v1493_v63, %v9413_v9  ;;  %v2800_v35 = vmul.f32 0.6931472, %v4047_v32  ;;  %v2803_v44 = vmul.f32 %v6427_v0, %v2802_v33  ;;  %v6617_v0 = vpop.xlane.xlu0 %1358  ;;  %v9415_v59 = vld [vmem:[#allocation98_spill] sm:$0xff] }
 0x279   :  { %v1495_v55 = vmul.f32 0.6931472, %v4045_v39  ;;  %v2819_v23 = vmul.f32 -0.5, %v6528_v41  ;;  %v2807_v13 = vadd.f32 1.0, %v6581_v34  ;;  %v3686_v49 = vunpack.c.2.s8 %v6418_v37 }
 0x27a   :  { %v1802_v26 = vadd.f32 %v1801_v22, %v1800_v20  ;;  %v1803_v16 = vsel %vm1783_vm15, %v1728_v25, 0.0  ;;  %v3495_v62 = vadd.f32 %v3494_v11, %v3493_v14  ;;  %v3414_v63 = vsel %vm197_vm7, %v3221_v38, 0.0  ;;  %v9414_v20 = vld [vmem:[#allocation94_spill] sm:$0xff]  ;;  %v6625_v11 = vpop.permute.xlu1 %473 }
 0x27b   :  { %vm198_vm3 = vcmp.lt.s32.totalorder %v6443_v42, %v5530_v10  ;;  %v4053_v39 = vpop.eup %4052  ;;  %v1729_v33 = vsel %vm190_vm13, %v1665_v46, 0.0  ;;  %4064 = vlog2.f32 %v6124_v53  ;;  %v1666_v32 = vsub.f32 %v6447_v6, %v9414_v20 }
 0x27c   :  { %v2458_v14 = vsub.f32 0.0, %v2394_v45  ;;  %545 = vperm.xlu0 %3810, %v364_v58   ;;  %v1268_v38 = vmul.f32 1.442695, %v1141_v52  ;;  %4066 = vlog2.f32 %v6171_v2  ;;  %v2806_v22 = vsel %vm6575_vm9, %v2803_v44, %v2800_v35  ;;  %v9416_v52 = vld [vmem:[#allocation44_spill] sm:$0xff] }
 0x27d   :  { %v2822_v25 = vand.u32 2147483647, %v6528_v41  ;;  %v3496_v53 = vsel %vm3460_vm2, %v3414_v63, 0.0  ;;  %v2820_v51 = vadd.f32 1.0, %v2819_v23  ;;  %4068 = vlog2.f32 %v2807_v13 }
 0x27e   :  { %v2137_v6 = vcvt.s32.f32 %v3686_v49  ;;  %v1497_v46 = vmul.f32 0.6931472, %v4053_v39  ;;  %v1805_v45 = vsel %vm1783_vm15, %v1729_v33, 0.0  ;;  %v1667_v2 = vsub.f32 %v6520_v19, %v9415_v59  ;;  %v6651_v19 = vpop.xlane.xlu0 %1361  ;;  %v6667_v39 = vld [vmem:[%s9063_s4 + $0xc0] sm:$0xff]  ;;  %v6669_v33 = vpop.permute.xlu1 %479 }
 0x27f   :  { %v6639_v3 = vadd.f32 %v1495_v55, %v9416_v52  ;;  %v6641_v9 = vpop.eup %4054  ;;  %v1804_v35 = vadd.f32 %v1803_v16, %v1802_v26  ;;  %vm9418_vm13 = vcmp.lt.s32.totalorder %v5913_v43, %v5530_v10  ;;  %v3222_v58 = vadd.f32 %v2806_v22, %v6421_v12  ;;  %v368_v43 = vld [vmem:[%s9062_s3 + $0x1e8] sm:$0xff] }
 0x280   :  { %9417 = vst [vmem:[#allocation34_spill] sm:$0xff] %v6641_v9  ;;  %v1730_v44 = vsel %vm9418_vm13, %v1666_v32, 0.0  ;;  %v2545_v23 = vmul.f32 1.442695, %v2458_v14  ;;  %551 = vperm.xlu0 %3810, %v366_v1   ;;  %v4057_v13 = vpop.eup %4056  ;;  %4070 = vpow2.f32 %v1268_v38  ;;  %v3497_v49 = vadd.f32 %v3496_v53, %v3495_v62  ;;  %v9422_v38 = vld [vmem:[#allocation45_spill] sm:$0xff] }
 0x281   :  { %vm6647_vm4 = vcmp.lt.f32.partialorder %v2822_v25, 0.0004427343  ;;  %v2201_v55 = vmax.f32 %v6464_v47, 0.0  ;;  %v6657_v26 = vpop.eup %4058  ;;  %v1806_v12 = vadd.f32 %v1805_v45, %v1804_v35  ;;  %4072 = vlog2.f32 %v6210_v8  ;;  %v9424_v45 = vld [vmem:[#allocation31_spill] sm:$0xff] }
 0x282   :  { %v6661_v16 = vmul.f32 %v6528_v41, %v2820_v51  ;;  %v2265_v62 = vmul.f32 %v2137_v6, %v6464_v47  ;;  %v6671_v20 = vpop.eup %4060  ;;  %v1807_v32 = vsel %vm1783_vm15, %v1730_v44, 0.0  ;;  %v1731_v8 = vsel %vm192_vm0, %v1667_v2, 0.0  ;;  %v9423_v51 = vld [vmem:[#allocation101_spill] sm:$0xff] }
 0x283   :  { %v6678_v41 = vadd.f32 %v1497_v46, %v9422_v38  ;;  %v3687_v47 = vunpack.c.3.s8 %v6418_v37  ;;  %v4063_v22 = vpop.eup %4062  ;;  %v1499_v25 = vmul.f32 0.6931472, %v4057_v13  ;;  %v3415_v1 = vsel %vm198_vm3, %v3222_v58, 0.0  ;;  %v370_v37 = vld [vmem:[%s9062_s3 + $0x1f8] sm:$0xff]  ;;  %v9425_v58 = vld [vmem:[#allocation103_spill] sm:$0xff] }
 0x284   :  { %v2810_v53 = vmul.f32 -0.5, %v6581_v34  ;;  %4074 = vpow2.f32 %v2545_v23  ;;  %557 = vperm.xlu0 %3810, %v368_v43   ;;  %v1668_v6 = vsub.f32 %v6538_v31, %v9423_v51  ;;  %v2825_v46 = vadd.f32 1.0, %v6657_v26  ;;  %v6702_v43 = vpop.xlane.xlu0 %761  ;;  %v9428_v51 = vld [vmem:[#allocation104_spill] sm:$0xff] }
 0x285   :  { %4076 = vlog2.f32 %v9424_v45  ;;  %v2395_v59 = vand.u32 2147483647, %v6667_v39  ;;  %v1808_v2 = vadd.f32 %v1807_v32, %v1806_v12  ;;  %v1809_v52 = vsel %vm1783_vm15, %v1731_v8, 0.0  ;;  %v6707_v12 = vld [vmem:[%s9064_s5 + $0x30] sm:$0xff]   ;;  %v9426_v32 = vld [vmem:[#allocation47_spill] sm:$0xff] }
 0x286   :  { %v6694_v35 = vsub.f32 %v2201_v55, %v2265_v62  ;;  %v6697_v44 = vadd.s32 176, %v5492_v29  ;;  %v1669_v31 = vsub.f32 %v6602_v28, %v9425_v58  ;;  %v3498_v23 = vsel %vm3460_vm2, %v3415_v1, 0.0  ;;  %v6714_v28 = vpop.permute.xlu1 %485 }
 0x287   :  { %v2818_v13 = vmul.f32 0.6931472, %v4063_v22  ;;  %v2138_v14 = vcvt.s32.f32 %v3687_v47  ;;  %v6710_v55 = vadd.f32 %v1499_v25, %v9426_v32  ;;  %v2811_v62 = vadd.f32 1.0, %v2810_v53 }
 0x288   :  { %v2813_v8 = vand.u32 2147483647, %v6581_v34  ;;  %v2202_v38 = vmax.f32 %v6569_v4, 0.0  ;;  %563 = vperm.xlu0 %3810, %v370_v37   ;;  %v4065_v22 = vpop.eup %4064  ;;  %v1732_v47 = vsel %vm193_vm1, %v1668_v6, 0.0  ;;  %v1670_v45 = vsub.f32 %v6639_v3, %v9428_v51  ;;  %v9429_v3 = vld [vmem:[#allocation21_spill] sm:$0xff] }
 0x289   :  { %vm200_vm0 = vcmp.lt.s32.totalorder %v6505_v21, %v5530_v10  ;;  %4078 = vlog2.f32 %v2825_v46  ;;  %v2459_v25 = vsub.f32 0.0, %v2395_v59  ;;  %v4067_v53 = vpop.eup %4066  ;;  %v1810_v58 = vadd.f32 %v1809_v52, %v1808_v2 }
 0x28a   :  { %v6723_v32 = vadd.f32 %v3498_v23, %v3497_v49  ;;  %v6726_v56 = vadd.s32 184, %v5492_v29  ;;  %v3690_v37 = vunpack.c.0.s8 %v6707_v12  ;;  %v4069_v60 = vpop.eup %4068  ;;  %v1733_v6 = vsel %vm194_vm6, %v1669_v31, 0.0 }
 0x28b   :  { %4080 = vlog2.f32 %v9429_v3  ;;  %v2824_v46 = vsel %vm6647_vm4, %v6661_v16, %v2818_v13  ;;  %v2266_v59 = vmul.f32 %v2138_v14, %v6569_v4  ;;  %v1501_v49 = vmul.f32 0.6931472, %v4065_v22  ;;  %v9432_v4 = vld [vmem:[#allocation106_spill] sm:$0xff]  ;;  %v6753_v13 = vpop.xlane.xlu0 %1364 }
 0x28c   :  { %v1811_v2 = vsel %vm1783_vm15, %v1732_v47, 0.0  ;;  %v2812_v52 = vmul.f32 %v6581_v34, %v2811_v62  ;;  %vm6739_vm1 = vcmp.lt.f32.partialorder %v2813_v8, 0.0004427343  ;;  %v1503_v31 = vmul.f32 0.6931472, %v4067_v53  ;;  %v6759_v47 = vpop.permute.xlu1 %491 }
 0x28d   :  { %v1734_v63 = vsel %vm195_vm12, %v1670_v45, 0.0  ;;  %v1671_v16 = vsub.f32 %v6678_v41, %v9432_v4  ;;  %v2547_v34 = vmul.f32 1.442695, %v2459_v25  ;;  %v6755_v14 = vpop.eup %4070  ;;  %v1813_v62 = vsel %vm1783_vm15, %v1733_v6, 0.0  ;;  %v9434_v25 = vld [vmem:[#allocation46_spill] sm:$0xff] }
 0x28e   :  { %9433 = vst [vmem:[#allocation35_spill] sm:$0xff] %v6755_v14  ;;  %v3224_v8 = vadd.f32 %v2824_v46, %v6524_v36  ;;  %v2809_v22 = vmul.f32 0.6931472, %v4069_v60  ;;  %v2139_v1 = vcvt.s32.f32 %v3690_v37  ;;  %v4073_v51 = vpop.eup %4072  ;;  %v1812_v53 = vadd.f32 %v1811_v2, %v1810_v58  ;;  %v9443_v14 = vld [vmem:[#allocation111_spill] sm:$0xff] }
 0x28f   :  { %4082 = vlog2.f32 %v6348_v24  ;;  %v6762_v54 = vsub.f32 %v2202_v38, %v2266_v59  ;;  %v2396_v41 = vand.u32 2147483647, %v6746_v18  ;;  %v1815_v45 = vsel %vm1783_vm15, %v1734_v63, 0.0  ;;  %v9435_v38 = vld [vmem:[#allocation50_spill] sm:$0xff] }
 0x290   :  { %v1609_v3 = vadd.f32 %v1501_v49, %v9434_v25  ;;  %vm199_vm6 = vcmp.lt.s32.totalorder %v6586_v57, %v5530_v10  ;;  %v2828_v60 = vmul.f32 -0.5, %v6657_v26  ;;  %v2203_v36 = vmax.f32 %v6667_v39, 0.0  ;;  %v6884_v57 = vld [vmem:[%s9063_s4 + $0xe0] sm:$0xff] }
 0x291   :  { %v6771_v37 = vpop.eup %4074  ;;  %v1814_v58 = vadd.f32 %v1813_v62, %v1812_v53  ;;  %v1735_v24 = vsel %vm196_vm14, %v1671_v16, 0.0  ;;  %v6777_v6 = vadd.f32 %v1503_v31, %v9435_v38  ;;  %4084 = vpow2.f32 %v2547_v34  ;;  %v9436_v31 = vld [vmem:[#allocation83_spill] sm:$0xff]  ;;  %v6792_v34 = vpop.xlane.xlu0 %764  ;;  %v9438_v38 = vld [vmem:[#allocation48_spill] sm:$0xff] }
 0x292   :  { %v4077_v46 = vpop.eup %4076  ;;  %v1505_v59 = vmul.f32 0.6931472, %v4073_v51  ;;  %v3417_v49 = vsel %vm200_vm0, %v3224_v8, 0.0  ;;  %v2815_v2 = vsel %vm6739_vm1, %v2812_v52, %v2809_v22  ;;  %v2267_v63 = vmul.f32 %v2139_v1, %v6667_v39  ;;  %v9437_v51 = vld [vmem:[#allocation108_spill] sm:$0xff]  ;;  %v6798_v22 = vpop.permute.xlu1 %497 }
 0x293   :  { %v1816_v4 = vadd.f32 %v1815_v45, %v1814_v58  ;;  %4086 = vlog2.f32 %v9436_v31  ;;  %v2831_v16 = vand.u32 2147483647, %v6657_v26  ;;  %v2460_v62 = vsub.f32 0.0, %v2396_v41 }
 0x294   :  { %v1817_v8 = vsel %vm1783_vm15, %v1735_v24, 0.0  ;;  %v1672_v52 = vsub.f32 %v6710_v55, %v9437_v51  ;;  %v2829_v23 = vadd.f32 1.0, %v2828_v60  ;;  %v2834_v39 = vadd.f32 1.0, %v6771_v37 }
 0x295   :  { %v1507_v1 = vmul.f32 0.6931472, %v4077_v46  ;;  %4088 = vlog2.f32 %v6435_v17  ;;  %v3223_v53 = vadd.f32 %v2815_v2, %v6579_v27  ;;  %v2397_v45 = vand.u32 2147483647, %v6788_v50  ;;  %v6828_v51 = vpop.xlane.xlu0 %767 }
 0x296   :  { %v4079_v25 = vpop.eup %4078  ;;  %v6804_v41 = vsel %vm3460_vm2, %v3417_v49, 0.0  ;;  %v6806_v58 = vsub.f32 %v2203_v36, %v2267_v63  ;;  %v6809_v55 = vadd.s32 192, %v5492_v29  ;;  %v3691_v60 = vunpack.c.1.s8 %v6707_v12  ;;  %v9441_v36 = vld [vmem:[#allocation109_spill] sm:$0xff] }
 0x297   :  { %v1818_v24 = vadd.f32 %v1817_v8, %v1816_v4  ;;  %v1611_v46 = vadd.f32 %v1505_v59, %v9438_v38  ;;  %vm6813_vm8 = vcmp.lt.f32.partialorder %v2831_v16, 0.0004427343  ;;  %v2549_v27 = vmul.f32 1.442695, %v2460_v62  ;;  %v9442_v59 = vld [vmem:[#allocation53_spill] sm:$0xff] }
 0x298   :  { %v4081_v2 = vpop.eup %4080  ;;  %v1736_v49 = vsel %vm197_vm7, %v1672_v52, 0.0  ;;  %v1673_v63 = vsub.f32 %v1609_v3, %v9441_v36  ;;  %v2830_v31 = vmul.f32 %v6657_v26, %v2829_v23  ;;  %4090 = vlog2.f32 %v2834_v39  ;;  %v6838_v23 = vpop.permute.xlu1 %503 }
 0x299   :  { %v3416_v4 = vsel %vm199_vm6, %v3223_v53, 0.0  ;;  %v6826_v16 = vadd.f32 %v1507_v1, %v9442_v59  ;;  %v2827_v8 = vmul.f32 0.6931472, %v4079_v25  ;;  %v2461_v62 = vsub.f32 0.0, %v2397_v45  ;;  %v6864_v17 = vpop.xlane.xlu0 %770 }
 0x29a   :  { %4092 = vlog2.f32 %v6481_v61  ;;  %v2837_v26 = vmul.f32 -0.5, %v6771_v37  ;;  %v2140_v3 = vcvt.s32.f32 %v3691_v60  ;;  %v2204_v52 = vmax.f32 %v6746_v18, 0.0 }
 0x29b   :  { %v1509_v39 = vmul.f32 0.6931472, %v4081_v2  ;;  %v1819_v1 = vsel %vm1783_vm15, %v1736_v49, 0.0  ;;  %vm201_vm10 = vcmp.lt.s32.totalorder %v6697_v44, %v5530_v10  ;;  %4094 = vpow2.f32 %v2549_v27 }
 0x29c   :  { %v6844_v53 = vadd.s32 200, %v5492_v29  ;;  %v4083_v45 = vpop.eup %4082  ;;  %v1737_v61 = vsel %vm198_vm3, %v1673_v63, 0.0  ;;  %v1674_v25 = vsub.f32 %v6777_v6, %v6564_v30  ;;  %v3500_v60 = vsel %vm3460_vm2, %v3416_v4, 0.0 }
 0x29d   :  { %v2398_v38 = vand.u32 2147483647, %v6833_v7  ;;  %4096 = vlog2.f32 %v6526_v5  ;;  %v2833_v27 = vsel %vm6813_vm8, %v2830_v31, %v2827_v8  ;;  %v2840_v2 = vand.u32 2147483647, %v6771_v37 }
 0x29e   :  { %v2551_v49 = vmul.f32 1.442695, %v2461_v62  ;;  %v6857_v36 = vpop.eup %4084  ;;  %v1820_v59 = vadd.f32 %v1819_v1, %v1818_v24  ;;  %v2838_v42 = vadd.f32 1.0, %v2837_v26  ;;  %v2268_v63 = vmul.f32 %v2140_v3, %v6746_v18  ;;  %v9444_v62 = vld [vmem:[#allocation49_spill] sm:$0xff]  ;;  %v6873_v3 = vpop.permute.xlu1 %509 }
 0x29f   :  { %v3694_v30 = vunpack.c.2.s8 %v6707_v12  ;;  %v1511_v6 = vmul.f32 0.6931472, %v4083_v45  ;;  %v1821_v4 = vsel %vm1783_vm15, %v1737_v61, 0.0  ;;  %v1675_v9 = vsub.f32 %v1611_v46, %v9443_v14 }
 0x2a0   :  { %v3501_v5 = vadd.f32 %v3500_v60, %v6723_v32  ;;  %v4087_v31 = vpop.eup %4086  ;;  %v1738_v8 = vsel %vm199_vm6, %v1674_v25, 0.0  ;;  %v3225_v24 = vadd.f32 %v2833_v27, %v6694_v35  ;;  %v6871_v18 = vadd.f32 %v1509_v39, %v9444_v62  ;;  %v9447_v27 = vld [vmem:[#allocation55_spill] sm:$0xff] }
 0x2a1   :  { %v2462_v26 = vsub.f32 0.0, %v2398_v38  ;;  %vm6875_vm12 = vcmp.lt.f32.partialorder %v2840_v2, 0.0004427343  ;;  %v2843_v32 = vadd.f32 1.0, %v6857_v36  ;;  %v2846_v14 = vmul.f32 -0.5, %v6857_v36 }
 0x2a2   :  { %4098 = vpow2.f32 %v2551_v49  ;;  %v4089_v35 = vpop.eup %4088  ;;  %v1822_v46 = vadd.f32 %v1821_v4, %v1820_v59  ;;  %v6887_v39 = vmul.f32 %v6771_v37, %v2838_v42  ;;  %v6889_v45 = vsub.f32 %v2204_v52, %v2268_v63  ;;  %v6908_v63 = vpop.xlane.xlu0 %773 }
 0x2a3   :  { %v2141_v61 = vcvt.s32.f32 %v3694_v30  ;;  %v1739_v25 = vsel %vm200_vm0, %v1675_v9, 0.0  ;;  %v1823_v60 = vsel %vm1783_vm15, %v1738_v8, 0.0  ;;  %v3503_v38 = vadd.f32 %v6804_v41, %v3501_v5  ;;  %v6913_v5 = vpop.permute.xlu1 %515 }
 0x2a4   :  { %vm202_vm14 = vcmp.lt.s32.totalorder %v6726_v56, %v5530_v10  ;;  %v6899_v2 = vadd.f32 %v1511_v6, %v9447_v27  ;;  %v3418_v37 = vsel %vm201_vm10, %v3225_v24, 0.0  ;;  %v2205_v52 = vmax.f32 %v6788_v50, 0.0  ;;  %9448 = vst [vmem:[#allocation100_spill] sm:$0xff] %v6913_v5  ;;  %v9449_v24 = vld [vmem:[#allocation112_spill] sm:$0xff] }
 0x2a5   :  { %v2553_v49 = vmul.f32 1.442695, %v2462_v26  ;;  %v2399_v21 = vand.u32 2147483647, %v6884_v57  ;;  %v4091_v9 = vpop.eup %4090  ;;  %v1513_v59 = vmul.f32 0.6931472, %v4087_v31  ;;  %4100 = vlog2.f32 %v2843_v32 }
 0x2a6   :  { %v1515_v42 = vmul.f32 0.6931472, %v4089_v35  ;;  %v2847_v41 = vadd.f32 1.0, %v2846_v14  ;;  %vm203_vm5 = vcmp.lt.s32.totalorder %v6809_v55, %v5530_v10  ;;  %v1825_v30 = vsel %vm1783_vm15, %v1739_v25, 0.0  ;;  %v9450_v35 = vld [vmem:[#allocation113_spill] sm:$0xff] }
 0x2a7   :  { %v1824_v6 = vadd.f32 %v1823_v60, %v1822_v46  ;;  %4102 = vlog2.f32 %v6617_v0  ;;  %v2269_v4 = vmul.f32 %v2141_v61, %v6788_v50  ;;  %v4093_v8 = vpop.eup %4092  ;;  %v3504_v31 = vsel %vm3460_vm2, %v3418_v37, 0.0  ;;  %v9451_v61 = vld [vmem:[#allocation51_spill] sm:$0xff]  ;;  %v9452_v60 = vld [vmem:[#allocation57_spill] sm:$0xff] }
 0x2a8   :  { %4104 = vlog2.f32 %v9449_v24  ;;  %v2849_v62 = vand.u32 2147483647, %v6857_v36  ;;  %vm204_vm7 = vcmp.lt.s32.totalorder %v6844_v53, %v5530_v10  ;;  %v6921_v26 = vadd.s32 208, %v5492_v29  ;;  %v6923_v32 = vpop.eup %4094 }
 0x2a9   :  { %v1676_v0 = vsub.f32 %v6826_v16, %v6702_v43  ;;  %v2836_v50 = vmul.f32 0.6931472, %v4091_v9  ;;  %4106 = vpow2.f32 %v2553_v49  ;;  %v2463_v14 = vsub.f32 0.0, %v2399_v21  ;;  %v9453_v16 = vld [vmem:[#allocation115_spill] sm:$0xff]  ;;  %v777_v9 = vpop.xlane.xlu0 %776 }
 0x2aa   :  { %4108 = vlog2.f32 %v9450_v35  ;;  %v6929_v46 = vmul.f32 %v6857_v36, %v2847_v41  ;;  %v1615_v25 = vadd.f32 %v1513_v59, %v9451_v61  ;;  %v1616_v27 = vadd.f32 %v1515_v42, %v9452_v60  ;;  %v4097_v37 = vpop.eup %4096  ;;  %v6950_v42 = vpop.permute.xlu1 %521  ;;  %v9454_v41 = vld [vmem:[#allocation117_spill] sm:$0xff] }
 0x2ab   :  { %v1826_v24 = vadd.f32 %v1825_v30, %v1824_v6  ;;  %v1677_v40 = vsub.f32 %v6871_v18, %v6792_v34  ;;  %v6935_v5 = vsub.f32 %v2205_v52, %v2269_v4  ;;  %v1517_v43 = vmul.f32 0.6931472, %v4093_v8 }
 0x2ac   :  { %4110 = vlog2.f32 %v9453_v16  ;;  %v6938_v49 = vadd.f32 %v3504_v31, %v3503_v38  ;;  %v2852_v21 = vadd.f32 1.0, %v6923_v32  ;;  %v3695_v36 = vunpack.c.3.s8 %v6707_v12 }
 0x2ad   :  { %v1740_v59 = vsel %vm201_vm10, %v1676_v0, 0.0  ;;  %v2842_v34 = vsel %vm6875_vm12, %v6887_v39, %v2836_v50  ;;  %v1678_v18 = vsub.f32 %v6899_v2, %v6828_v51  ;;  %v2555_v52 = vmul.f32 1.442695, %v2463_v14  ;;  %v9457_v39 = vld [vmem:[#allocation52_spill] sm:$0xff]  ;;  %v9458_v50 = vld [vmem:[#allocation59_spill] sm:$0xff]  ;;  %v780_v35 = vpop.xlane.xlu0 %779 }
 0x2ae   :  { %4112 = vlog2.f32 %v6651_v19  ;;  %vm205_vm11 = vcmp.lt.s32.totalorder %v6921_v26, %v5530_v10  ;;  %v1519_v38 = vmul.f32 0.6931472, %v4097_v37  ;;  %v1741_v1 = vsel %vm202_vm14, %v1677_v40, 0.0  ;;  %v6976_v40 = vld [vmem:[%s9063_s4 + $0xe8] sm:$0xff]  ;;  %v6996_v37 = vpop.permute.xlu1 %527 }
 0x2af   :  { %v6956_v44 = vpop.eup %4098  ;;  %4114 = vlog2.f32 %v9454_v41  ;;  %vm6962_vm9 = vcmp.lt.f32.partialorder %v2849_v62, 0.0004427343  ;;  %v1679_v19 = vsub.f32 %v1615_v25, %v6864_v17  ;;  %v1617_v2 = vadd.f32 %v1517_v43, %v9457_v39 }
 0x2b0   :  { %v1827_v30 = vsel %vm1783_vm15, %v1740_v59, 0.0  ;;  %v3226_v6 = vadd.f32 %v2842_v34, %v6762_v54  ;;  %4116 = vlog2.f32 %v2852_v21  ;;  %v6971_v4 = vadd.s32 216, %v5492_v29  ;;  %v6985_v54 = vld [vmem:[%s9064_s5 + $0x38] sm:$0xff]  }
 0x2b1   :  { %v1742_v8 = vsel %vm203_vm5, %v1678_v18, 0.0  ;;  %v1680_v17 = vsub.f32 %v1616_v27, %v6908_v63  ;;  %v2142_v31 = vcvt.s32.f32 %v3695_v36  ;;  %4118 = vpow2.f32 %v2555_v52 }
 0x2b2   :  { %v1829_v62 = vsel %vm1783_vm15, %v1741_v1, 0.0  ;;  %v2861_v0 = vadd.f32 1.0, %v6956_v44  ;;  %v1618_v14 = vadd.f32 %v1519_v38, %v9458_v50  ;;  %v6991_v61 = vadd.s32 224, %v5492_v29  ;;  %v4101_v25 = vpop.eup %4100 }
 0x2b3   :  { %v1828_v60 = vadd.f32 %v1827_v30, %v1826_v24  ;;  %v1743_v63 = vsel %vm204_vm7, %v1679_v19, 0.0  ;;  %v1681_v27 = vsub.f32 %v1617_v2, %v777_v9  ;;  %v2400_v43 = vand.u32 2147483647, %v6976_v40 }
 0x2b4   :  { %v4103_v16 = vpop.eup %4102  ;;  %v1831_v21 = vsel %vm1783_vm15, %v1742_v8, 0.0  ;;  %vm206_vm3 = vcmp.lt.s32.totalorder %v6971_v4, %v5530_v10  ;;  %v3698_v36 = vunpack.c.0.s8 %v6985_v54  ;;  %v3419_v9 = vsel %vm202_vm14, %v3226_v6, 0.0  ;;  %v7025_v6 = vld [vmem:[%s9063_s4 + $0xf8] sm:$0xff] }
 0x2b5   :  { %v7004_v24 = vpop.eup %4104  ;;  %v1830_v34 = vadd.f32 %v1829_v62, %v1828_v60  ;;  %v1744_v18 = vsel %vm205_vm11, %v1680_v17, 0.0  ;;  %v1682_v52 = vsub.f32 %v1618_v14, %v780_v35  ;;  %v2845_v41 = vmul.f32 0.6931472, %v4101_v25 }
 0x2b6   :  { %v7012_v38 = vpop.eup %4106  ;;  %v1833_v1 = vsel %vm1783_vm15, %v1743_v63, 0.0  ;;  %4120 = vlog2.f32 %v2861_v0  ;;  %vm207_vm13 = vcmp.lt.s32.totalorder %v6991_v61, %v5530_v10  ;;  %v1745_v56 = vsel %vm206_vm3, %v1681_v27, 0.0  ;;  %v7040_v63 = vpop.permute.xlu1 %533 }
 0x2b7   :  { %v7017_v19 = vpop.eup %4108  ;;  %v1832_v39 = vadd.f32 %v1831_v21, %v1830_v34  ;;  %v1521_v2 = vmul.f32 0.6931472, %v4103_v16  ;;  %v2464_v30 = vsub.f32 0.0, %v2400_v43  ;;  %v3506_v8 = vsel %vm3460_vm2, %v3419_v9, 0.0 }
 0x2b8   :  { %v2855_v17 = vmul.f32 -0.5, %v6923_v32  ;;  %v1835_v62 = vsel %vm1783_vm15, %v1744_v18, 0.0  ;;  %v7031_v0 = vadd.s32 232, %v5492_v29  ;;  %v2270_v35 = vmul.f32 %v2142_v31, %v6833_v7  ;;  %v9459_v18 = vld [vmem:[#allocation54_spill] sm:$0xff] }
 0x2b9   :  { %v7033_v50 = vpop.eup %4110  ;;  %v1834_v14 = vadd.f32 %v1833_v1, %v1832_v39  ;;  %v2870_v25 = vadd.f32 1.0, %v7012_v38  ;;  %v1746_v60 = vsel %vm207_vm13, %v1682_v52, 0.0  ;;  %v2851_v27 = vsel %vm6962_vm9, %v6929_v46, %v2845_v41 }
 0x2ba   :  { %v1837_v43 = vsel %vm1783_vm15, %v1745_v56, 0.0  ;;  %v2143_v16 = vcvt.s32.f32 %v3698_v36  ;;  %v2402_v21 = vand.u32 2147483647, %v7025_v6  ;;  %v3507_v31 = vadd.f32 %v3506_v8, %v6938_v49 }
 0x2bb   :  { %v7047_v34 = vpop.eup %4112  ;;  %v1836_v9 = vadd.f32 %v1835_v62, %v1834_v14  ;;  %v1619_v1 = vadd.f32 %v1521_v2, %v9459_v18  ;;  %v2557_v39 = vmul.f32 1.442695, %v2464_v30  ;;  %v2856_v59 = vadd.f32 1.0, %v2855_v17  ;;  %v783_v51 = vpop.xlane.xlu0 %782 }
 0x2bc   :  { %v7051_v52 = vpop.eup %4114  ;;  %v2858_v12 = vand.u32 2147483647, %v6923_v32  ;;  %v1839_v46 = vsel %vm1783_vm15, %v1746_v60, 0.0  ;;  %vm208_vm4 = vcmp.lt.s32.totalorder %v7031_v0, %v5530_v10  ;;  %v3227_v41 = vadd.f32 %v2851_v27, %v6806_v58  ;;  %v7067_v18 = vpop.permute.xlu1 %539 }
 0x2bd   :  { %v4117_v36 = vpop.eup %4116  ;;  %4122 = vlog2.f32 %v2870_v25  ;;  %v1838_v49 = vadd.f32 %v1837_v43, %v1836_v9  ;;  %v1683_v56 = vsub.f32 %v1619_v1, %v783_v51  ;;  %v2864_v2 = vmul.f32 -0.5, %v6956_v44  ;;  %v9461_v25 = vld [vmem:[#allocation119_spill] sm:$0xff]  ;;  %v7088_v9 = vld [vmem:[%s9063_s4 + $0xf0] sm:$0xff] }
 0x2be   :  { %v7058_v8 = vpop.eup %4118  ;;  %4124 = vlog2.f32 %v6753_v13  ;;  %v2271_v30 = vmul.f32 %v2143_v16, %v6884_v57  ;;  %v2466_v17 = vsub.f32 0.0, %v2402_v21  ;;  %v9460_v62 = vmax.f32 %v6833_v7, 0.0  ;;  %9465 = vst [vmem:[#allocation36_spill] sm:$0xff] %v7088_v9 }
 0x2bf   :  { %v1840_v60 = vadd.f32 %v1839_v46, %v1838_v49  ;;  %4126 = vpow2.f32 %v2557_v39  ;;  %v1747_v58 = vsel %vm208_vm4, %v1683_v56, 0.0  ;;  %v2857_v13 = vmul.f32 %v6923_v32, %v2856_v59  ;;  %v9466_v32 = vld [vmem:[#allocation120_spill] sm:$0xff]  ;;  %v9470_v49 = vld [vmem:[#allocation99_spill] sm:$0xff] }
 0x2c0   :  { %v7065_v14 = vsub.f32 %v9460_v62, %v2270_v35  ;;  %4128 = vlog2.f32 %v9461_v25  ;;  %vm7074_vm0 = vcmp.lt.f32.partialorder %v2858_v12, 0.0004427343  ;;  %v1841_v7 = vsel %vm1783_vm15, %v1747_v58, 0.0 }
 0x2c1   :  { %v3420_v35 = vsel %vm203_vm5, %v3227_v41, 0.0  ;;  %v2854_v43 = vmul.f32 0.6931472, %v4117_v36  ;;  %v2879_v16 = vadd.f32 1.0, %v7058_v8  ;;  %v7083_v21 = vadd.f32 %v1841_v7, %v1840_v60  ;;  %v9468_v36 = vld [vmem:[#allocation96_spill] sm:$0xff] }
 0x2c2   :  { %4130 = vlog2.f32 %v9466_v32  ;;  %v2865_v12 = vadd.f32 1.0, %v2864_v2  ;;  %v9467_v59 = vmax.f32 %v6884_v57, 0.0  ;;  %v2561_v39 = vmul.f32 1.442695, %v2466_v17  ;;  %v9472_v57 = vld [vmem:[#allocation28_spill] sm:$0xff]  ;;  %v9474_v17 = vld [vmem:[#allocation17_spill] sm:$0xff]  ;;  %v7119_v32 = vpop.permute.xlu1 %542 }
 0x2c3   :  { %9464 = vst [vmem:[#allocation93_spill] sm:$0xff] %v7083_v21  ;;  %v4121_v55 = vpop.eup %4120  ;;  %v2867_v46 = vand.u32 2147483647, %v6956_v44  ;;  %v2873_v51 = vmul.f32 -0.5, %v7012_v38  ;;  %vm9469_vm1 = vcmask 39936   ;;  %v3508_v2 = vsel %vm3460_vm2, %v3420_v35, 0.0  ;;  %v465_v62 = vpop.permute.xlu0 %464 }
 0x2c4   :  { %v7093_v1 = vsub.f32 %v9467_v59, %v2271_v30  ;;  %v7099_v41 = vsel %vm9469_vm1, %v9468_v36, 0.0  ;;  %vm9471_vm6 = vmmov %vm9469_vm1  ;;  %v2401_v58 = vand.u32 2147483647, %v7088_v9  ;;  %v2860_v25 = vsel %vm7074_vm0, %v2857_v13, %v2854_v43  ;;  %v9476_v7 = vld [vmem:[#allocation40_spill] sm:$0xff] }
 0x2c5   :  { %v7103_v56 = vsel %vm9471_vm6, %v9470_v49, 0.0  ;;  %vm9473_vm8 = vmmov %vm9469_vm1  ;;  %vm598_vm12 = vcmp.eq.s32.totalorder %v9476_v7, %v6625_v11  ;;  %4132 = vlog2.f32 %v2879_v16  ;;  %vm595_vm14 = vcmp.eq.s32.totalorder %v9476_v7, %v465_v62  ;;  %v4362_v36 = vld [vmem:[%s9061_s2 + $0xf0] sm:$0xff] }
 0x2c6   :  { %v7108_v30 = vsel %vm9473_vm8, %v9472_v57, 0.0  ;;  %vm9475_vm10 = vmmov %vm9469_vm1  ;;  %v2863_v35 = vmul.f32 0.6931472, %v4121_v55  ;;  %v2866_v59 = vmul.f32 %v6956_v44, %v2865_v12  ;;  %4134 = vpow2.f32 %v2561_v39  ;;  %v4363_v44 = vld [vmem:[%s9061_s2 + $0x108] sm:$0xff]  ;;  %v9498_v9 = vld [vmem:[#allocation92_spill] sm:$0xff] }
 0x2c7   :  { %v7112_v60 = vsel %vm9475_vm10, %v9474_v17, 0.0  ;;  %v659_v49 = vsel %vm595_vm14, %v4362_v36, 0.0  ;;  %vm7126_vm5 = vcmp.lt.f32.partialorder %v2867_v46, 0.0004427343  ;;  %v2874_v13 = vadd.f32 1.0, %v2873_v51  ;;  %vm9479_vm9 = vmmov %vm9469_vm1  ;;  %v471_v39 = vpop.permute.xlu0 %470  ;;  %v9480_v51 = vld [vmem:[#allocation29_spill] sm:$0xff] }
 0x2c8   :  { %v3699_v43 = vunpack.c.1.s8 %v6985_v54  ;;  %v784_v16 = vsel %vm9479_vm9, %v659_v49, 0.0  ;;  %v3509_v57 = vadd.f32 %v3508_v2, %v3507_v31  ;;  %v3228_v55 = vadd.f32 %v2860_v25, %v6889_v45  ;;  %v9481_v31 = vld [vmem:[#allocation30_spill] sm:$0xff]  ;;  %vm9482_vm6 = vmmov %vm9469_vm1  ;;  %v9484_v2 = vld [vmem:[#allocation91_spill] sm:$0xff] }
 0x2c9   :  { %v662_v12 = vsel %vm598_vm12, %v4363_v44, 0.0  ;;  %785 = vadd.xlane.f32.xlu0 %v784_v16  ;;  %v2465_v46 = vsub.f32 0.0, %v2401_v58  ;;  %vm597_vm0 = vcmp.eq.s32.totalorder %v9476_v7, %v471_v39  ;;  %v7142_v62 = vsel %vm9469_vm1, %v9480_v51, 0.0  ;;  %vm9485_vm8 = vmmov %vm9469_vm1  ;;  %v4364_v36 = vld [vmem:[%s9061_s2 + $0x100] sm:$0xff]  ;;  %v9487_v16 = vld [vmem:[#allocation15_spill] sm:$0xff] }
 0x2ca   :  { %v7146_v45 = vsel %vm9482_vm6, %v9481_v31, 0.0  ;;  %v7150_v17 = vsel %vm9485_vm8, %v9484_v2, 0.0  ;;  %v4123_v25 = vpop.eup %4122  ;;  %v2869_v11 = vsel %vm7126_vm5, %v2866_v59, %v2863_v35  ;;  %v2876_v58 = vand.u32 2147483647, %v7012_v38  ;;  %vm9488_vm10 = vmmov %vm9469_vm1  ;;  %v7163_v31 = vpop.permute.xlu1 %548 }
 0x2cb   :  { %9483 = vst [vmem:[#allocation68_spill] sm:$0xff] %v7146_v45  ;;  %9486 = vst [vmem:[#allocation86_spill] sm:$0xff] %v7150_v17  ;;  %v661_v49 = vsel %vm597_vm0, %v4364_v36, 0.0  ;;  %v7160_v44 = vsel %vm9488_vm10, %v9487_v16, 0.0  ;;  %v4125_v39 = vpop.eup %4124  ;;  %v2875_v51 = vmul.f32 %v7012_v38, %v2874_v13  ;;  %v2144_v2 = vcvt.s32.f32 %v3699_v43  ;;  %v477_v21 = vpop.permute.xlu0 %476 }
 0x2cc   :  { %9489 = vst [vmem:[#allocation69_spill] sm:$0xff] %v7160_v44  ;;  %9490 = vst [vmem:[#allocation87_spill] sm:$0xff] %v7163_v31  ;;  %v7167_v59 = vpop.eup %4126  ;;  %v3421_v36 = vsel %vm204_vm7, %v3228_v55, 0.0  ;;  %vm600_vm5 = vcmp.eq.s32.totalorder %v9476_v7, %v6669_v33  ;;  %v3703_v16 = vunpack.c.3.s8 %v6985_v54  ;;  %v2559_v38 = vmul.f32 1.442695, %v2465_v46  ;;  %v9495_v46 = vld [vmem:[#allocation19_spill] sm:$0xff] }
 0x2cd   :  { %vm9491_vm12 = vmmov %vm9469_vm1  ;;  %v7175_v13 = vpop.eup %4128  ;;  %v3229_v43 = vadd.f32 %v2869_v11, %v6935_v5  ;;  %vm599_vm9 = vcmp.eq.s32.totalorder %v9476_v7, %v477_v21  ;;  %vm7180_vm0 = vcmp.lt.f32.partialorder %v2876_v58, 0.0004427343  ;;  %v1525_v55 = vmul.f32 0.6931472, %v4125_v39  ;;  %v4366_v39 = vld [vmem:[%s9061_s2 + $0x118] sm:$0xff] }
 0x2ce   :  { %v790_v27 = vsel %vm9491_vm12, %v661_v49, 0.0  ;;  %vm9492_vm14 = vmmov %vm9469_vm1  ;;  %v2882_v49 = vmul.f32 -0.5, %v7058_v8  ;;  %v2208_v21 = vmax.f32 %v6976_v40, 0.0  ;;  %v2888_v11 = vadd.f32 1.0, %v7167_v59  ;;  %v7210_v45 = vpop.permute.xlu1 %554 }
 0x2cf   :  { %v793_v35 = vsel %vm9492_vm14, %v662_v12, 0.0  ;;  %791 = vadd.xlane.f32.xlu1 %v790_v27  ;;  %v2872_v12 = vmul.f32 0.6931472, %v4123_v25  ;;  %v4365_v27 = vld [vmem:[%s9061_s2 + $0x110] sm:$0xff]  ;;  %vm9496_vm7 = vmmov %vm9469_vm1  ;;  %v7191_v5 = vpop.eup %4130  ;;  %v3510_v25 = vsel %vm3460_vm2, %v3421_v36, 0.0  ;;  %v483_v17 = vpop.permute.xlu0 %482  ;;  %4136 = vpow2.f32 %v2559_v38  ;;  %v4367_v38 = vld [vmem:[%s9061_s2 + $0x120] sm:$0xff] }
 0x2d0   :  { %794 = vadd.xlane.f32.xlu0 %v793_v35  ;;  %v663_v35 = vsel %vm599_vm9, %v4365_v27, 0.0  ;;  %v7189_v44 = vsel %vm9496_vm7, %v9495_v46, 0.0  ;;  %v664_v27 = vsel %vm600_vm5, %v4366_v39, 0.0  ;;  %v2272_v46 = vmul.f32 %v2144_v2, %v6976_v40  ;;  %vm9499_vm12 = vmmov %vm9469_vm1  ;;  %v9502_v39 = vld [vmem:[#allocation56_spill] sm:$0xff] }
 0x2d1   :  { %9497 = vst [vmem:[#allocation107_spill] sm:$0xff] %v7189_v44  ;;  %v796_v58 = vsel %vm9469_vm1, %v663_v35, 0.0  ;;  %v2146_v44 = vcvt.s32.f32 %v3703_v16  ;;  %v3422_v36 = vsel %vm205_vm11, %v3229_v43, 0.0  ;;  %v2878_v35 = vsel %vm7180_vm0, %v2875_v51, %v2872_v12  ;;  %v4368_v12 = vld [vmem:[%s9061_s2 + $0x128] sm:$0xff]  ;;  %vm9503_vm9 = vmmov %vm9469_vm1 }
 0x2d2   :  { %v2883_v31 = vadd.f32 1.0, %v2882_v49  ;;  %vm601_vm6 = vcmp.eq.s32.totalorder %v9476_v7, %v483_v17  ;;  %v4133_v33 = vpop.eup %4132  ;;  %v3511_v40 = vadd.f32 %v3510_v25, %v3509_v57  ;;  %vm602_vm8 = vcmp.eq.s32.totalorder %v9476_v7, %v6714_v28  ;;  %v4370_v28 = vld [vmem:[%s9061_s2 + $0x148] sm:$0xff]  ;;  %vm9505_vm0 = vmmov %vm9469_vm1 }
 0x2d3   :  { %1394 = vadd.xlane.f32.xlu1 %v9498_v9  ;;  %v2885_v9 = vand.u32 2147483647, %v7058_v8  ;;  %vm604_vm10 = vcmp.eq.s32.totalorder %v9476_v7, %v6759_v47  ;;  %v7218_v26 = vpop.eup %4134  ;;  %vm606_vm11 = vcmp.eq.s32.totalorder %v9476_v7, %v6798_v22  ;;  %4138 = vlog2.f32 %v2888_v11  ;;  %vm9506_vm1 = vmmov %vm9505_vm0 }
 0x2d4   :  { %797 = vadd.xlane.f32.xlu0 %v796_v58  ;;  %v2210_v51 = vmax.f32 %v7025_v6, 0.0  ;;  %v799_v17 = vsel %vm9499_vm12, %v664_v27, 0.0  ;;  %v3512_v57 = vsel %vm3460_vm2, %v3422_v36, 0.0  ;;  %v3230_v2 = vadd.f32 %v2878_v35, %v7065_v14  ;;  %v7259_v58 = vpop.permute.xlu1 %560  ;;  %v9504_v35 = vld [vmem:[#allocation95_spill] sm:$0xff]  ;;  %vm9516_vm12 = vmmov %vm9505_vm0 }
 0x2d5   :  { %v2274_v16 = vmul.f32 %v2146_v44, %v7025_v6  ;;  %v665_v43 = vsel %vm601_vm6, %v4367_v38, 0.0  ;;  %v666_v49 = vsel %vm602_vm8, %v4368_v12, 0.0  ;;  %v2881_v53 = vmul.f32 0.6931472, %v4133_v33  ;;  %v489_v44 = vpop.permute.xlu0 %488  ;;  %vm9507_vm6 = vmmov %vm9505_vm0 }
 0x2d6   :  { %v2884_v14 = vmul.f32 %v7058_v8, %v2883_v31  ;;  %v7238_v6 = vsub.f32 %v2208_v21, %v2272_v46  ;;  %vm7240_vm14 = vcmp.lt.f32.partialorder %v2885_v9, 0.0004427343  ;;  %v670_v8 = vsel %vm606_vm11, %v4370_v28, 0.0  ;;  %vm9511_vm8 = vmmov %vm9505_vm0  ;;  %v4372_v28 = vld [vmem:[%s9061_s2 + $0x130] sm:$0xff] }
 0x2d7   :  { %1397 = vadd.xlane.f32.xlu1 %v7099_v41  ;;  %v4369_v41 = vld [vmem:[%s9061_s2 + $0x138] sm:$0xff]  ;;  %v2906_v31 = vadd.f32 1.0, %v7218_v26  ;;  %v3513_v21 = vadd.f32 %v3512_v57, %v3511_v40  ;;  %vm608_vm5 = vcmp.eq.s32.totalorder %v9476_v7, %v6838_v23  ;;  %v7262_v27 = vadd.f32 %v1525_v55, %v9502_v39  ;;  %v9510_v57 = vld [vmem:[#allocation82_spill] sm:$0xff]  ;;  %vm9515_vm11 = vmmov %vm9505_vm0 }
 0x2d8   :  { %800 = vadd.xlane.f32.xlu0 %v799_v17  ;;  %v668_v11 = vsel %vm604_vm10, %v4369_v41, 0.0  ;;  %v802_v47 = vsel %vm9503_vm9, %v665_v43, 0.0  ;;  %v3423_v46 = vsel %vm206_vm3, %v3230_v2, 0.0  ;;  %v7268_v36 = vsub.f32 %v2210_v51, %v2274_v16  ;;  %v4371_v40 = vld [vmem:[%s9061_s2 + $0x158] sm:$0xff]  ;;  %v9508_v51 = vld [vmem:[#allocation32_spill] sm:$0xff]  ;;  %vm9509_vm3 = vmmov %vm9505_vm0  ;;  %v7294_v38 = vpop.xlane.xlu1 %1385 }
 0x2d9   :  { %v7271_v22 = vadd.s32 248, %v5492_v29  ;;  %v805_v23 = vsel %vm9505_vm0, %v666_v49, 0.0  ;;  %v2887_v55 = vsel %vm7240_vm14, %v2884_v14, %v2881_v53  ;;  %vm603_vm7 = vcmp.eq.s32.totalorder %v9476_v7, %v489_v44  ;;  %v495_v12 = vpop.permute.xlu0 %494  ;;  %v9512_v49 = vld [vmem:[#allocation23_spill] sm:$0xff]  ;;  %vm9513_vm10 = vmmov %vm9505_vm0  ;;  %v9514_v14 = vld [vmem:[#allocation26_spill] sm:$0xff] }
 0x2da   :  { %v811_v33 = vsel %vm9506_vm1, %v668_v11, 0.0  ;;  %v7280_v4 = vsel %vm9507_vm6, %v670_v8, 0.0  ;;  %v672_v9 = vsel %vm608_vm5, %v4371_v40, 0.0  ;;  %4140 = vlog2.f32 %v2906_v31  ;;  %v7308_v41 = vld [vmem:[%s9063_s4 + $0x100] sm:$0xff]  ;;  %v9517_v39 = vld [vmem:[#allocation33_spill] sm:$0xff]  ;;  %vm9518_vm14 = vmmov %vm9505_vm0 }
 0x2db   :  { %1400 = vadd.xlane.f32.xlu1 %v9504_v35  ;;  %v7287_v17 = vsel %vm9509_vm3, %v9508_v51, 0.0  ;;  %v7291_v2 = vsel %vm9511_vm8, %v9510_v57, 0.0  ;;  %v3514_v16 = vsel %vm3460_vm2, %v3423_v46, 0.0  ;;  %v2891_v43 = vmul.f32 -0.5, %v7167_v59  ;;  %vm9519_vm9 = vmmov %vm9505_vm0 }
 0x2dc   :  { %803 = vadd.xlane.f32.xlu0 %v802_v47  ;;  %v7299_v53 = vsel %vm9513_vm10, %v9512_v49, 0.0  ;;  %v7303_v25 = vsel %vm9515_vm11, %v9514_v14, 0.0  ;;  %v3231_v11 = vadd.f32 %v2887_v55, %v7093_v1  ;;  %v667_v8 = vsel %vm603_vm7, %v4372_v28, 0.0  ;;  %v7325_v46 = vpop.eup %4136  ;;  %vm9521_vm7 = vmmov %vm9505_vm0  ;;  %v7345_v55 = vld [vmem:[%s9063_s4 + $0x108] sm:$0xff]  ;;  %v9525_v28 = vld [vmem:[#allocation100_spill] sm:$0xff] }
 0x2dd   :  { %v7319_v31 = vsel %vm9516_vm12, %v6477_v48, 0.0  ;;  %v7323_v47 = vsel %vm9518_vm14, %v9517_v39, 0.0  ;;  %vm610_vm5 = vcmp.eq.s32.totalorder %v9476_v7, %v6873_v3  ;;  %v7330_v1 = vsel %vm9519_vm9, %v672_v9, 0.0  ;;  %vm9523_vm1 = vmmov %vm9505_vm0  ;;  %v501_v61 = vpop.permute.xlu0 %500  ;;  %v9526_v3 = vld [vmem:[#allocation61_spill] sm:$0xff]  ;;  %v9527_v39 = vld [vmem:[#allocation58_spill] sm:$0xff] }
 0x2de   :  { %v1523_v44 = vmul.f32 0.6931472, %v7047_v34  ;;  %v3515_v48 = vadd.f32 %v3514_v16, %v3513_v21  ;;  %v7339_v35 = vsel %vm9521_vm7, %v6671_v20, 0.0  ;;  %v2403_v40 = vand.u32 2147483647, %v7308_v41  ;;  %vm9529_vm3 = vmmov %vm9505_vm0 }
 0x2df   :  { %1403 = vadd.xlane.f32.xlu1 %v7103_v56  ;;  %v7334_v56 = vsel %vm9505_vm0, %v6588_v15, 0.0  ;;  %9522 = vst [vmem:[#allocation105_spill] sm:$0xff] %v7339_v35  ;;  %v2892_v9 = vadd.f32 1.0, %v2891_v43  ;;  %v808_v15 = vsel %vm9523_vm1, %v667_v8, 0.0  ;;  %v1527_v51 = vmul.f32 0.6931472, %v7004_v24  ;;  %vm9537_vm10 = vmmov %vm9505_vm0 }
 0x2e0   :  { %806 = vadd.xlane.f32.xlu0 %v805_v23  ;;  %9520 = vst [vmem:[#allocation37_spill] sm:$0xff] %v7334_v56  ;;  %v1529_v23 = vmul.f32 0.6931472, %v7017_v19  ;;  %v1531_v34 = vmul.f32 0.6931472, %v7033_v50  ;;  %v4139_v21 = vpop.eup %4138  ;;  %v3424_v20 = vsel %vm207_vm13, %v3231_v11, 0.0  ;;  %v1389_v50 = vpop.xlane.xlu1 %1388  ;;  %vm605_vm13 = vcmp.eq.s32.totalorder %v9476_v7, %v495_v12  ;;  %vm9538_vm14 = vmmov %vm9505_vm0 }
 0x2e1   :  { %v4373_v19 = vld [vmem:[%s9061_s2 + $0x168] sm:$0xff]  ;;  %v2894_v16 = vand.u32 2147483647, %v7167_v59  ;;  %v9524_v43 = vld [vmem:[#allocation97_spill] sm:$0xff]  ;;  %v2897_v24 = vadd.f32 1.0, %v7325_v46  ;;  %v2909_v49 = vmul.f32 -0.5, %v7218_v26  ;;  %vm612_vm6 = vcmp.eq.s32.totalorder %v9476_v7, %v9525_v28 }
 0x2e2   :  { %v674_v57 = vsel %vm610_vm5, %v4373_v19, 0.0  ;;  %v2404_v14 = vand.u32 2147483647, %v7345_v55  ;;  %v1533_v11 = vmul.f32 0.6931472, %v7051_v52  ;;  %v7370_v8 = vadd.f32 %v1523_v44, %v9526_v3  ;;  %v4374_v44 = vld [vmem:[%s9061_s2 + $0x140] sm:$0xff] }
 0x2e3   :  { %1406 = vadd.xlane.f32.xlu1 %v9524_v43  ;;  %v2467_v19 = vsub.f32 0.0, %v2403_v40  ;;  %v3516_v43 = vsel %vm3460_vm2, %v3424_v20, 0.0  ;;  %v2890_v35 = vmul.f32 0.6931472, %v4139_v21  ;;  %v2893_v12 = vmul.f32 %v7167_v59, %v2892_v9  ;;  %v7394_v59 = vld [vmem:[%s9063_s4 + $0x110] sm:$0xff]  ;;  %v4375_v9 = vld [vmem:[%s9061_s2 + $0x178] sm:$0xff] }
 0x2e4   :  { %809 = vadd.xlane.f32.xlu0 %v808_v15  ;;  %v7373_v15 = vadd.f32 %v1529_v23, %v9527_v39  ;;  %v7378_v56 = vsel %vm9529_vm3, %v674_v57, 0.0  ;;  %vm7380_vm8 = vcmp.lt.f32.partialorder %v2894_v16, 0.0004427343  ;;  %v669_v3 = vsel %vm605_vm13, %v4374_v44, 0.0  ;;  %v9532_v23 = vld [vmem:[#allocation63_spill] sm:$0xff]  ;;  %v9533_v57 = vld [vmem:[#allocation65_spill] sm:$0xff] }
 0x2e5   :  { %4142 = vlog2.f32 %v2897_v24  ;;  %v7389_v40 = vadd.f32 %v1527_v51, %v9532_v23  ;;  %v676_v21 = vsel %vm612_vm6, %v4375_v9, 0.0  ;;  %v2910_v20 = vadd.f32 1.0, %v2909_v49  ;;  %v9535_v39 = vld [vmem:[#allocation60_spill] sm:$0xff]  ;;  %v7416_v9 = vpop.permute.xlu0 %506  ;;  %vm9545_vm6 = vmmov %vm9529_vm3 }
 0x2e6   :  { %9528 = vst [vmem:[#allocation74_spill] sm:$0xff] %v7373_v15  ;;  %v7405_v51 = vadd.f32 %v1531_v34, %v9533_v57  ;;  %v7407_v16 = vadd.f32 %v3516_v43, %v3515_v48  ;;  %v2563_v24 = vmul.f32 1.442695, %v2467_v19  ;;  %v7410_v44 = vadd.f32 %v1533_v11, %v9535_v39  ;;  %v9541_v52 = vld [vmem:[#allocation12_spill] sm:$0xff] }
 0x2e7   :  { %1409 = vadd.xlane.f32.xlu1 %v7108_v30  ;;  %v7402_v30 = vpop.xlane.xlu1 %788  ;;  %v1535_v23 = vmul.f32 0.6931472, %v7175_v13  ;;  %v4141_v15 = vpop.eup %4140  ;;  %v2896_v28 = vsel %vm7380_vm8, %v2893_v12, %v2890_v35  ;;  %v2912_v49 = vand.u32 2147483647, %v7218_v26  ;;  %v2405_v34 = vand.u32 2147483647, %v7394_v59  ;;  %vm9547_vm8 = vmmov %vm9529_vm3 }
 0x2e8   :  { %812 = vadd.xlane.f32.xlu0 %v811_v33  ;;  %v2468_v33 = vsub.f32 0.0, %v2404_v14  ;;  %9534 = vst [vmem:[#allocation73_spill] sm:$0xff] %v7405_v51  ;;  %9536 = vst [vmem:[#allocation38_spill] sm:$0xff] %v7410_v44  ;;  %v814_v14 = vsel %vm9537_vm10, %v669_v3, 0.0  ;;  %vm614_vm11 = vcmp.eq.s32.totalorder %v9476_v7, %v6950_v42  ;;  %vm616_vm12 = vcmp.eq.s32.totalorder %v9476_v7, %v6996_v37 }
 0x2e9   :  { %v7426_v13 = vsel %vm9538_vm14, %v676_v21, 0.0  ;;  %v1537_v48 = vmul.f32 0.6931472, %v7191_v5  ;;  %4144 = vlog2.f32 %v7294_v38  ;;  %v2911_v35 = vmul.f32 %v7218_v26, %v2910_v20  ;;  %v4378_v20 = vld [vmem:[%s9061_s2 + $0x198] sm:$0xff]  ;;  %v7472_v57 = vpop.permute.xlu0 %512 }
 0x2ea   :  { %vm607_vm5 = vcmp.eq.s32.totalorder %v9476_v7, %v501_v61  ;;  %v2565_v11 = vmul.f32 1.442695, %v2468_v33  ;;  %vm618_vm9 = vcmp.eq.s32.totalorder %v9476_v7, %v7040_v63  ;;  %v3232_v19 = vadd.f32 %v2896_v28, %v7238_v6  ;;  %v4376_v6 = vld [vmem:[%s9061_s2 + $0x150] sm:$0xff] }
 0x2eb   :  { %1412 = vadd.xlane.f32.xlu1 %v7112_v60  ;;  %v2908_v43 = vmul.f32 0.6931472, %v4141_v15  ;;  %4146 = vpow2.f32 %v2563_v24  ;;  %vm7435_vm0 = vcmp.lt.f32.partialorder %v2912_v49, 0.0004427343  ;;  %v1392_v12 = vpop.xlane.xlu1 %1391  ;;  %v3702_v5 = vunpack.c.2.s8 %v6985_v54  ;;  %v9543_v54 = vld [vmem:[#allocation62_spill] sm:$0xff]  ;;  %v9548_v49 = vld [vmem:[#allocation85_spill] sm:$0xff] }
 0x2ec   :  { %815 = vadd.xlane.f32.xlu0 %v814_v14  ;;  %v2469_v38 = vsub.f32 0.0, %v2405_v34  ;;  %v7441_v26 = vadd.f32 %v1535_v23, %v9541_v52  ;;  %4148 = vlog2.f32 %v1389_v50  ;;  %vm210_vm7 = vcmp.lt.s32.totalorder %v7271_v22, %v5530_v10  ;;  %v4377_v50 = vld [vmem:[%s9061_s2 + $0x188] sm:$0xff]  ;;  %v9546_v23 = vld [vmem:[#allocation68_spill] sm:$0xff]  ;;  %v4380_v60 = vld [vmem:[%s9061_s2 + $0x1b8] sm:$0xff] }
 0x2ed   :  { %v671_v61 = vsel %vm607_vm5, %v4376_v6, 0.0  ;;  %v2900_v15 = vmul.f32 -0.5, %v7325_v46  ;;  %v7452_v3 = vadd.f32 %v1537_v48, %v9543_v54  ;;  %v678_v21 = vsel %vm614_vm11, %v4377_v50, 0.0  ;;  %v7498_v48 = vld [vmem:[%s9063_s4 + $0x118] sm:$0xff]  ;;  %v7522_v6 = vpop.permute.xlu0 %518  ;;  %v4382_v50 = vld [vmem:[%s9061_s2 + $0x1d0] sm:$0xff] }
 0x2ee   :  { %9542 = vst [vmem:[#allocation39_spill] sm:$0xff] %v7441_v26  ;;  %4150 = vpow2.f32 %v2565_v11  ;;  %vm620_vm1 = vcmp.eq.s32.totalorder %v9476_v7, %v7067_v18  ;;  %v3425_v42 = vsel %vm208_vm4, %v3232_v19, 0.0  ;;  %v2914_v37 = vsel %vm7435_vm0, %v2911_v35, %v2908_v43  ;;  %vm9549_vm4 = vmmov %vm9529_vm3  ;;  %v9550_v11 = vld [vmem:[#allocation87_spill] sm:$0xff] }
 0x2ef   :  { %1415 = vadd.xlane.f32.xlu1 %v7142_v62  ;;  %9544 = vst [vmem:[#allocation78_spill] sm:$0xff] %v7452_v3  ;;  %v680_v62 = vsel %vm616_vm12, %v4378_v20, 0.0  ;;  %4152 = vlog2.f32 %v1392_v12  ;;  %vm621_vm13 = vcmp.eq.s32.totalorder %v9476_v7, %v7119_v32  ;;  %v820_v63 = vsel %vm9545_vm6, %v671_v61, 0.0  ;;  %vm9551_vm12 = vmmov %vm9529_vm3  ;;  %v9552_v61 = vld [vmem:[#allocation36_spill] sm:$0xff] }
 0x2f0   :  { %818 = vadd.xlane.f32.xlu0 %v7280_v4  ;;  %v4379_v4 = vld [vmem:[%s9061_s2 + $0x1a8] sm:$0xff]  ;;  %v2145_v24 = vcvt.s32.f32 %v3702_v5  ;;  %v2567_v39 = vmul.f32 1.442695, %v2469_v38  ;;  %v7486_v28 = vsel %vm9529_vm3, %v678_v21, 0.0  ;;  %v7489_v0 = vsel %vm9547_vm8, %v680_v62, 0.0  ;;  %v4381_v5 = vld [vmem:[%s9061_s2 + $0x1c0] sm:$0xff]  ;;  %vm9557_vm0 = vmmov %vm9529_vm3 }
 0x2f1   :  { %v682_v33 = vsel %vm618_vm9, %v4379_v4, 0.0  ;;  %v7493_v14 = vsel %vm9549_vm4, %v9548_v49, 0.0  ;;  %v2901_v34 = vadd.f32 1.0, %v2900_v15  ;;  %vm623_vm10 = vcmp.eq.s32.totalorder %v9476_v7, %v9550_v11  ;;  %v4383_v21 = vld [vmem:[%s9061_s2 + $0x160] sm:$0xff]  ;;  %vm9560_vm6 = vmmov %vm9557_vm0 }
 0x2f2   :  { %v4143_v35 = vpop.eup %4142  ;;  %v3234_v19 = vadd.f32 %v2914_v37, %v7268_v36  ;;  %vm609_vm11 = vcmp.eq.s32.totalorder %v9476_v7, %v7416_v9  ;;  %v2903_v43 = vand.u32 2147483647, %v7325_v46  ;;  %v684_v12 = vsel %vm620_vm1, %v4380_v60, 0.0  ;;  %v9553_v62 = vld [vmem:[#allocation86_spill] sm:$0xff]  ;;  %vm9558_vm1 = vmmov %vm9557_vm0  ;;  %v4385_v60 = vld [vmem:[%s9061_s2 + $0x1f0] sm:$0xff] }
 0x2f3   :  { %1418 = vadd.xlane.f32.xlu1 %v9546_v23  ;;  %v685_v36 = vsel %vm621_vm13, %v4381_v5, 0.0  ;;  %v3518_v38 = vsel %vm3460_vm2, %v3425_v42, 0.0  ;;  %v7520_v52 = vsel %vm9551_vm12, %v682_v33, 0.0  ;;  %v2209_v15 = vmax.f32 %v9552_v61, 0.0  ;;  %vm9559_vm13 = vmmov %vm9557_vm0  ;;  %v7575_v11 = vld [vmem:[%s9063_s4 + $0x120] sm:$0xff] }
 0x2f4   :  { %821 = vadd.xlane.f32.xlu0 %v820_v63  ;;  %v2273_v18 = vmul.f32 %v2145_v24, %v9552_v61  ;;  %4154 = vpow2.f32 %v2567_v39  ;;  %v2406_v54 = vand.u32 2147483647, %v7498_v48  ;;  %v687_v32 = vsel %vm623_vm10, %v4382_v50, 0.0  ;;  %v9556_v63 = vld [vmem:[#allocation34_spill] sm:$0xff]  ;;  %vm9561_vm3 = vmmov %vm9557_vm0 }
 0x2f5   :  { %v673_v20 = vsel %vm609_vm11, %v4383_v21, 0.0  ;;  %v2899_v4 = vmul.f32 0.6931472, %v4143_v35  ;;  %v2902_v33 = vmul.f32 %v7325_v46, %v2901_v34  ;;  %vm625_vm14 = vcmp.eq.s32.totalorder %v9476_v7, %v7210_v45  ;;  %v7598_v45 = vld [vmem:[%s9064_s5 + $0x40] sm:$0xff]   ;;  %vm9564_vm4 = vmmov %vm9557_vm0 }
 0x2f6   :  { %vm627_vm5 = vcmp.eq.s32.totalorder %v9476_v7, %v7259_v58  ;;  %v3427_v42 = vsel %vm210_vm7, %v3234_v19, 0.0  ;;  %vm7549_vm9 = vcmp.lt.f32.partialorder %v2903_v43, 0.0004427343  ;;  %v4145_v37 = vpop.eup %4144  ;;  %v7558_v46 = vsel %vm9557_vm0, %v9556_v63, 0.0  ;;  %v4384_v19 = vld [vmem:[%s9061_s2 + $0x1e0] sm:$0xff]  ;;  %vm9565_vm10 = vmmov %vm9557_vm0 }
 0x2f7   :  { %1421 = vadd.xlane.f32.xlu1 %v9553_v62  ;;  %v7561_v24 = vsel %vm9558_vm1, %v684_v12, 0.0  ;;  %v7564_v39 = vsel %vm9559_vm13, %v685_v36, 0.0  ;;  %v826_v49 = vsel %vm9560_vm6, %v673_v20, 0.0  ;;  %v7570_v34 = vsel %vm9561_vm3, %v687_v32, 0.0  ;;  %v9562_v36 = vld [vmem:[#allocation69_spill] sm:$0xff]  ;;  %v9563_v32 = vld [vmem:[#allocation35_spill] sm:$0xff]  ;;  %vm9566_vm11 = vmmov %vm9557_vm0 }
 0x2f8   :  { %824 = vadd.xlane.f32.xlu0 %v7330_v1  ;;  %v7554_v1 = vadd.f32 %v3518_v38, %v7407_v16  ;;  %v7566_v23 = vpop.eup %4146  ;;  %v2337_v35 = vsub.f32 %v2209_v15, %v2273_v18  ;;  %v2470_v16 = vsub.f32 0.0, %v2406_v54  ;;  %v689_v43 = vsel %vm625_vm14, %v4384_v19, 0.0  ;;  %v7604_v18 = vpop.permute.xlu0 %524  ;;  %vm9570_vm14 = vmmov %vm9557_vm0 }
 0x2f9   :  { %v691_v12 = vsel %vm627_vm5, %v4385_v60, 0.0  ;;  %v7590_v5 = vsel %vm3460_vm2, %v3427_v42, 0.0  ;;  %v2905_v38 = vsel %vm7549_vm9, %v2902_v33, %v2899_v4  ;;  %v4149_v61 = vpop.eup %4148  ;;  %v1539_v15 = vmul.f32 0.6931472, %v4145_v37  ;;  %v4386_v37 = vld [vmem:[%s9061_s2 + $0x170] sm:$0xff]  ;;  %v7634_v60 = vld [vmem:[%s9063_s4 + $0x128] sm:$0xff]  ;;  %vm9576_vm5 = vmmov %vm9557_vm0 }
 0x2fa   :  { %v1685_v58 = vsub.f32 %v7262_v27, %v7402_v30  ;;  %vm611_vm8 = vcmp.eq.s32.totalorder %v9476_v7, %v7472_v57  ;;  %v3707_v54 = vunpack.c.1.s8 %v7598_v45  ;;  %v7611_v21 = vsel %vm9564_vm4, %v9563_v32, 0.0  ;;  %vm9581_vm4 = vmmov %vm9558_vm1 }
 0x2fb   :  { %1424 = vadd.xlane.f32.xlu1 %v9562_v36  ;;  %v7607_v50 = vpop.eup %4150  ;;  %v7614_v20 = vadd.s32 240, %v5492_v29  ;;  %v2915_v62 = vadd.f32 1.0, %v7566_v23  ;;  %v2407_v27 = vand.u32 2147483647, %v7575_v11  ;;  %v7619_v57 = vsel %vm9565_vm10, %v689_v43, 0.0  ;;  %v9568_v36 = vld [vmem:[#allocation13_spill] sm:$0xff] }
 0x2fc   :  { %827 = vadd.xlane.f32.xlu0 %v826_v49  ;;  %v4153_v30 = vpop.eup %4152  ;;  %v7622_v4 = vsel %vm9566_vm11, %v691_v12, 0.0  ;;  %v3233_v33 = vadd.f32 %v2905_v38, %v2337_v35  ;;  %v2569_v42 = vmul.f32 1.442695, %v2470_v16  ;;  %v1541_v9 = vmul.f32 0.6931472, %v4149_v61  ;;  %v9567_v49 = vld [vmem:[#allocation107_spill] sm:$0xff]  ;;  %v7645_v32 = vpop.permute.xlu0 %530 }
 0x2fd   :  { %v675_v63 = vsel %vm611_vm8, %v4386_v37, 0.0  ;;  %v3706_v19 = vunpack.c.0.s8 %v7598_v45  ;;  %v3710_v43 = vunpack.c.2.s8 %v7598_v45  ;;  %v1749_v35 = vsel %vm210_vm7, %v1685_v58, 0.0 }
 0x2fe   :  { %v2148_v16 = vcvt.s32.f32 %v3707_v54  ;;  %v2924_v12 = vadd.f32 1.0, %v7607_v50  ;;  %v7641_v38 = vadd.f32 %v1539_v15, %v9568_v36  ;;  %vm209_vm12 = vcmp.lt.s32.totalorder %v7614_v20, %v5530_v10  ;;  %v9574_v36 = vld [vmem:[#allocation20_spill] sm:$0xff] }
 0x2ff   :  { %1427 = vadd.xlane.f32.xlu1 %v9567_v49  ;;  %4156 = vlog2.f32 %v2915_v62  ;;  %v2471_v61 = vsub.f32 0.0, %v2407_v27  ;;  %v832_v37 = vsel %vm9570_vm14, %v675_v63, 0.0  ;;  %v3426_v22 = vsel %vm209_vm12, %v3233_v33, 0.0  ;;  %v7660_v27 = vld [vmem:[%s9063_s4 + $0x130] sm:$0xff] }
 0x300   :  { %830 = vadd.xlane.f32.xlu0 %v7378_v56  ;;  %9569 = vst [vmem:[#allocation79_spill] sm:$0xff] %v7641_v38  ;;  %v1543_v56 = vmul.f32 0.6931472, %v4153_v30  ;;  %4158 = vpow2.f32 %v2569_v42  ;;  %v2408_v58 = vand.u32 2147483647, %v7634_v60  ;;  %vm613_vm7 = vcmp.eq.s32.totalorder %v9476_v7, %v7522_v6  ;;  %v9571_v30 = vld [vmem:[#allocation64_spill] sm:$0xff] }
 0x301   :  { %v7652_v54 = vpop.eup %4154  ;;  %v2147_v15 = vcvt.s32.f32 %v3706_v19  ;;  %v2149_v62 = vcvt.s32.f32 %v3710_v43  ;;  %v7663_v33 = vadd.f32 %v1541_v9, %v9571_v30  ;;  %v7666_v42 = vsel %vm1783_vm15, %v1749_v35, 0.0  ;;  %v4387_v9 = vld [vmem:[%s9061_s2 + $0x180] sm:$0xff] }
 0x302   :  { %9573 = vst [vmem:[#allocation42_spill] sm:$0xff] %v7666_v42  ;;  %v2212_v63 = vmax.f32 %v7345_v55, 0.0  ;;  %v2276_v49 = vmul.f32 %v2148_v16, %v7345_v55  ;;  %4160 = vlog2.f32 %v2924_v12  ;;  %v2211_v19 = vmax.f32 %v7308_v41, 0.0  ;;  %v7756_v38 = vld [vmem:[%s9063_s4 + $0x140] sm:$0xff] }
 0x303   :  { %1430 = vadd.xlane.f32.xlu1 %v7287_v17  ;;  %9572 = vst [vmem:[#allocation41_spill] sm:$0xff] %v7663_v33  ;;  %v3520_v17 = vsel %vm3460_vm2, %v3426_v22, 0.0  ;;  %v2571_v43 = vmul.f32 1.442695, %v2471_v61  ;;  %v677_v35 = vsel %vm613_vm7, %v4387_v9, 0.0  ;;  %v2933_v30 = vadd.f32 1.0, %v7652_v54  ;;  %vm9584_vm7 = vmmov %vm9558_vm1 }
 0x304   :  { %833 = vadd.xlane.f32.xlu0 %v832_v37  ;;  %v7673_v37 = vadd.f32 %v1543_v56, %v9574_v36  ;;  %v2472_v55 = vsub.f32 0.0, %v2408_v58  ;;  %v2409_v16 = vand.u32 2147483647, %v7660_v27  ;;  %v2275_v12 = vmul.f32 %v2147_v15, %v7308_v41  ;;  %v7689_v36 = vpop.permute.xlu0 %536  ;;  %v7703_v41 = vld [vmem:[%s9064_s5 + $0x48] sm:$0xff]  }
 0x305   :  { %v2213_v56 = vmax.f32 %v7394_v59, 0.0  ;;  %v2277_v61 = vmul.f32 %v2149_v62, %v7394_v59  ;;  %v3711_v22 = vunpack.c.3.s8 %v7598_v45  ;;  %v3521_v6 = vadd.f32 %v3520_v17, %v7554_v1  ;;  %v7715_v62 = vld [vmem:[%s9063_s4 + $0x138] sm:$0xff] }
 0x306   :  { %9575 = vst [vmem:[#allocation84_spill] sm:$0xff] %v7673_v37  ;;  %v7692_v9 = vsub.f32 %v2212_v63, %v2276_v49  ;;  %v7695_v58 = vadd.s32 264, %v5492_v29  ;;  %v838_v59 = vsel %vm9576_vm5, %v677_v35, 0.0  ;;  %v7708_v45 = vadd.s32 272, %v5492_v29 }
 0x307   :  { %1433 = vadd.xlane.f32.xlu1 %v7291_v2  ;;  %v7698_v2 = vadd.s32 256, %v5492_v29  ;;  %4162 = vpow2.f32 %v2571_v43  ;;  %vm615_vm9 = vcmp.eq.s32.totalorder %v9476_v7, %v7604_v18  ;;  %v2573_v1 = vmul.f32 1.442695, %v2472_v55 }
 0x308   :  { %836 = vadd.xlane.f32.xlu0 %v7426_v13  ;;  %v2918_v13 = vmul.f32 -0.5, %v7566_v23  ;;  %4164 = vlog2.f32 %v2933_v30  ;;  %v2473_v15 = vsub.f32 0.0, %v2409_v16  ;;  %v7718_v63 = vsub.f32 %v2211_v19, %v2275_v12 }
 0x309   :  { %v7720_v49 = vsub.f32 %v2213_v56, %v2277_v61  ;;  %v2150_v17 = vcvt.s32.f32 %v3711_v22  ;;  %v3714_v43 = vunpack.c.0.s8 %v7703_v41  ;;  %v2927_v35 = vmul.f32 -0.5, %v7607_v50 }
 0x30a   :  { %v2921_v30 = vand.u32 2147483647, %v7566_v23  ;;  %v7726_v55 = vadd.f32 %v7590_v5, %v3521_v6  ;;  %v7729_v16 = vadd.s32 280, %v5492_v29  ;;  %v2919_v12 = vadd.f32 1.0, %v2918_v13  ;;  %v7741_v5 = vpop.permute.xlu0 %545 }
 0x30b   :  { %1436 = vadd.xlane.f32.xlu1 %v7299_v53  ;;  %v4388_v53 = vld [vmem:[%s9061_s2 + $0x190] sm:$0xff]  ;;  %v2214_v56 = vmax.f32 %v7498_v48, 0.0  ;;  %v2410_v61 = vand.u32 2147483647, %v7715_v62  ;;  %vm617_vm0 = vcmp.eq.s32.totalorder %v9476_v7, %v7645_v32  ;;  %v2930_v6 = vand.u32 2147483647, %v7607_v50 }
 0x30c   :  { %839 = vadd.xlane.f32.xlu0 %v838_v59  ;;  %v679_v19 = vsel %vm615_vm9, %v4388_v53, 0.0  ;;  %v4157_v22 = vpop.eup %4156  ;;  %4166 = vpow2.f32 %v2573_v1  ;;  %v2575_v59 = vmul.f32 1.442695, %v2473_v15  ;;  %v2278_v18 = vmul.f32 %v2150_v17, %v7498_v48  ;;  %v4389_v17 = vld [vmem:[%s9061_s2 + $0x1a0] sm:$0xff] }
 0x30d   :  { %v7744_v37 = vpop.eup %4158  ;;  %v2151_v13 = vcvt.s32.f32 %v3714_v43  ;;  %v7750_v53 = vadd.s32 288, %v5492_v29  ;;  %v3715_v33 = vunpack.c.1.s8 %v7703_v41  ;;  %v844_v1 = vsel %vm9558_vm1, %v679_v19, 0.0 }
 0x30e   :  { %v2928_v15 = vadd.f32 1.0, %v2927_v35  ;;  %vm7759_vm13 = vcmp.lt.f32.partialorder %v2921_v30, 0.0004427343  ;;  %v681_v43 = vsel %vm617_vm0, %v4389_v17, 0.0  ;;  %vm619_vm6 = vcmp.eq.s32.totalorder %v9476_v7, %v7689_v36  ;;  %v7779_v42 = vpop.permute.xlu0 %551  ;;  %vm9586_vm0 = vmmov %vm9558_vm1 }
 0x30f   :  { %1439 = vadd.xlane.f32.xlu1 %v7303_v25  ;;  %v4161_v48 = vpop.eup %4160  ;;  %v2920_v35 = vmul.f32 %v7566_v23, %v2919_v12  ;;  %v2474_v30 = vsub.f32 0.0, %v2410_v61  ;;  %v2917_v19 = vmul.f32 0.6931472, %v4157_v22  ;;  %v2942_v3 = vadd.f32 1.0, %v7744_v37  ;;  %v4390_v22 = vld [vmem:[%s9061_s2 + $0x1b0] sm:$0xff] }
 0x310   :  { %842 = vadd.xlane.f32.xlu0 %v7486_v28  ;;  %v2936_v28 = vmul.f32 -0.5, %v7652_v54  ;;  %4168 = vpow2.f32 %v2575_v59  ;;  %v2411_v26 = vand.u32 2147483647, %v7756_v38  ;;  %v2939_v44 = vand.u32 2147483647, %v7652_v54 }
 0x311   :  { %v2215_v32 = vmax.f32 %v7575_v11, 0.0  ;;  %v2279_v17 = vmul.f32 %v2151_v13, %v7575_v11  ;;  %v2152_v51 = vcvt.s32.f32 %v3715_v33  ;;  %v2926_v23 = vmul.f32 0.6931472, %v4161_v48 }
 0x312   :  { %v2929_v12 = vmul.f32 %v7607_v50, %v2928_v15  ;;  %vm7782_vm3 = vcmp.lt.f32.partialorder %v2930_v6, 0.0004427343  ;;  %vm211_vm8 = vcmp.lt.s32.totalorder %v7698_v2, %v5530_v10  ;;  %v683_v11 = vsel %vm619_vm6, %v4390_v22, 0.0  ;;  %vm9587_vm6 = vmmov %vm9586_vm0 }
 0x313   :  { %1442 = vadd.xlane.f32.xlu1 %v7319_v31  ;;  %v2937_v31 = vadd.f32 1.0, %v2936_v28  ;;  %v850_v33 = vsel %vm9581_vm4, %v681_v43, 0.0  ;;  %v7795_v59 = vsub.f32 %v2214_v56, %v2278_v18  ;;  %v2577_v50 = vmul.f32 1.442695, %v2474_v30  ;;  %v7805_v28 = vld [vmem:[%s9063_s4 + $0x148] sm:$0xff]  ;;  %vm9591_vm4 = vmmov %vm9586_vm0 }
 0x314   :  { %845 = vadd.xlane.f32.xlu0 %v844_v1  ;;  %v7797_v6 = vpop.eup %4162  ;;  %v2923_v13 = vsel %vm7759_vm13, %v2920_v35, %v2917_v19  ;;  %4170 = vlog2.f32 %v2942_v3  ;;  %v3718_v1 = vunpack.c.2.s8 %v7703_v41  ;;  %v2475_v15 = vsub.f32 0.0, %v2411_v26  ;;  %v558_v35 = vpop.permute.xlu0 %557 }
 0x315   :  { %v4165_v36 = vpop.eup %4164  ;;  %vm212_vm10 = vcmp.lt.s32.totalorder %v7695_v58, %v5530_v10  ;;  %vm7811_vm11 = vcmp.lt.f32.partialorder %v2939_v44, 0.0004427343  ;;  %v7815_v3 = vsub.f32 %v2215_v32, %v2279_v17  ;;  %v2216_v26 = vmax.f32 %v7634_v60, 0.0  ;;  %v7834_v32 = vld [vmem:[%s9063_s4 + $0x150] sm:$0xff] }
 0x316   :  { %v2280_v18 = vmul.f32 %v2152_v51, %v7634_v60  ;;  %vm622_vm14 = vcmp.eq.s32.totalorder %v9476_v7, %v7741_v5  ;;  %v2938_v25 = vmul.f32 %v7652_v54, %v2937_v31  ;;  %v3235_v44 = vadd.f32 %v2923_v13, %v7718_v63  ;;  %v4391_v63 = vld [vmem:[%s9061_s2 + $0x1c8] sm:$0xff] }
 0x317   :  { %1445 = vadd.xlane.f32.xlu1 %v7323_v47  ;;  %v856_v47 = vsel %vm9584_vm7, %v683_v11, 0.0  ;;  %v2951_v48 = vadd.f32 1.0, %v7797_v6  ;;  %4172 = vpow2.f32 %v2577_v50  ;;  %v2412_v43 = vand.u32 2147483647, %v7805_v28 }
 0x318   :  { %848 = vadd.xlane.f32.xlu0 %v7489_v0  ;;  %v2932_v0 = vsel %vm7782_vm3, %v2929_v12, %v2926_v23  ;;  %v2935_v30 = vmul.f32 0.6931472, %v4165_v36  ;;  %v7829_v51 = vadd.s32 296, %v5492_v29  ;;  %v2153_v60 = vcvt.s32.f32 %v3718_v1 }
 0x319   :  { %v2579_v19 = vmul.f32 1.442695, %v2475_v15  ;;  %v7836_v54 = vpop.eup %4166  ;;  %v686_v17 = vsel %vm622_vm14, %v4391_v63, 0.0  ;;  %v7845_v23 = vsub.f32 %v2216_v26, %v2280_v18  ;;  %v2217_v12 = vmax.f32 %v7660_v27, 0.0  ;;  %v9585_v15 = vld [vmem:[#allocation37_spill] sm:$0xff]  ;;  %v564_v18 = vpop.permute.xlu0 %563  ;;  %vm9592_vm14 = vmmov %vm9586_vm0 }
 0x31a   :  { %v7849_v61 = vadd.s32 304, %v5492_v29  ;;  %vm624_vm5 = vcmp.eq.s32.totalorder %v9476_v7, %v7779_v42  ;;  %v3236_v31 = vadd.f32 %v2932_v0, %v7692_v9  ;;  %vm213_vm9 = vcmp.lt.s32.totalorder %v7708_v45, %v5530_v10 }
 0x31b   :  { %1448 = vadd.xlane.f32.xlu1 %v7493_v14  ;;  %v2945_v5 = vmul.f32 -0.5, %v7744_v37  ;;  %v3719_v14 = vunpack.c.3.s8 %v7703_v41  ;;  %v3428_v22 = vsel %vm211_vm8, %v3235_v44, 0.0  ;;  %4174 = vlog2.f32 %v2951_v48  ;;  %v4392_v41 = vld [vmem:[%s9061_s2 + $0x1d8] sm:$0xff] }
 0x31c   :  { %851 = vadd.xlane.f32.xlu0 %v850_v33  ;;  %v2476_v11 = vsub.f32 0.0, %v2412_v43  ;;  %v2413_v33 = vand.u32 2147483647, %v7834_v32  ;;  %v2941_v42 = vsel %vm7811_vm11, %v2938_v25, %v2935_v30  ;;  %v2960_v9 = vadd.f32 1.0, %v7836_v54 }
 0x31d   :  { %v2281_v50 = vmul.f32 %v2153_v60, %v7660_v27  ;;  %4176 = vpow2.f32 %v2579_v19  ;;  %v7866_v13 = vpop.eup %4168  ;;  %v688_v1 = vsel %vm624_vm5, %v4392_v41, 0.0  ;;  %v865_v36 = vsel %vm9586_vm0, %v686_v17, 0.0  ;;  %v7879_v27 = vld [vmem:[%s9063_s4 + $0x158] sm:$0xff] }
 0x31e   :  { %v2948_v56 = vand.u32 2147483647, %v7744_v37  ;;  %v2218_v26 = vmax.f32 %v7715_v62, 0.0  ;;  %vm626_vm1 = vcmp.eq.s32.totalorder %v9476_v7, %v558_v35  ;;  %v3429_v0 = vsel %vm212_vm10, %v3236_v31, 0.0 }
 0x31f   :  { %1451 = vadd.xlane.f32.xlu1 %v9585_v15  ;;  %v2154_v25 = vcvt.s32.f32 %v3719_v14  ;;  %v3237_v44 = vadd.f32 %v2941_v42, %v7720_v49  ;;  %v2946_v48 = vadd.f32 1.0, %v2945_v5  ;;  %v2581_v43 = vmul.f32 1.442695, %v2476_v11  ;;  %v7910_v11 = vld [vmem:[%s9064_s5 + $0x50] sm:$0xff]   ;;  %v9590_v15 = vld [vmem:[#allocation105_spill] sm:$0xff] }
 0x320   :  { %854 = vadd.xlane.f32.xlu0 %v7520_v52  ;;  %v3524_v52 = vsel %vm3460_vm2, %v3428_v22, 0.0  ;;  %v2477_v30 = vsub.f32 0.0, %v2413_v33  ;;  %4178 = vlog2.f32 %v2960_v9  ;;  %v7887_v60 = vsub.f32 %v2217_v12, %v2281_v50  ;;  %v4393_v12 = vld [vmem:[%s9061_s2 + $0x1e8] sm:$0xff] }
 0x321   :  { %v2969_v19 = vadd.f32 1.0, %v7866_v13  ;;  %v2414_v63 = vand.u32 2147483647, %v7879_v27  ;;  %v4171_v17 = vpop.eup %4170  ;;  %vm628_vm13 = vcmp.eq.s32.totalorder %v9476_v7, %v564_v18  ;;  %v871_v31 = vsel %vm9587_vm6, %v688_v1, 0.0  ;;  %v7962_v22 = vld [vmem:[%s9063_s4 + $0x168] sm:$0xff] }
 0x322   :  { %v3526_v49 = vsel %vm3460_vm2, %v3429_v0, 0.0  ;;  %v3525_v5 = vadd.f32 %v3524_v52, %v7726_v55  ;;  %v690_v14 = vsel %vm626_vm1, %v4393_v12, 0.0  ;;  %vm7901_vm3 = vcmp.lt.f32.partialorder %v2948_v56, 0.0004427343  ;;  %v7915_v55 = vld [vmem:[%s9063_s4 + $0x160] sm:$0xff] }
 0x323   :  { %1454 = vadd.xlane.f32.xlu1 %v7558_v46  ;;  %v2954_v46 = vmul.f32 -0.5, %v7797_v6  ;;  %v3430_v35 = vsel %vm213_vm9, %v3237_v44, 0.0  ;;  %v2947_v33 = vmul.f32 %v7744_v37, %v2946_v48  ;;  %4180 = vpow2.f32 %v2581_v43 }
 0x324   :  { %857 = vadd.xlane.f32.xlu0 %v856_v47  ;;  %v2282_v47 = vmul.f32 %v2154_v25, %v7715_v62  ;;  %v2583_v42 = vmul.f32 1.442695, %v2477_v30  ;;  %v7921_v9 = vpop.eup %4172  ;;  %v4394_v62 = vld [vmem:[%s9061_s2 + $0x1f8] sm:$0xff]  ;;  %v2944_v41 = vmul.f32 0.6931472, %v4171_v17  ;;  %4182 = vlog2.f32 %v2969_v19 }
 0x325   :  { %v692_v50 = vsel %vm628_vm13, %v4394_v62, 0.0  ;;  %v2478_v1 = vsub.f32 0.0, %v2414_v63  ;;  %v3527_v56 = vadd.f32 %v3526_v49, %v3525_v5  ;;  %v2957_v37 = vand.u32 2147483647, %v7797_v6 }
 0x326   :  { %v3722_v0 = vunpack.c.0.s8 %v7910_v11  ;;  %v2415_v52 = vand.u32 2147483647, %v7915_v55  ;;  %v877_v25 = vsel %vm9591_vm4, %v690_v14, 0.0  ;;  %v3528_v44 = vsel %vm3460_vm2, %v3430_v35, 0.0 }
 0x327   :  { %1457 = vadd.xlane.f32.xlu1 %v9590_v15  ;;  %vm214_vm11 = vcmp.lt.s32.totalorder %v7729_v16, %v5530_v10  ;;  %v2955_v7 = vadd.f32 1.0, %v2954_v46  ;;  %v2963_v18 = vmul.f32 -0.5, %v7836_v54  ;;  %v7938_v48 = vsub.f32 %v2218_v26, %v2282_v47 }
 0x328   :  { %860 = vadd.xlane.f32.xlu0 %v7561_v24  ;;  %v2978_v24 = vadd.f32 1.0, %v7921_v9  ;;  %v3723_v43 = vunpack.c.1.s8 %v7910_v11  ;;  %4184 = vpow2.f32 %v2583_v42  ;;  %v4175_v30 = vpop.eup %4174  ;;  %v7943_v19 = vsel %vm9592_vm14, %v692_v50, 0.0 }
 0x329   :  { %v2950_v63 = vsel %vm7901_vm3, %v2947_v33, %v2944_v41  ;;  %v7948_v17 = vadd.s32 312, %v5492_v29  ;;  %v2585_v49 = vmul.f32 1.442695, %v2478_v1  ;;  %v7953_v26 = vadd.f32 %v3528_v44, %v3527_v56 }
 0x32a   :  { %v7950_v5 = vpop.eup %4176  ;;  %vm7955_vm7 = vcmp.lt.f32.partialorder %v2957_v37, 0.0004427343  ;;  %v2155_v14 = vcvt.s32.f32 %v3722_v0  ;;  %v2479_v46 = vsub.f32 0.0, %v2415_v52  ;;  %v2956_v47 = vmul.f32 %v7797_v6, %v2955_v7  ;;  %v7980_v0 = vld [vmem:[%s9063_s4 + $0x170] sm:$0xff] }
 0x32b   :  { %1460 = vadd.xlane.f32.xlu1 %v7611_v21  ;;  %v2964_v35 = vadd.f32 1.0, %v2963_v18  ;;  %v2966_v33 = vand.u32 2147483647, %v7836_v54  ;;  %v2972_v21 = vmul.f32 -0.5, %v7866_v13  ;;  %v2953_v42 = vmul.f32 0.6931472, %v4175_v30 }
 0x32c   :  { %866 = vadd.xlane.f32.xlu0 %v865_v36  ;;  %v3238_v36 = vadd.f32 %v2950_v63, %v7795_v59  ;;  %4186 = vlog2.f32 %v2978_v24  ;;  %v2156_v62 = vcvt.s32.f32 %v3723_v43  ;;  %v2219_v50 = vmax.f32 %v7756_v38, 0.0 }
 0x32d   :  { %v2987_v41 = vadd.f32 1.0, %v7950_v5  ;;  %4188 = vpow2.f32 %v2585_v49  ;;  %v2416_v1 = vand.u32 2147483647, %v7962_v22  ;;  %v4179_v15 = vpop.eup %4178  ;;  %vm215_vm5 = vcmp.lt.s32.totalorder %v7750_v53, %v5530_v10  ;;  %v8477_v53 = vld [vmem:[%s9063_s4 + $0x1b0] sm:$0xff] }
 0x32e   :  { %v2975_v6 = vand.u32 2147483647, %v7866_v13  ;;  %v2283_v59 = vmul.f32 %v2155_v14, %v7756_v38  ;;  %v3726_v56 = vunpack.c.2.s8 %v7910_v11  ;;  %v2587_v37 = vmul.f32 1.442695, %v2479_v46 }
 0x32f   :  { %863 = vadd.xlane.f32.xlu1 %v7564_v39  ;;  %vm7982_vm0 = vcmp.lt.f32.partialorder %v2966_v33, 0.0004427343  ;;  %v2973_v39 = vadd.f32 1.0, %v2972_v21  ;;  %v2220_v44 = vmax.f32 %v7805_v28, 0.0  ;;  %v3431_v38 = vsel %vm214_vm11, %v3238_v36, 0.0 }
 0x330   :  { %872 = vadd.xlane.f32.xlu0 %v871_v31  ;;  %v7987_v31 = vadd.s32 320, %v5492_v29  ;;  %v2959_v7 = vsel %vm7955_vm7, %v2956_v47, %v2953_v42  ;;  %v2965_v18 = vmul.f32 %v7836_v54, %v2964_v35  ;;  %v2284_v24 = vmul.f32 %v2156_v62, %v7805_v28  ;;  %v7997_v43 = vpop.eup %4180 }
 0x331   :  { %v2962_v30 = vmul.f32 0.6931472, %v4179_v15  ;;  %4190 = vlog2.f32 %v2987_v41  ;;  %v2480_v63 = vsub.f32 0.0, %v2416_v1  ;;  %v2417_v49 = vand.u32 2147483647, %v7980_v0  ;;  %v4183_v14 = vpop.eup %4182 }
 0x332   :  { %vm8001_vm1 = vcmp.lt.f32.partialorder %v2975_v6, 0.0004427343  ;;  %v8005_v12 = vsub.f32 %v2219_v50, %v2283_v59  ;;  %v2157_v54 = vcvt.s32.f32 %v3726_v56  ;;  %4192 = vpow2.f32 %v2587_v37 }
 0x333   :  { %869 = vadd.xlane.f32.xlu1 %v7570_v34  ;;  %v3239_v28 = vadd.f32 %v2959_v7, %v7815_v3  ;;  %vm216_vm13 = vcmp.lt.s32.totalorder %v7829_v51, %v5530_v10  ;;  %v2974_v47 = vmul.f32 %v7866_v13, %v2973_v39  ;;  %v2981_v35 = vmul.f32 -0.5, %v7921_v9  ;;  %v8018_v34 = vld [vmem:[%s9063_s4 + $0x178] sm:$0xff] }
 0x334   :  { %878 = vadd.xlane.f32.xlu0 %v877_v25  ;;  %v8013_v25 = vadd.s32 328, %v5492_v29  ;;  %v3530_v33 = vsel %vm3460_vm2, %v3431_v38, 0.0  ;;  %v8021_v21 = vsub.f32 %v2220_v44, %v2284_v24  ;;  %v2996_v3 = vadd.f32 1.0, %v7997_v43  ;;  %v8028_v13 = vld [vmem:[%s9064_s5 + $0x58] sm:$0xff]  }
 0x335   :  { %v2221_v36 = vmax.f32 %v7834_v32, 0.0  ;;  %v8030_v42 = vpop.eup %4184  ;;  %v2968_v62 = vsel %vm7982_vm0, %v2965_v18, %v2962_v30  ;;  %v2971_v50 = vmul.f32 0.6931472, %v4183_v14  ;;  %v2589_v41 = vmul.f32 1.442695, %v2480_v63  ;;  %v8110_v30 = vld [vmem:[%s9063_s4 + $0x188] sm:$0xff] }
 0x336   :  { %v2481_v1 = vsub.f32 0.0, %v2417_v49  ;;  %v2984_v15 = vand.u32 2147483647, %v7921_v9  ;;  %v2285_v6 = vmul.f32 %v2157_v54, %v7834_v32  ;;  %v3727_v59 = vunpack.c.3.s8 %v7910_v11 }
 0x337   :  { %875 = vadd.xlane.f32.xlu1 %v7619_v57  ;;  %v2418_v56 = vand.u32 2147483647, %v8018_v34  ;;  %v3432_v37 = vsel %vm215_vm5, %v3239_v28, 0.0  ;;  %vm217_vm6 = vcmp.lt.s32.totalorder %v7849_v61, %v5530_v10  ;;  %v2982_v52 = vadd.f32 1.0, %v2981_v35  ;;  %v8070_v28 = vld [vmem:[%s9063_s4 + $0x180] sm:$0xff] }
 0x338   :  { %884 = vadd.xlane.f32.xlu0 %v7943_v19  ;;  %v8046_v19 = vadd.s32 336, %v5492_v29  ;;  %v3730_v57 = vunpack.c.0.s8 %v8028_v13  ;;  %v3240_v39 = vadd.f32 %v2968_v62, %v7845_v23  ;;  %v2990_v32 = vmul.f32 -0.5, %v7950_v5 }
 0x339   :  { %4194 = vlog2.f32 %v2996_v3  ;;  %v3005_v11 = vadd.f32 1.0, %v8030_v42  ;;  %v4187_v44 = vpop.eup %4186  ;;  %v3531_v38 = vadd.f32 %v3530_v33, %v7953_v26  ;;  %v2977_v7 = vsel %vm8001_vm1, %v2974_v47, %v2971_v50 }
 0x33a   :  { %4196 = vpow2.f32 %v2589_v41  ;;  %v2591_v18 = vmul.f32 1.442695, %v2481_v1  ;;  %v8055_v24 = vpop.eup %4188  ;;  %vm8058_vm3 = vcmp.lt.f32.partialorder %v2984_v15, 0.0004427343  ;;  %v8062_v23 = vsub.f32 %v2221_v36, %v2285_v6 }
 0x33b   :  { %881 = vadd.xlane.f32.xlu1 %v7622_v4  ;;  %v2158_v63 = vcvt.s32.f32 %v3727_v59  ;;  %v2482_v49 = vsub.f32 0.0, %v2418_v56  ;;  %v3532_v14 = vsel %vm3460_vm2, %v3432_v37, 0.0  ;;  %v2983_v26 = vmul.f32 %v7921_v9, %v2982_v52 }
 0x33c   :  { %v2222_v46 = vmax.f32 %v7879_v27, 0.0  ;;  %v2159_v54 = vcvt.s32.f32 %v3730_v57  ;;  %v3433_v4 = vsel %vm216_vm13, %v3240_v39, 0.0  ;;  %v3241_v47 = vadd.f32 %v2977_v7, %v7887_v60 }
 0x33d   :  { %v2991_v35 = vadd.f32 1.0, %v2990_v32  ;;  %4198 = vlog2.f32 %v3005_v11  ;;  %v2980_v33 = vmul.f32 0.6931472, %v4187_v44  ;;  %v3014_v3 = vadd.f32 1.0, %v8055_v24 }
 0x33e   :  { %v3731_v9 = vunpack.c.1.s8 %v8028_v13  ;;  %4200 = vpow2.f32 %v2591_v18  ;;  %v4191_v36 = vpop.eup %4190  ;;  %v2286_v62 = vmul.f32 %v2158_v63, %v7879_v27  ;;  %v8080_v50 = vadd.s32 344, %v5492_v29 }
 0x33f   :  { %v2593_v41 = vmul.f32 1.442695, %v2482_v49  ;;  %v2419_v1 = vand.u32 2147483647, %v8070_v28  ;;  %v8083_v15 = vpop.eup %4192  ;;  %v3533_v60 = vadd.f32 %v3532_v14, %v3531_v38  ;;  %vm218_vm4 = vcmp.lt.s32.totalorder %v7948_v17, %v5530_v10 }
 0x340   :  { %9601 = vst [vmem:[#allocation88_spill] sm:$0xff] %v8080_v50  ;;  %v2993_v6 = vand.u32 2147483647, %v7950_v5  ;;  %v2223_v59 = vmax.f32 %v7915_v55, 0.0  ;;  %v2287_v56 = vmul.f32 %v2159_v54, %v7915_v55  ;;  %v3534_v27 = vsel %vm3460_vm2, %v3433_v4, 0.0 }
 0x341   :  { %v3434_v37 = vsel %vm217_vm6, %v3241_v47, 0.0  ;;  %v2992_v52 = vmul.f32 %v7950_v5, %v2991_v35  ;;  %v2999_v57 = vmul.f32 -0.5, %v7997_v43  ;;  %v2986_v39 = vsel %vm8058_vm3, %v2983_v26, %v2980_v33 }
 0x342   :  { %v3008_v32 = vmul.f32 -0.5, %v8030_v42  ;;  %4202 = vlog2.f32 %v3014_v3  ;;  %v2160_v11 = vcvt.s32.f32 %v3731_v9  ;;  %v2989_v44 = vmul.f32 0.6931472, %v4191_v36 }
 0x343   :  { %v3023_v55 = vadd.f32 1.0, %v8083_v15  ;;  %4204 = vpow2.f32 %v2593_v41  ;;  %v2483_v38 = vsub.f32 0.0, %v2419_v1  ;;  %v3535_v7 = vadd.f32 %v3534_v27, %v3533_v60 }
 0x344   :  { %vm8100_vm14 = vcmp.lt.f32.partialorder %v2993_v6, 0.0004427343  ;;  %v3002_v5 = vand.u32 2147483647, %v7997_v43  ;;  %v8105_v63 = vsub.f32 %v2222_v46, %v2286_v62  ;;  %v3536_v49 = vsel %vm3460_vm2, %v3434_v37, 0.0 }
 0x345   :  { %v3242_v14 = vadd.f32 %v2986_v39, %v7938_v48  ;;  %vm219_vm7 = vcmp.lt.s32.totalorder %v7987_v31, %v5530_v10  ;;  %v3000_v26 = vadd.f32 1.0, %v2999_v57  ;;  %v8116_v54 = vsub.f32 %v2223_v59, %v2287_v56 }
 0x346   :  { %v4195_v4 = vpop.eup %4194  ;;  %v3009_v47 = vadd.f32 1.0, %v3008_v32  ;;  %v3011_v46 = vand.u32 2147483647, %v8030_v42  ;;  %v2224_v35 = vmax.f32 %v7962_v22, 0.0  ;;  %v2288_v33 = vmul.f32 %v2160_v11, %v7962_v22  ;;  %v8151_v32 = vld [vmem:[%s9063_s4 + $0x190] sm:$0xff] }
 0x347   :  { %v8121_v3 = vpop.eup %4196  ;;  %v2995_v9 = vsel %vm8100_vm14, %v2992_v52, %v2989_v44  ;;  %4206 = vlog2.f32 %v3023_v55  ;;  %v2595_v48 = vmul.f32 1.442695, %v2483_v38  ;;  %v2420_v36 = vand.u32 2147483647, %v8110_v30 }
 0x348   :  { %v3537_v62 = vadd.f32 %v3536_v49, %v3535_v7  ;;  %vm8126_vm0 = vcmp.lt.f32.partialorder %v3002_v5, 0.0004427343  ;;  %v8131_v1 = vadd.s32 352, %v5492_v29  ;;  %v3734_v60 = vunpack.c.2.s8 %v8028_v13  ;;  %v8166_v5 = vld [vmem:[%s9064_s5 + $0x60] sm:$0xff]  }
 0x349   :  { %v3435_v22 = vsel %vm218_vm4, %v3242_v14, 0.0  ;;  %v2998_v6 = vmul.f32 0.6931472, %v4195_v4  ;;  %v3001_v59 = vmul.f32 %v7997_v43, %v3000_v26  ;;  %v3017_v56 = vmul.f32 -0.5, %v8055_v24 }
 0x34a   :  { %9606 = vst [vmem:[#allocation90_spill] sm:$0xff] %v8131_v1  ;;  %v4199_v27 = vpop.eup %4198  ;;  %v3243_v37 = vadd.f32 %v2995_v9, %v8005_v12  ;;  %vm8140_vm1 = vcmp.lt.f32.partialorder %v3011_v46, 0.0004427343  ;;  %v3032_v57 = vadd.f32 1.0, %v8121_v3  ;;  %v8146_v39 = vadd.s32 360, %v5492_v29 }
 0x34b   :  { %v8153_v43 = vpop.eup %4200  ;;  %vm9152_vm3 = vcmp.lt.s32.totalorder %v8013_v25, %v5530_v10  ;;  %v3010_v12 = vmul.f32 %v8030_v42, %v3009_v47  ;;  %v8158_v11 = vsub.f32 %v2224_v35, %v2288_v33  ;;  %4208 = vpow2.f32 %v2595_v48 }
 0x34c   :  { %v2484_v44 = vsub.f32 0.0, %v2420_v36  ;;  %v3538_v55 = vsel %vm3460_vm2, %v3435_v22, 0.0  ;;  %v3020_v38 = vand.u32 2147483647, %v8055_v24  ;;  %v2161_v7 = vcvt.s32.f32 %v3734_v60  ;;  %v8181_v36 = vld [vmem:[%s9063_s4 + $0x198] sm:$0xff] }
 0x34d   :  { %v3735_v18 = vunpack.c.3.s8 %v8028_v13  ;;  %v3004_v49 = vsel %vm8126_vm0, %v3001_v59, %v2998_v6  ;;  %v3018_v42 = vadd.f32 1.0, %v3017_v56  ;;  %v3026_v14 = vmul.f32 -0.5, %v8083_v15 }
 0x34e   :  { %v2421_v26 = vand.u32 2147483647, %v8151_v32  ;;  %v3436_v4 = vsel %vm219_vm7, %v3243_v37, 0.0  ;;  %v3007_v47 = vmul.f32 0.6931472, %v4199_v27  ;;  %4210 = vlog2.f32 %v3032_v57 }
 0x34f   :  { %v3041_v13 = vadd.f32 1.0, %v8153_v43  ;;  %v4203_v46 = vpop.eup %4202  ;;  %v3539_v35 = vadd.f32 %v3538_v55, %v3537_v62  ;;  %v2225_v33 = vmax.f32 %v7980_v0, 0.0  ;;  %v3738_v9 = vunpack.c.0.s8 %v8166_v5 }
 0x350   :  { %v2597_v48 = vmul.f32 1.442695, %v2484_v44  ;;  %v8183_v41 = vpop.eup %4204  ;;  %v3244_v60 = vadd.f32 %v3004_v49, %v8021_v21  ;;  %vm9153_vm14 = vcmp.lt.s32.totalorder %v8046_v19, %v5530_v10  ;;  %vm8188_vm0 = vcmp.lt.f32.partialorder %v3020_v38, 0.0004427343 }
 0x351   :  { %v2289_v62 = vmul.f32 %v2161_v7, %v7980_v0  ;;  %v2162_v6 = vcvt.s32.f32 %v3735_v18  ;;  %v3540_v59 = vsel %vm3460_vm2, %v3436_v4, 0.0  ;;  %v3019_v56 = vmul.f32 %v8055_v24, %v3018_v42 }
 0x352   :  { %v3027_v27 = vadd.f32 1.0, %v3026_v14  ;;  %v2485_v37 = vsub.f32 0.0, %v2421_v26  ;;  %v3013_v57 = vsel %vm8140_vm1, %v3010_v12, %v3007_v47  ;;  %v3016_v21 = vmul.f32 0.6931472, %v4203_v46  ;;  %v8200_v7 = vpop.xlane.xlu0 %785 }
 0x353   :  { %4212 = vlog2.f32 %v3041_v13  ;;  %v2422_v44 = vand.u32 2147483647, %v8181_v36  ;;  %v2226_v55 = vmax.f32 %v8018_v34, 0.0  ;;  %v3050_v38 = vadd.f32 1.0, %v8183_v41 }
 0x354   :  { %v2163_v49 = vcvt.s32.f32 %v3738_v9  ;;  %4214 = vpow2.f32 %v2597_v48  ;;  %v4207_v0 = vpop.eup %4206  ;;  %v3437_v24 = vsel %vm9152_vm3, %v3244_v60, 0.0  ;;  %vm9155_vm1 = vcmp.lt.s32.totalorder %v8080_v50, %v5530_v10 }
 0x355   :  { %v3029_v52 = vand.u32 2147483647, %v8083_v15  ;;  %v3035_v12 = vmul.f32 -0.5, %v8121_v3  ;;  %v2290_v18 = vmul.f32 %v2162_v6, %v8018_v34  ;;  %v3541_v42 = vadd.f32 %v3540_v59, %v3539_v35 }
 0x356   :  { %v3245_v14 = vadd.f32 %v3013_v57, %v8062_v23  ;;  %v2227_v26 = vmax.f32 %v8070_v28, 0.0  ;;  %v2599_v4 = vmul.f32 1.442695, %v2485_v37  ;;  %v3022_v47 = vsel %vm8188_vm0, %v3019_v56, %v3016_v21 }
 0x357   :  { %v3028_v13 = vmul.f32 %v8083_v15, %v3027_v27  ;;  %v3038_v46 = vand.u32 2147483647, %v8121_v3  ;;  %v2486_v9 = vsub.f32 0.0, %v2422_v44  ;;  %v3542_v48 = vsel %vm3460_vm2, %v3437_v24, 0.0 }
 0x358   :  { %v3025_v60 = vmul.f32 0.6931472, %v4207_v0  ;;  %4216 = vlog2.f32 %v3050_v38  ;;  %v2291_v34 = vmul.f32 %v2163_v49, %v8070_v28  ;;  %v8218_v35 = vpop.eup %4208  ;;  %v8222_v6 = vpop.xlane.xlu1 %791  ;;  %vm8224_vm3 = vcmp.lt.f32.partialorder %v3029_v52, 0.0004427343 }
 0x359   :  { %v8220_v23 = vpop.xlane.xlu0 %794  ;;  %v3036_v15 = vadd.f32 1.0, %v3035_v12  ;;  %v8228_v59 = vsub.f32 %v2225_v33, %v2289_v62  ;;  %v8231_v56 = vadd.s32 368, %v5492_v29  ;;  %v3438_v28 = vsel %vm9153_vm14, %v3245_v14, 0.0  ;;  %v8243_v33 = vld [vmem:[%s9063_s4 + $0x1a0] sm:$0xff] }
 0x35a   :  { %v3246_v27 = vadd.f32 %v3022_v47, %v8105_v63  ;;  %vm223_vm0 = vcmp.lt.s32.totalorder %v8131_v1, %v5530_v10  ;;  %v3044_v37 = vmul.f32 -0.5, %v8153_v43  ;;  %4218 = vpow2.f32 %v2599_v4 }
 0x35b   :  { %v3543_v62 = vadd.f32 %v3542_v48, %v3541_v42  ;;  %v8245_v57 = vsub.f32 %v2226_v55, %v2290_v18  ;;  %v8248_v21 = vadd.s32 376, %v5492_v29  ;;  %v2601_v44 = vmul.f32 1.442695, %v2486_v9  ;;  %v4211_v38 = vpop.eup %4210 }
 0x35c   :  { %v3031_v63 = vsel %vm8224_vm3, %v3028_v13, %v3025_v60  ;;  %vm8252_vm14 = vcmp.lt.f32.partialorder %v3038_v46, 0.0004427343  ;;  %v8256_v0 = vsub.f32 %v2227_v26, %v2291_v34  ;;  %v3059_v24 = vadd.f32 1.0, %v8218_v35  ;;  %v8261_v55 = vpop.xlane.xlu1 %1394 }
 0x35d   :  { %v8259_v52 = vpop.xlane.xlu0 %797  ;;  %v3544_v12 = vsel %vm3460_vm2, %v3438_v28, 0.0  ;;  %v3037_v18 = vmul.f32 %v8121_v3, %v3036_v15  ;;  %v3739_v42 = vunpack.c.1.s8 %v8166_v5  ;;  %v2423_v14 = vand.u32 2147483647, %v8243_v33 }
 0x35e   :  { %v3439_v4 = vsel %vm9155_vm1, %v3246_v27, 0.0  ;;  %v3045_v26 = vadd.f32 1.0, %v3044_v37  ;;  %v3742_v47 = vunpack.c.2.s8 %v8166_v5  ;;  %v3743_v13 = vunpack.c.3.s8 %v8166_v5 }
 0x35f   :  { %v3247_v46 = vadd.f32 %v3031_v63, %v8116_v54  ;;  %v3034_v9 = vmul.f32 0.6931472, %v4211_v38  ;;  %v3053_v48 = vmul.f32 -0.5, %v8183_v41  ;;  %4220 = vpow2.f32 %v2601_v44 }
 0x360   :  { %v4213_v3 = vpop.eup %4212  ;;  %v1684_v60 = vsub.f32 %v7370_v8, %v8200_v7  ;;  %v3047_v34 = vand.u32 2147483647, %v8153_v43  ;;  %4222 = vlog2.f32 %v3059_v24  ;;  %v8278_v22 = vadd.s32 384, %v5492_v29  ;;  %v8284_v5 = vpop.xlane.xlu1 %1397 }
 0x361   :  { %v8280_v15 = vpop.eup %4214  ;;  %v8282_v28 = vpop.xlane.xlu0 %800  ;;  %v3545_v54 = vadd.f32 %v3544_v12, %v3543_v62  ;;  %vm224_vm3 = vcmp.lt.s32.totalorder %v8146_v39, %v5530_v10  ;;  %v2164_v27 = vcvt.s32.f32 %v3739_v42  ;;  %v2228_v37 = vmax.f32 %v8110_v30, 0.0 }
 0x362   :  { %v2487_v8 = vsub.f32 0.0, %v2423_v14  ;;  %v3546_v7 = vsel %vm3460_vm2, %v3439_v4, 0.0  ;;  %v3046_v44 = vmul.f32 %v8153_v43, %v3045_v26  ;;  %v2165_v38 = vcvt.s32.f32 %v3742_v47 }
 0x363   :  { %v2166_v63 = vcvt.s32.f32 %v3743_v13  ;;  %v3440_v24 = vsel %vm223_vm0, %v3247_v46, 0.0  ;;  %v3040_v62 = vsel %vm8252_vm14, %v3037_v18, %v3034_v9  ;;  %v3043_v12 = vmul.f32 0.6931472, %v4213_v3 }
 0x364   :  { %v3054_v50 = vadd.f32 1.0, %v3053_v48  ;;  %v1748_v42 = vsel %vm209_vm12, %v1684_v60, 0.0  ;;  %vm8299_vm1 = vcmp.lt.f32.partialorder %v3047_v34, 0.0004427343  ;;  %v3068_v43 = vadd.f32 1.0, %v8280_v15  ;;  %v8307_v13 = vpop.xlane.xlu1 %1400 }
 0x365   :  { %v2229_v4 = vmax.f32 %v8151_v32, 0.0  ;;  %v4217_v26 = vpop.eup %4216  ;;  %v8305_v47 = vpop.xlane.xlu0 %803  ;;  %v3547_v49 = vadd.f32 %v3546_v7, %v3545_v54  ;;  %vm225_vm14 = vcmp.lt.s32.totalorder %v8231_v56, %v5530_v10  ;;  %v3056_v20 = vand.u32 2147483647, %v8183_v41  ;;  %v8704_v56 = vld [vmem:[%s9063_s4 + $0x1d8] sm:$0xff] }
 0x366   :  { %v2292_v18 = vmul.f32 %v2164_v27, %v8110_v30  ;;  %v2603_v46 = vmul.f32 1.442695, %v2487_v8  ;;  %v3548_v9 = vsel %vm3460_vm2, %v3440_v24, 0.0  ;;  %v3248_v48 = vadd.f32 %v3040_v62, %v8158_v11 }
 0x367   :  { %v2293_v3 = vmul.f32 %v2165_v38, %v8151_v32  ;;  %v2230_v60 = vmax.f32 %v8181_v36, 0.0  ;;  %v8317_v34 = vpop.eup %4218  ;;  %v1843_v54 = vsel %vm1783_vm15, %v1748_v42, 0.0  ;;  %v3049_v7 = vsel %vm8299_vm1, %v3046_v44, %v3043_v12 }
 0x368   :  { %v3055_v1 = vmul.f32 %v8183_v41, %v3054_v50  ;;  %v2294_v30 = vmul.f32 %v2166_v63, %v8181_v36  ;;  %v1686_v27 = vsub.f32 %v7389_v40, %v8222_v6  ;;  %v3052_v8 = vmul.f32 0.6931472, %v4217_v26  ;;  %v8329_v38 = vpop.xlane.xlu1 %1403  ;;  %v9619_v36 = vld [vmem:[#allocation93_spill] sm:$0xff] }
 0x369   :  { %v3062_v11 = vmul.f32 -0.5, %v8218_v35  ;;  %4224 = vlog2.f32 %v3068_v43  ;;  %v8327_v32 = vpop.xlane.xlu0 %806  ;;  %vm8331_vm12 = vcmp.lt.f32.partialorder %v3056_v20, 0.0004427343  ;;  %v8335_v44 = vsub.f32 %v2228_v37, %v2292_v18  ;;  %v8351_v37 = vld [vmem:[%s9064_s5 + $0x68] sm:$0xff]  }
 0x36a   :  { %v8338_v50 = vadd.s32 392, %v5492_v29  ;;  %4226 = vpow2.f32 %v2603_v46  ;;  %v1844_v40 = vadd.f32 %v1843_v54, %v9619_v36  ;;  %v3441_v41 = vsel %vm224_vm3, %v3248_v48, 0.0  ;;  %v9620_v46 = vld [vmem:[#allocation74_spill] sm:$0xff] }
 0x36b   :  { %v3249_v6 = vadd.f32 %v3049_v7, %v8228_v59  ;;  %vm226_vm1 = vcmp.lt.s32.totalorder %v8248_v21, %v5530_v10  ;;  %v3077_v63 = vadd.f32 1.0, %v8317_v34  ;;  %v3549_v62 = vadd.f32 %v3548_v9, %v3547_v49  ;;  %v8362_v59 = vld [vmem:[%s9063_s4 + $0x1a8] sm:$0xff] }
 0x36c   :  { %v3065_v12 = vand.u32 2147483647, %v8218_v35  ;;  %v8354_v42 = vsub.f32 %v2229_v4, %v2293_v3  ;;  %v8357_v14 = vadd.s32 400, %v5492_v29  ;;  %v8364_v43 = vpop.eup %4220  ;;  %v1750_v26 = vsel %vm211_vm8, %v1686_v27, 0.0  ;;  %v8377_v3 = vpop.xlane.xlu1 %1406  ;;  %v9621_v27 = vld [vmem:[#allocation42_spill] sm:$0xff] }
 0x36d   :  { %v3058_v49 = vsel %vm8331_vm12, %v3055_v1, %v3052_v8  ;;  %v3063_v20 = vadd.f32 1.0, %v3062_v11  ;;  %v8371_v4 = vsub.f32 %v2230_v60, %v2294_v30  ;;  %v4223_v18 = vpop.eup %4222  ;;  %v1687_v9 = vsub.f32 %v9620_v46, %v8220_v23  ;;  %v8375_v48 = vpop.xlane.xlu0 %809  ;;  %v9622_v8 = vld [vmem:[#allocation73_spill] sm:$0xff] }
 0x36e   :  { %v3550_v54 = vsel %vm3460_vm2, %v3441_v41, 0.0  ;;  %v8381_v7 = vadd.s32 408, %v5492_v29  ;;  %v3746_v2 = vunpack.c.0.s8 %v8351_v37  ;;  %v1846_v1 = vadd.f32 %v9621_v27, %v1844_v40 }
 0x36f   :  { %v3442_v60 = vsel %vm225_vm14, %v3249_v6, 0.0  ;;  %4228 = vlog2.f32 %v3077_v63  ;;  %v2424_v23 = vand.u32 2147483647, %v8362_v59  ;;  %v1847_v30 = vsel %vm1783_vm15, %v1750_v26, 0.0 }
 0x370   :  { %v1688_v11 = vsub.f32 %v9622_v8, %v8259_v52  ;;  %v3250_v24 = vadd.f32 %v3058_v49, %v8245_v57  ;;  %v3086_v36 = vadd.f32 1.0, %v8364_v43  ;;  %v3061_v41 = vmul.f32 0.6931472, %v4223_v18  ;;  %v8402_v27 = vpop.xlane.xlu1 %1409 }
 0x371   :  { %v3064_v46 = vmul.f32 %v8218_v35, %v3063_v20  ;;  %vm8395_vm8 = vcmp.lt.f32.partialorder %v3065_v12, 0.0004427343  ;;  %v3071_v6 = vmul.f32 -0.5, %v8280_v15  ;;  %v8400_v63 = vpop.xlane.xlu0 %812  ;;  %v3551_v26 = vadd.f32 %v3550_v54, %v3549_v62  ;;  %v9625_v20 = vld [vmem:[#allocation38_spill] sm:$0xff] }
 0x372   :  { %v3552_v52 = vsel %vm3460_vm2, %v3442_v60, 0.0  ;;  %v2167_v8 = vcvt.s32.f32 %v3746_v2  ;;  %v1751_v35 = vsel %vm212_vm10, %v1687_v9, 0.0  ;;  %v1848_v12 = vadd.f32 %v1847_v30, %v1846_v1 }
 0x373   :  { %4230 = vlog2.f32 %v8261_v55  ;;  %vm227_vm12 = vcmp.lt.s32.totalorder %v8278_v22, %v5530_v10  ;;  %v2488_v49 = vsub.f32 0.0, %v2424_v23  ;;  %v1752_v62 = vsel %vm213_vm9, %v1688_v11, 0.0 }
 0x374   :  { %v1689_v18 = vsub.f32 %v9625_v20, %v8282_v28  ;;  %v3443_v54 = vsel %vm226_vm1, %v3250_v24, 0.0  ;;  %4232 = vlog2.f32 %v3086_v36  ;;  %v3067_v58 = vsel %vm8395_vm8, %v3064_v46, %v3061_v41  ;;  %v8429_v28 = vpop.xlane.xlu1 %1412 }
 0x375   :  { %v3072_v55 = vadd.f32 1.0, %v3071_v6  ;;  %v3080_v9 = vmul.f32 -0.5, %v8317_v34  ;;  %v8424_v2 = vadd.s32 416, %v5492_v29  ;;  %v1849_v45 = vsel %vm1783_vm15, %v1751_v35, 0.0  ;;  %v8427_v60 = vpop.xlane.xlu0 %815 }
 0x376   :  { %v4225_v1 = vpop.eup %4224  ;;  %v3553_v23 = vadd.f32 %v3552_v52, %v3551_v26  ;;  %v3074_v30 = vand.u32 2147483647, %v8280_v15  ;;  %v3747_v11 = vunpack.c.1.s8 %v8351_v37  ;;  %v1850_v36 = vadd.f32 %v1849_v45, %v1848_v12  ;;  %v9626_v26 = vld [vmem:[#allocation39_spill] sm:$0xff] }
 0x377   :  { %v8433_v24 = vpop.eup %4226  ;;  %v1851_v41 = vsel %vm1783_vm15, %v1752_v62, 0.0  ;;  %v3554_v46 = vsel %vm3460_vm2, %v3443_v54, 0.0  ;;  %v2605_v40 = vmul.f32 1.442695, %v2488_v49  ;;  %v1753_v6 = vsel %vm214_vm11, %v1689_v18, 0.0 }
 0x378   :  { %4234 = vlog2.f32 %v8284_v5  ;;  %v1690_v52 = vsub.f32 %v9626_v26, %v8305_v47  ;;  %v3251_v35 = vadd.f32 %v3067_v58, %v8256_v0  ;;  %v3070_v20 = vmul.f32 0.6931472, %v4225_v1  ;;  %v8448_v49 = vpop.xlane.xlu1 %1415 }
 0x379   :  { %v3073_v57 = vmul.f32 %v8280_v15, %v3072_v55  ;;  %v3081_v12 = vadd.f32 1.0, %v3080_v9  ;;  %v2295_v62 = vmul.f32 %v2167_v8, %v8243_v33  ;;  %v8446_v45 = vpop.xlane.xlu0 %818  ;;  %vm8450_vm10 = vcmp.lt.f32.partialorder %v3074_v30, 0.0004427343  ;;  %v9629_v55 = vld [vmem:[#allocation78_spill] sm:$0xff] }
 0x37a   :  { %v3083_v5 = vand.u32 2147483647, %v8317_v34  ;;  %v3089_v47 = vmul.f32 -0.5, %v8364_v43  ;;  %v3095_v0 = vadd.f32 1.0, %v8433_v24  ;;  %v1852_v18 = vadd.f32 %v1851_v41, %v1850_v36 }
 0x37b   :  { %v1853_v15 = vsel %vm1783_vm15, %v1753_v6, 0.0  ;;  %v3555_v54 = vadd.f32 %v3554_v46, %v3553_v23  ;;  %vm228_vm9 = vcmp.lt.s32.totalorder %v8338_v50, %v5530_v10  ;;  %4236 = vpow2.f32 %v2605_v40 }
 0x37c   :  { %v4229_v8 = vpop.eup %4228  ;;  %v1754_v58 = vsel %vm215_vm5, %v1690_v52, 0.0  ;;  %4238 = vlog2.f32 %v8307_v13  ;;  %v1691_v9 = vsub.f32 %v9629_v55, %v8327_v32  ;;  %v3444_v1 = vsel %vm227_vm12, %v3251_v35, 0.0  ;;  %v8481_v32 = vpop.xlane.xlu1 %1418  ;;  %v9632_v35 = vld [vmem:[#allocation79_spill] sm:$0xff] }
 0x37d   :  { %4240 = vlog2.f32 %v8329_v38  ;;  %v3076_v23 = vsel %vm8450_vm10, %v3073_v57, %v3070_v20  ;;  %v3082_v30 = vmul.f32 %v8317_v34, %v3081_v12  ;;  %v3092_v36 = vand.u32 2147483647, %v8364_v43  ;;  %v8479_v13 = vpop.xlane.xlu0 %821 }
 0x37e   :  { %vm8483_vm11 = vcmp.lt.f32.partialorder %v3083_v5, 0.0004427343  ;;  %v3090_v38 = vadd.f32 1.0, %v3089_v47  ;;  %4242 = vlog2.f32 %v3095_v0  ;;  %v2168_v57 = vcvt.s32.f32 %v3747_v11 }
 0x37f   :  { %v1854_v46 = vadd.f32 %v1853_v15, %v1852_v18  ;;  %v1855_v34 = vsel %vm1783_vm15, %v1754_v58, 0.0  ;;  %v3556_v40 = vsel %vm3460_vm2, %v3444_v1, 0.0  ;;  %v3079_v6 = vmul.f32 0.6931472, %v4229_v8 }
 0x380   :  { %v4231_v26 = vpop.eup %4230  ;;  %v1755_v52 = vsel %vm216_vm13, %v1691_v9, 0.0  ;;  %v1692_v20 = vsub.f32 %v9632_v35, %v8375_v48  ;;  %v3252_v12 = vadd.f32 %v3076_v23, %v8335_v44  ;;  %v2425_v16 = vand.u32 2147483647, %v8477_v53  ;;  %v8510_v15 = vpop.xlane.xlu1 %1421 }
 0x381   :  { %v4233_v5 = vpop.eup %4232  ;;  %vm229_vm5 = vcmp.lt.s32.totalorder %v8357_v14, %v5530_v10  ;;  %vm8498_vm8 = vcmp.lt.f32.partialorder %v3092_v36, 0.0004427343  ;;  %v9635_v47 = vmax.f32 %v8243_v33, 0.0  ;;  %v2232_v51 = vmax.f32 %v8362_v59, 0.0  ;;  %v8508_v44 = vpop.xlane.xlu0 %824  ;;  %v9660_v14 = vld [vmem:[#allocation80_spill] sm:$0xff] }
 0x382   :  { %v3750_v48 = vunpack.c.2.s8 %v8351_v37  ;;  %v1856_v18 = vadd.f32 %v1855_v34, %v1854_v46  ;;  %v3557_v8 = vadd.f32 %v3556_v40, %v3555_v54  ;;  %v3091_v58 = vmul.f32 %v8364_v43, %v3090_v38 }
 0x383   :  { %v8504_v0 = vsub.f32 %v9635_v47, %v2295_v62  ;;  %v2296_v55 = vmul.f32 %v2168_v57, %v8362_v59  ;;  %v1545_v9 = vmul.f32 0.6931472, %v4231_v26  ;;  %v1857_v1 = vsel %vm1783_vm15, %v1755_v52, 0.0  ;;  %v9636_v59 = vld [vmem:[#allocation41_spill] sm:$0xff]  ;;  %v9637_v26 = vld [vmem:[#allocation84_spill] sm:$0xff] }
 0x384   :  { %4244 = vlog2.f32 %v8377_v3  ;;  %v3085_v33 = vsel %vm8483_vm11, %v3082_v30, %v3079_v6  ;;  %v1756_v62 = vsel %vm217_vm6, %v1692_v20, 0.0  ;;  %v3445_v54 = vsel %vm228_vm9, %v3252_v12, 0.0  ;;  %v8532_v61 = vpop.xlane.xlu1 %1424 }
 0x385   :  { %v3088_v23 = vmul.f32 0.6931472, %v4233_v5  ;;  %v2489_v43 = vsub.f32 0.0, %v2425_v16  ;;  %v4235_v36 = vpop.eup %4234  ;;  %v1693_v38 = vsub.f32 %v9636_v59, %v8400_v63  ;;  %v3098_v57 = vmul.f32 -0.5, %v8433_v24  ;;  %v8530_v46 = vpop.xlane.xlu0 %827 }
 0x386   :  { %v8528_v3 = vadd.s32 424, %v5492_v29  ;;  %v2169_v30 = vcvt.s32.f32 %v3750_v48  ;;  %v1858_v41 = vadd.f32 %v1857_v1, %v1856_v18  ;;  %v3253_v34 = vadd.f32 %v3085_v33, %v8354_v42  ;;  %v9638_v42 = vld [vmem:[#allocation16_spill] sm:$0xff] }
 0x387   :  { %vm230_vm13 = vcmp.lt.s32.totalorder %v8381_v7, %v5530_v10  ;;  %v8537_v40 = vsub.f32 %v2232_v51, %v2296_v55  ;;  %v2233_v63 = vmax.f32 %v8477_v53, 0.0  ;;  %v1859_v6 = vsel %vm1783_vm15, %v1756_v62, 0.0 }
 0x388   :  { %4246 = vlog2.f32 %v8402_v27  ;;  %v1694_v52 = vsub.f32 %v9637_v26, %v8427_v60  ;;  %v3558_v35 = vsel %vm3460_vm2, %v3445_v54, 0.0  ;;  %v8545_v20 = vpop.eup %4236  ;;  %v1547_v12 = vmul.f32 0.6931472, %v4235_v36  ;;  %v1428_v11 = vpop.xlane.xlu1 %1427 }
 0x389   :  { %v1631_v16 = vadd.f32 %v1545_v9, %v9638_v42  ;;  %v3094_v5 = vsel %vm8498_vm8, %v3091_v58, %v3088_v23  ;;  %v2607_v47 = vmul.f32 1.442695, %v2489_v43  ;;  %v4239_v51 = vpop.eup %4238  ;;  %v1757_v48 = vsel %vm218_vm4, %v1693_v38, 0.0  ;;  %v8558_v9 = vpop.xlane.xlu0 %830 }
 0x38a   :  { %v3099_v27 = vadd.f32 1.0, %v3098_v57  ;;  %v2297_v18 = vmul.f32 %v2169_v30, %v8477_v53  ;;  %v8555_v60 = vadd.s32 432, %v5492_v29  ;;  %v4241_v55 = vpop.eup %4240  ;;  %v1860_v1 = vadd.f32 %v1859_v6, %v1858_v41 }
 0x38b   :  { %4248 = vlog2.f32 %v8429_v28  ;;  %v3559_v58 = vadd.f32 %v3558_v35, %v3557_v8  ;;  %v3446_v33 = vsel %vm229_vm5, %v3253_v34, 0.0  ;;  %v4243_v17 = vpop.eup %4242  ;;  %v1758_v53 = vsel %vm219_vm7, %v1694_v52, 0.0  ;;  %v9639_v8 = vld [vmem:[#allocation14_spill] sm:$0xff] }
 0x38c   :  { %v3254_v62 = vadd.f32 %v3094_v5, %v8371_v4  ;;  %v3101_v54 = vand.u32 2147483647, %v8433_v24  ;;  %v3104_v23 = vadd.f32 1.0, %v8545_v20  ;;  %v1861_v28 = vsel %vm1783_vm15, %v1757_v48, 0.0  ;;  %v1431_v41 = vpop.xlane.xlu1 %1430 }
 0x38d   :  { %v1695_v43 = vsub.f32 %v1631_v16, %v8446_v45  ;;  %v1632_v36 = vadd.f32 %v1547_v12, %v9639_v8  ;;  %4250 = vpow2.f32 %v2607_v47  ;;  %v1549_v59 = vmul.f32 0.6931472, %v4239_v51  ;;  %v8576_v30 = vpop.xlane.xlu0 %833  ;;  %v1978_v12 = vld [vmem:[%s9063_s4 + $0x1b8] sm:$0xff]  ;;  %v9643_v16 = vld [vmem:[#allocation10_spill] sm:$0xff] }
 0x38e   :  { %4252 = vlog2.f32 %v8448_v49  ;;  %v3560_v38 = vsel %vm3460_vm2, %v3446_v33, 0.0  ;;  %v3100_v31 = vmul.f32 %v8433_v24, %v3099_v27  ;;  %v1551_v57 = vmul.f32 0.6931472, %v4241_v55 }
 0x38f   :  { %v1863_v4 = vsel %vm1783_vm15, %v1758_v53, 0.0  ;;  %v3097_v34 = vmul.f32 0.6931472, %v4243_v17  ;;  %v3751_v6 = vunpack.c.3.s8 %v8351_v37  ;;  %v1862_v45 = vadd.f32 %v1861_v28, %v1860_v1 }
 0x390   :  { %v3447_v26 = vsel %vm230_vm13, %v3254_v62, 0.0  ;;  %vm8582_vm6 = vcmp.lt.f32.partialorder %v3101_v54, 0.0004427343  ;;  %4254 = vlog2.f32 %v3104_v23  ;;  %vm9642_vm4 = vcmp.lt.s32.totalorder %v8013_v25, %v5530_v10  ;;  %v9644_v25 = vld [vmem:[#allocation11_spill] sm:$0xff]  ;;  %v8616_v23 = vld [vmem:[%s9064_s5 + $0x70] sm:$0xff]  }
 0x391   :  { %v4245_v24 = vpop.eup %4244  ;;  %v1759_v52 = vsel %vm9642_vm4, %v1695_v43, 0.0  ;;  %v1696_v35 = vsub.f32 %v1632_v36, %v8479_v13  ;;  %4256 = vlog2.f32 %v8481_v32  ;;  %vm231_vm7 = vcmp.lt.s32.totalorder %v8424_v2, %v5530_v10  ;;  %v8601_v13 = vpop.xlane.xlu0 %836 }
 0x392   :  { %v3107_v37 = vmul.f32 -0.5, %v8545_v20  ;;  %v1864_v42 = vadd.f32 %v1863_v4, %v1862_v45  ;;  %v1633_v5 = vadd.f32 %v1549_v59, %v9643_v16  ;;  %v3561_v47 = vadd.f32 %v3560_v38, %v3559_v58  ;;  %v1434_v32 = vpop.xlane.xlu1 %1433  ;;  %v9646_v4 = vld [vmem:[#allocation18_spill] sm:$0xff] }
 0x393   :  { %v8598_v51 = vsub.f32 %v2233_v63, %v2297_v18  ;;  %v1634_v48 = vadd.f32 %v1551_v57, %v9644_v25  ;;  %v3562_v27 = vsel %vm3460_vm2, %v3447_v26, 0.0  ;;  %v3103_v55 = vsel %vm8582_vm6, %v3100_v31, %v3097_v34 }
 0x394   :  { %v2170_v1 = vcvt.s32.f32 %v3751_v6  ;;  %v1553_v33 = vmul.f32 0.6931472, %v4245_v24  ;;  %v1865_v17 = vsel %vm1783_vm15, %v1759_v52, 0.0  ;;  %4258 = vlog2.f32 %v8510_v15 }
 0x395   :  { %v2426_v53 = vand.u32 2147483647, %v1978_v12  ;;  %v4247_v58 = vpop.eup %4246  ;;  %vm9645_vm10 = vcmp.lt.s32.totalorder %v8046_v19, %v5530_v10  ;;  %v1697_v18 = vsub.f32 %v1633_v5, %v8508_v44  ;;  %v3108_v62 = vadd.f32 1.0, %v3107_v37  ;;  %v8621_v19 = vpop.xlane.xlu0 %839 }
 0x396   :  { %v1760_v63 = vsel %vm9645_vm10, %v1696_v35, 0.0  ;;  %v3110_v54 = vand.u32 2147483647, %v8545_v20  ;;  %4260 = vlog2.f32 %v8532_v61  ;;  %v3563_v28 = vadd.f32 %v3562_v27, %v3561_v47  ;;  %v1437_v44 = vpop.xlane.xlu1 %1436  ;;  %v9647_v61 = vld [vmem:[#allocation88_spill] sm:$0xff]  ;;  %v9651_v47 = vld [vmem:[#allocation22_spill] sm:$0xff]  ;;  %v1980_v27 = vld [vmem:[%s9063_s4 + $0x1c8] sm:$0xff] }
 0x397   :  { %v3255_v15 = vadd.f32 %v3103_v55, %v8504_v0  ;;  %v3755_v43 = vunpack.c.1.s8 %v8616_v23  ;;  %v1866_v8 = vadd.f32 %v1865_v17, %v1864_v42  ;;  %4262 = vlog2.f32 %v1428_v11 }
 0x398   :  { %v2234_v36 = vmax.f32 %v1978_v12, 0.0  ;;  %v2298_v59 = vmul.f32 %v2170_v1, %v1978_v12  ;;  %v4249_v38 = vpop.eup %4248  ;;  %v1555_v31 = vmul.f32 0.6931472, %v4247_v58  ;;  %v1867_v57 = vsel %vm1783_vm15, %v1760_v63, 0.0 }
 0x399   :  { %v1635_v34 = vadd.f32 %v1553_v33, %v9646_v4  ;;  %v2490_v6 = vsub.f32 0.0, %v2426_v53  ;;  %vm9648_vm11 = vcmp.lt.s32.totalorder %v9647_v61, %v5530_v10  ;;  %v1698_v45 = vsub.f32 %v1634_v48, %v8530_v46  ;;  %v8644_v12 = vpop.xlane.xlu0 %842 }
 0x39a   :  { %v1761_v0 = vsel %vm9648_vm11, %v1697_v18, 0.0  ;;  %4264 = vlog2.f32 %v1431_v41  ;;  %v8630_v11 = vmul.f32 %v8545_v20, %v3108_v62  ;;  %v8632_v26 = vpop.eup %4250  ;;  %v3448_v49 = vsel %vm231_vm7, %v3255_v15, 0.0  ;;  %v1440_v20 = vpop.xlane.xlu1 %1439  ;;  %v9653_v15 = vld [vmem:[#allocation24_spill] sm:$0xff] }
 0x39b   :  { %vm8637_vm8 = vcmp.lt.f32.partialorder %v3110_v54, 0.0004427343  ;;  %v8642_v52 = vadd.s32 440, %v5492_v29  ;;  %v2172_v35 = vcvt.s32.f32 %v3755_v43  ;;  %v4253_v37 = vpop.eup %4252  ;;  %v1557_v46 = vmul.f32 0.6931472, %v4249_v38 }
 0x39c   :  { %v1868_v41 = vadd.f32 %v1867_v57, %v1866_v8  ;;  %v3116_v42 = vmul.f32 -0.5, %v8632_v26  ;;  %v8647_v16 = vsub.f32 %v2234_v36, %v2298_v59  ;;  %v1869_v5 = vsel %vm1783_vm15, %v1761_v0, 0.0 }
 0x39d   :  { %v1636_v25 = vadd.f32 %v1555_v31, %v9651_v47  ;;  %4266 = vlog2.f32 %v1434_v32  ;;  %v2609_v48 = vmul.f32 1.442695, %v2490_v6  ;;  %v4255_v55 = vpop.eup %4254  ;;  %v1762_v33 = vsel %vm223_vm0, %v1698_v45, 0.0  ;;  %v8661_v8 = vpop.xlane.xlu0 %845 }
 0x39e   :  { %v1699_v17 = vsub.f32 %v1635_v34, %v8558_v9  ;;  %v3564_v53 = vsel %vm3460_vm2, %v3448_v49, 0.0  ;;  %v2236_v58 = vmax.f32 %v1980_v27, 0.0  ;;  %v4257_v63 = vpop.eup %4256  ;;  %v1559_v18 = vmul.f32 0.6931472, %v4253_v37  ;;  %v1443_v36 = vpop.xlane.xlu1 %1442  ;;  %v8666_v9 = vld [vmem:[%s9063_s4 + $0x1c0] sm:$0xff]  ;;  %v9654_v49 = vld [vmem:[#allocation25_spill] sm:$0xff] }
 0x39f   :  { %4268 = vlog2.f32 %v1437_v44  ;;  %v3113_v32 = vadd.f32 1.0, %v8632_v26  ;;  %v2300_v62 = vmul.f32 %v2172_v35, %v1980_v27  ;;  %v1870_v54 = vadd.f32 %v1869_v5, %v1868_v41 }
 0x3a0   :  { %v1637_v43 = vadd.f32 %v1557_v46, %v9653_v15  ;;  %v3117_v59 = vadd.f32 1.0, %v3116_v42  ;;  %v2428_v38 = vand.u32 2147483647, %v1980_v27  ;;  %v1871_v31 = vsel %vm1783_vm15, %v1762_v33, 0.0 }
 0x3a1   :  { %v8669_v57 = vadd.f32 %v3564_v53, %v3563_v28  ;;  %v3119_v44 = vand.u32 2147483647, %v8632_v26  ;;  %4270 = vpow2.f32 %v2609_v48  ;;  %v4259_v4 = vpop.eup %4258  ;;  %v1561_v34 = vmul.f32 0.6931472, %v4257_v63  ;;  %v8679_v41 = vpop.xlane.xlu0 %848 }
 0x3a2   :  { %v1763_v6 = vsel %vm224_vm3, %v1699_v17, 0.0  ;;  %v1700_v61 = vsub.f32 %v1636_v25, %v8576_v30  ;;  %v3106_v0 = vmul.f32 0.6931472, %v4255_v55  ;;  %v1701_v45 = vsub.f32 %v1637_v43, %v8601_v13  ;;  %v1446_v42 = vpop.xlane.xlu1 %1445  ;;  %v9655_v55 = vld [vmem:[#allocation67_spill] sm:$0xff]  ;;  %v9656_v43 = vld [vmem:[#allocation70_spill] sm:$0xff] }
 0x3a3   :  { %v1638_v35 = vadd.f32 %v1559_v18, %v9654_v49  ;;  %4272 = vlog2.f32 %v3113_v32  ;;  %v2427_v28 = vand.u32 2147483647, %v8666_v9  ;;  %v4261_v37 = vpop.eup %4260  ;;  %v1872_v46 = vadd.f32 %v1871_v31, %v1870_v54 }
 0x3a4   :  { %v8682_v5 = vmul.f32 %v8632_v26, %v3117_v59  ;;  %v8684_v39 = vsub.f32 %v2236_v58, %v2300_v62  ;;  %v2492_v47 = vsub.f32 0.0, %v2428_v38  ;;  %v4263_v30 = vpop.eup %4262  ;;  %v1563_v25 = vmul.f32 0.6931472, %v4259_v4 }
 0x3a5   :  { %v1873_v13 = vsel %vm1783_vm15, %v1763_v6, 0.0  ;;  %v1702_v48 = vsub.f32 %v1638_v35, %v8621_v19  ;;  %4274 = vlog2.f32 %v1443_v36  ;;  %v1764_v27 = vsel %vm225_vm14, %v1700_v61, 0.0  ;;  %v852_v24 = vpop.xlane.xlu0 %851  ;;  %v9657_v61 = vld [vmem:[#allocation72_spill] sm:$0xff]  ;;  %v9658_v35 = vld [vmem:[#allocation75_spill] sm:$0xff] }
 0x3a6   :  { %v1639_v1 = vadd.f32 %v1561_v34, %v9655_v55  ;;  %v3112_v33 = vsel %vm8637_vm8, %v8630_v11, %v3106_v0  ;;  %v8696_v17 = vadd.s32 456, %v5492_v29  ;;  %v1565_v58 = vmul.f32 0.6931472, %v4261_v37  ;;  %v1449_v11 = vpop.xlane.xlu1 %1448 }
 0x3a7   :  { %v4265_v53 = vpop.eup %4264  ;;  %v1765_v19 = vsel %vm226_vm1, %v1701_v45, 0.0  ;;  %4276 = vlog2.f32 %v1440_v20  ;;  %v2491_v63 = vsub.f32 0.0, %v2427_v28  ;;  %v1874_v18 = vadd.f32 %v1873_v13, %v1872_v46 }
 0x3a8   :  { %v1567_v32 = vmul.f32 0.6931472, %v4263_v30  ;;  %v3759_v62 = vunpack.c.3.s8 %v8616_v23  ;;  %v2238_v54 = vmax.f32 %v8704_v56, 0.0  ;;  %v1875_v15 = vsel %vm1783_vm15, %v1764_v27, 0.0 }
 0x3a9   :  { %v1766_v21 = vsel %vm227_vm12, %v1702_v48, 0.0  ;;  %v1703_v20 = vsub.f32 %v1639_v1, %v8644_v12  ;;  %v1640_v36 = vadd.f32 %v1563_v25, %v9656_v43  ;;  %vm232_vm0 = vcmp.lt.s32.totalorder %v8528_v3, %v5530_v10  ;;  %v855_v37 = vpop.xlane.xlu0 %854  ;;  %v9659_v48 = vld [vmem:[#allocation77_spill] sm:$0xff] }
 0x3aa   :  { %v4267_v59 = vpop.eup %4266  ;;  %v1569_v38 = vmul.f32 0.6931472, %v4265_v53  ;;  %v1877_v31 = vsel %vm1783_vm15, %v1765_v19, 0.0  ;;  %v3256_v4 = vadd.f32 %v3112_v33, %v8537_v40  ;;  %v2430_v34 = vand.u32 2147483647, %v8704_v56  ;;  %v1452_v46 = vpop.xlane.xlu1 %1451 }
 0x3ab   :  { %v1704_v6 = vsub.f32 %v1640_v36, %v8661_v8  ;;  %v1641_v22 = vadd.f32 %v1565_v58, %v9657_v61  ;;  %4278 = vlog2.f32 %v1446_v42  ;;  %v2611_v0 = vmul.f32 1.442695, %v2491_v63 }
 0x3ac   :  { %v4269_v12 = vpop.eup %4268  ;;  %v1876_v45 = vadd.f32 %v1875_v15, %v1874_v18  ;;  %v1879_v49 = vsel %vm1783_vm15, %v1766_v21, 0.0  ;;  %v1642_v28 = vadd.f32 %v1567_v32, %v9658_v35  ;;  %vm233_vm3 = vcmp.lt.s32.totalorder %v8555_v60, %v5530_v10 }
 0x3ad   :  { %v2613_v40 = vmul.f32 1.442695, %v2492_v47  ;;  %v1571_v30 = vmul.f32 0.6931472, %v4267_v59  ;;  %v1767_v8 = vsel %vm228_vm9, %v1703_v20, 0.0  ;;  %v1705_v42 = vsub.f32 %v1641_v22, %v8679_v41  ;;  %v858_v19 = vpop.xlane.xlu0 %857 }
 0x3ae   :  { %4280 = vlog2.f32 %v1449_v11  ;;  %v8729_v25 = vpop.eup %4270  ;;  %v1878_v13 = vadd.f32 %v1877_v31, %v1876_v45  ;;  %v1643_v27 = vadd.f32 %v1569_v38, %v9659_v48  ;;  %vm234_vm14 = vcmp.lt.s32.totalorder %v8642_v52, %v5530_v10  ;;  %v1455_v63 = vpop.xlane.xlu1 %1454  ;;  %v9663_v31 = vld [vmem:[#allocation89_spill] sm:$0xff] }
 0x3af   :  { %v8734_v55 = vcvt.s32.f32 %v3759_v62  ;;  %v2494_v1 = vsub.f32 0.0, %v2430_v34  ;;  %v1573_v47 = vmul.f32 0.6931472, %v4269_v12  ;;  %v1768_v50 = vsel %vm229_vm5, %v1704_v6, 0.0 }
 0x3b0   :  { %v1706_v33 = vsub.f32 %v1642_v28, %v852_v24  ;;  %4282 = vpow2.f32 %v2611_v0  ;;  %v4273_v41 = vpop.eup %4272  ;;  %v1880_v53 = vadd.f32 %v1879_v49, %v1878_v13  ;;  %v1881_v58 = vsel %vm1783_vm15, %v1767_v8, 0.0  ;;  %v8750_v24 = vld [vmem:[%s9063_s4 + $0x1e8] sm:$0xff] }
 0x3b1   :  { %4284 = vpow2.f32 %v2613_v40  ;;  %v8741_v18 = vadd.s32 472, %v5492_v29  ;;  %v1769_v32 = vsel %vm230_vm13, %v1705_v42, 0.0  ;;  %v1707_v11 = vsub.f32 %v1643_v27, %v855_v37  ;;  %v861_v2 = vpop.xlane.xlu0 %860 }
 0x3b2   :  { %4286 = vlog2.f32 %v1452_v46  ;;  %v1644_v62 = vadd.f32 %v1571_v30, %v9660_v14  ;;  %v4275_v15 = vpop.eup %4274  ;;  %v1883_v21 = vsel %vm1783_vm15, %v1768_v50, 0.0  ;;  %v8756_v20 = vsel %vm232_vm0, %v3256_v4, 0.0  ;;  %v8771_v4 = vld [vmem:[%s9063_s4 + $0x1d0] sm:$0xff]  ;;  %v1458_v0 = vpop.xlane.xlu1 %1457 }
 0x3b3   :  { %4288 = vlog2.f32 %v1455_v63  ;;  %v2617_v7 = vmul.f32 1.442695, %v2494_v1  ;;  %v1882_v43 = vadd.f32 %v1881_v58, %v1880_v53  ;;  %v1770_v36 = vsel %vm231_vm7, %v1706_v33, 0.0  ;;  %v9664_v53 = vld [vmem:[#allocation102_spill] sm:$0xff] }
 0x3b4   :  { %vm8763_vm1 = vcmp.lt.f32.partialorder %v3119_v44, 0.0004427343  ;;  %v1708_v38 = vsub.f32 %v1644_v62, %v858_v19  ;;  %v1645_v34 = vadd.f32 %v1573_v47, %v9663_v31  ;;  %v4277_v6 = vpop.eup %4276  ;;  %v1885_v61 = vsel %vm1783_vm15, %v1769_v32, 0.0  ;;  %v8801_v19 = vld [vmem:[%s9063_s4 + $0x1f8] sm:$0xff] }
 0x3b5   :  { %v8774_v22 = vmul.f32 0.6931472, %v4273_v41  ;;  %vm236_vm12 = vcmp.lt.s32.totalorder %v8696_v17, %v5530_v10  ;;  %v3754_v26 = vunpack.c.0.s8 %v8616_v23  ;;  %v2432_v44 = vand.u32 2147483647, %v8750_v24  ;;  %v867_v27 = vpop.xlane.xlu0 %866 }
 0x3b6   :  { %v1884_v12 = vadd.f32 %v1883_v21, %v1882_v43  ;;  %v1577_v45 = vmul.f32 0.6931472, %v4275_v15  ;;  %v1771_v49 = vsel %vm232_vm0, %v1707_v11, 0.0  ;;  %v1709_v35 = vsub.f32 %v1645_v34, %v861_v2  ;;  %v1461_v1 = vpop.xlane.xlu1 %1460 }
 0x3b7   :  { %v1887_v28 = vsel %vm1783_vm15, %v1770_v36, 0.0  ;;  %v3122_v37 = vadd.f32 1.0, %v8729_v25  ;;  %v3125_v46 = vmul.f32 -0.5, %v8729_v25  ;;  %v2429_v40 = vand.u32 2147483647, %v8771_v4 }
 0x3b8   :  { %v1575_v30 = vmul.f32 0.6931472, %v4277_v6  ;;  %v1886_v8 = vadd.f32 %v1885_v61, %v1884_v12  ;;  %v1772_v42 = vsel %vm233_vm3, %v1708_v38, 0.0  ;;  %v3128_v13 = vand.u32 2147483647, %v8729_v25  ;;  %v4279_v48 = vpop.eup %4278 }
 0x3b9   :  { %v1889_v3 = vsel %vm1783_vm15, %v1771_v49, 0.0  ;;  %4290 = vpow2.f32 %v2617_v7  ;;  %v8792_v47 = vcvt.s32.f32 %v3754_v26  ;;  %v2496_v50 = vsub.f32 0.0, %v2432_v44  ;;  %v9665_v7 = vld [vmem:[#allocation66_spill] sm:$0xff] }
 0x3ba   :  { %v1888_v33 = vadd.f32 %v1887_v28, %v1886_v8  ;;  %v1773_v41 = vsel %vm234_vm14, %v1709_v35, 0.0  ;;  %v1647_v58 = vadd.f32 %v1577_v45, %v9664_v53  ;;  %4292 = vlog2.f32 %v1461_v1  ;;  %v864_v31 = vpop.xlane.xlu1 %863  ;;  %v9666_v8 = vld [vmem:[#allocation71_spill] sm:$0xff]  ;;  %v9667_v1 = vld [vmem:[#allocation110_spill] sm:$0xff] }
 0x3bb   :  { %v4281_v63 = vpop.eup %4280  ;;  %v1891_v32 = vsel %vm1783_vm15, %v1772_v42, 0.0  ;;  %4294 = vlog2.f32 %v1458_v0  ;;  %v8805_v11 = vadd.s32 448, %v5492_v29  ;;  %v2493_v14 = vsub.f32 0.0, %v2429_v40 }
 0x3bc   :  { %v1579_v62 = vmul.f32 0.6931472, %v4279_v48  ;;  %v1890_v15 = vadd.f32 %v1889_v3, %v1888_v33  ;;  %v1711_v21 = vsub.f32 %v1647_v58, %v867_v27  ;;  %v1646_v43 = vadd.f32 %v1575_v30, %v9665_v7 }
 0x3bd   :  { %v8808_v36 = vpop.eup %4282  ;;  %4296 = vlog2.f32 %v3122_v37  ;;  %v1893_v38 = vsel %vm1783_vm15, %v1773_v41, 0.0  ;;  %v2615_v34 = vmul.f32 1.442695, %v2493_v14  ;;  %v2434_v6 = vand.u32 2147483647, %v8801_v19 }
 0x3be   :  { %v8812_v61 = vpop.eup %4284  ;;  %v1581_v2 = vmul.f32 0.6931472, %v4281_v63  ;;  %v1892_v0 = vadd.f32 %v1891_v32, %v1890_v15  ;;  %v1710_v26 = vsub.f32 %v1646_v43, %v864_v31  ;;  %v2621_v44 = vmul.f32 1.442695, %v2496_v50  ;;  %v870_v48 = vpop.xlane.xlu1 %869 }
 0x3bf   :  { %v4287_v12 = vpop.eup %4286  ;;  %v3121_v45 = vsel %vm8763_vm1, %v8682_v5, %v8774_v22  ;;  %vm235_vm9 = vcmp.lt.s32.totalorder %v8805_v11, %v5530_v10  ;;  %4298 = vpow2.f32 %v2615_v34  ;;  %v8821_v49 = vadd.s32 464, %v5492_v29  ;;  %v873_v22 = vpop.xlane.xlu0 %872 }
 0x3c0   :  { %v4289_v35 = vpop.eup %4288  ;;  %v1894_v28 = vadd.f32 %v1893_v38, %v1892_v0  ;;  %v1775_v37 = vsel %vm236_vm12, %v1711_v21, 0.0  ;;  %v3131_v40 = vadd.f32 1.0, %v8808_v36  ;;  %v1774_v59 = vsel %vm235_vm9, %v1710_v26, 0.0  ;;  %v8849_v21 = vld [vmem:[%s9063_s4 + $0x1e0] sm:$0xff] }
 0x3c1   :  { %v3126_v5 = vadd.f32 1.0, %v3125_v46  ;;  %v1895_v30 = vsel %vm1783_vm15, %v1774_v59, 0.0  ;;  %v1648_v42 = vadd.f32 %v1579_v62, %v9666_v8  ;;  %v2498_v3 = vsub.f32 0.0, %v2434_v6 }
 0x3c2   :  { %v3140_v27 = vadd.f32 1.0, %v8812_v61  ;;  %v1649_v50 = vadd.f32 %v1581_v2, %v9667_v1  ;;  %v1896_v33 = vadd.f32 %v1895_v30, %v1894_v28  ;;  %4300 = vpow2.f32 %v2621_v44  ;;  %v876_v34 = vpop.xlane.xlu1 %875  ;;  %v9671_v44 = vld [vmem:[#allocation76_spill] sm:$0xff]  ;;  %v9672_v1 = vld [vmem:[#allocation27_spill] sm:$0xff] }
 0x3c3   :  { %v1583_v41 = vmul.f32 0.6931472, %v4287_v12  ;;  %v1585_v53 = vmul.f32 0.6931472, %v4289_v35  ;;  %v1897_v58 = vsel %vm1783_vm15, %v1775_v37, 0.0  ;;  %v1712_v63 = vsub.f32 %v1648_v42, %v870_v48 }
 0x3c4   :  { %v1713_v32 = vsub.f32 %v1649_v50, %v873_v22  ;;  %4302 = vlog2.f32 %v3131_v40  ;;  %vm237_vm5 = vcmp.lt.s32.totalorder %v8821_v49, %v5530_v10  ;;  %v1898_v46 = vadd.f32 %v1897_v58, %v1896_v33  ;;  %v879_v40 = vpop.xlane.xlu0 %878 }
 0x3c5   :  { %v8839_v14 = vsel %vm3460_vm2, %v8756_v20, 0.0  ;;  %vm238_vm13 = vcmp.lt.s32.totalorder %v8741_v18, %v5530_v10  ;;  %v1776_v62 = vsel %vm237_vm5, %v1712_v63, 0.0  ;;  %v2625_v15 = vmul.f32 1.442695, %v2498_v3 }
 0x3c6   :  { %v8851_v7 = vpop.eup %4290  ;;  %v3257_v43 = vadd.f32 %v3121_v45, %v8598_v51  ;;  %v8855_v20 = vmul.f32 %v8729_v25, %v3126_v5  ;;  %v2235_v38 = vmax.f32 %v8666_v9, 0.0  ;;  %v1899_v31 = vsel %vm1783_vm15, %v1776_v62, 0.0  ;;  %v9670_v51 = vld [vmem:[#allocation116_spill] sm:$0xff] }
 0x3c7   :  { %v4293_v6 = vpop.eup %4292  ;;  %vm8861_vm6 = vcmp.lt.f32.partialorder %v3128_v13, 0.0004427343  ;;  %4304 = vlog2.f32 %v3140_v27  ;;  %v2299_v0 = vmul.f32 %v8792_v47, %v8666_v9  ;;  %v1651_v26 = vadd.f32 %v1585_v53, %v9670_v51  ;;  %v882_v51 = vpop.xlane.xlu1 %881 }
 0x3c8   :  { %v1650_v12 = vadd.f32 %v1583_v41, %v9671_v44  ;;  %v4295_v45 = vpop.eup %4294  ;;  %v1589_v35 = vmul.f32 0.6931472, %v4293_v6  ;;  %v1777_v28 = vsel %vm238_vm13, %v1713_v32, 0.0  ;;  %v1900_v37 = vadd.f32 %v1899_v31, %v1898_v46  ;;  %v8900_v31 = vld [vmem:[%s9063_s4 + $0x1f0] sm:$0xff]  ;;  %v885_v60 = vpop.xlane.xlu0 %884 }
 0x3c9   :  { %v2431_v25 = vand.u32 2147483647, %v8849_v21  ;;  %v3158_v13 = vadd.f32 1.0, %v8851_v7  ;;  %4306 = vpow2.f32 %v2625_v15  ;;  %v8875_v59 = vadd.s32 480, %v5492_v29 }
 0x3ca   :  { %v1714_v9 = vsub.f32 %v1650_v12, %v876_v34  ;;  %v4297_v47 = vpop.eup %4296  ;;  %v3146_v5 = vand.u32 2147483647, %v8812_v61  ;;  %v3134_v22 = vmul.f32 -0.5, %v8808_v36  ;;  %v8880_v30 = vadd.s32 488, %v5492_v29 }
 0x3cb   :  { %v2495_v8 = vsub.f32 0.0, %v2431_v25  ;;  %v1587_v42 = vmul.f32 0.6931472, %v4295_v45  ;;  %v1901_v48 = vsel %vm1783_vm15, %v1777_v28, 0.0  ;;  %v1715_v3 = vsub.f32 %v1651_v26, %v879_v40 }
 0x3cc   :  { %vm239_vm4 = vcmp.lt.s32.totalorder %v8875_v59, %v5530_v10  ;;  %v8885_v27 = vpop.eup %4298  ;;  %v1653_v50 = vadd.f32 %v1589_v35, %v9672_v1  ;;  %v1902_v53 = vadd.f32 %v1901_v48, %v1900_v37  ;;  %v3450_v58 = vsel %vm233_vm3, %v3257_v43, 0.0 }
 0x3cd   :  { %v2619_v33 = vmul.f32 1.442695, %v2495_v8  ;;  %v1778_v41 = vsel %vm239_vm4, %v1714_v9, 0.0  ;;  %v3143_v63 = vmul.f32 -0.5, %v8812_v61  ;;  %4308 = vlog2.f32 %v3158_v13 }
 0x3ce   :  { %v3149_v32 = vadd.f32 1.0, %v8885_v27  ;;  %v3124_v46 = vmul.f32 0.6931472, %v4297_v47  ;;  %v3135_v62 = vadd.f32 1.0, %v3134_v22  ;;  %v1903_v15 = vsel %vm1783_vm15, %v1778_v41, 0.0 }
 0x3cf   :  { %4310 = vpow2.f32 %v2619_v33  ;;  %v8902_v34 = vpop.eup %4300  ;;  %v2363_v6 = vsub.f32 %v2235_v38, %v2299_v0  ;;  %vm240_vm7 = vcmp.lt.s32.totalorder %v8880_v30, %v5530_v10  ;;  %v8907_v43 = vadd.s32 504, %v5492_v29  ;;  %v9675_v38 = vld [vmem:[#allocation81_spill] sm:$0xff] }
 0x3d0   :  { %4312 = vlog2.f32 %v3149_v32  ;;  %vm8909_vm10 = vcmp.lt.f32.partialorder %v3146_v5, 0.0004427343  ;;  %v1779_v44 = vsel %vm240_vm7, %v1715_v3, 0.0  ;;  %v1717_v12 = vsub.f32 %v1653_v50, %v885_v60 }
 0x3d1   :  { %v1904_v45 = vadd.f32 %v1903_v15, %v1902_v53  ;;  %v1652_v0 = vadd.f32 %v1587_v42, %v9675_v38  ;;  %v4303_v35 = vpop.eup %4302  ;;  %v3144_v28 = vadd.f32 1.0, %v3143_v63  ;;  %v3137_v37 = vand.u32 2147483647, %v8808_v36 }
 0x3d2   :  { %v2433_v25 = vand.u32 2147483647, %v8900_v31  ;;  %v8920_v13 = vadd.s32 496, %v5492_v29  ;;  %v3130_v40 = vsel %vm8861_vm6, %v8855_v20, %v3124_v46  ;;  %v3136_v9 = vmul.f32 %v8808_v36, %v3135_v62 }
 0x3d3   :  { %v3758_v47 = vunpack.c.2.s8 %v8616_v23  ;;  %v1716_v5 = vsub.f32 %v1652_v0, %v882_v51  ;;  %v3176_v22 = vadd.f32 1.0, %v8902_v34  ;;  %v1905_v8 = vsel %vm1783_vm15, %v1779_v44, 0.0 }
 0x3d4   :  { %vm242_vm11 = vcmp.lt.s32.totalorder %v8907_v43, %v5530_v10  ;;  %v2497_v42 = vsub.f32 0.0, %v2433_v25  ;;  %v4305_v48 = vpop.eup %4304  ;;  %v3133_v29 = vmul.f32 0.6931472, %v4303_v35  ;;  %v3152_v3 = vmul.f32 -0.5, %v8885_v27 }
 0x3d5   :  { %v1781_v20 = vsel %vm242_vm11, %v1717_v12, 0.0  ;;  %v1906_v36 = vadd.f32 %v1905_v8, %v1904_v45  ;;  %v3145_v23 = vmul.f32 %v8812_v61, %v3144_v28  ;;  %v3161_v2 = vmul.f32 -0.5, %v8851_v7 }
 0x3d6   :  { %vm8937_vm8 = vcmp.lt.f32.partialorder %v3137_v37, 0.0004427343  ;;  %vm241_vm0 = vcmp.lt.s32.totalorder %v8920_v13, %v5530_v10  ;;  %v8943_v50 = vpop.eup %4306  ;;  %v3258_v33 = vadd.f32 %v3130_v40, %v8647_v16  ;;  %v2173_v41 = vcvt.s32.f32 %v3758_v47 }
 0x3d7   :  { %v2623_v53 = vmul.f32 1.442695, %v2497_v42  ;;  %v1780_v63 = vsel %vm241_vm0, %v1716_v5, 0.0  ;;  %v3142_v61 = vmul.f32 0.6931472, %v4305_v48  ;;  %4314 = vlog2.f32 %v3176_v22 }
 0x3d8   :  { %v1909_v32 = vsel %vm1783_vm15, %v1781_v20, 0.0  ;;  %v1907_v46 = vsel %vm1783_vm15, %v1780_v63, 0.0  ;;  %v3139_v62 = vsel %vm8937_vm8, %v3136_v9, %v3133_v29  ;;  %v3153_v15 = vadd.f32 1.0, %v3152_v3 }
 0x3d9   :  { %4316 = vpow2.f32 %v2623_v53  ;;  %v1908_v60 = vadd.f32 %v1907_v46, %v1906_v36  ;;  %v3567_v16 = vadd.f32 %v8839_v14, %v8669_v57  ;;  %v2302_v51 = vmul.f32 %v8734_v55, %v8704_v56  ;;  %v8970_v55 = vld [vmem:[%s9064_s5 + $0x78] sm:$0xff]  }
 0x3da   :  { %v3155_v44 = vand.u32 2147483647, %v8885_v27  ;;  %v3194_v12 = vadd.f32 1.0, %v8943_v50  ;;  %v4309_v45 = vpop.eup %4308  ;;  %v3568_v38 = vsel %vm3460_vm2, %v3450_v58, 0.0  ;;  %v3451_v0 = vsel %vm234_vm14, %v3258_v33, 0.0 }
 0x3db   :  { %v3162_v35 = vadd.f32 1.0, %v3161_v2  ;;  %v1910_v28 = vadd.f32 %v1909_v32, %v1908_v60  ;;  %v3148_v57 = vsel %vm8909_vm10, %v3145_v23, %v3142_v61  ;;  %v3259_v14 = vadd.f32 %v3139_v62, %v2363_v6 }
 0x3dc   :  { %v8963_v37 = vpop.eup %4310  ;;  %v2237_v25 = vmax.f32 %v8771_v4, 0.0  ;;  %v2301_v58 = vmul.f32 %v2173_v41, %v8771_v4  ;;  %v3164_v52 = vand.u32 2147483647, %v8851_v7  ;;  %v3763_v9 = vunpack.c.1.s8 %v8970_v55 }
 0x3dd   :  { %v4313_v40 = vpop.eup %4312  ;;  %v3154_v47 = vmul.f32 %v8885_v27, %v3153_v15  ;;  %v3167_v26 = vadd.f32 1.0, %v8963_v37  ;;  %1911 = vadd.xlane.f32.xlu1 %v1910_v28  ;;  %v3569_v6 = vadd.f32 %v3568_v38, %v3567_v16  ;;  %vm8978_vm15 = vcmp.lt.f32.partialorder %v3155_v44, 0.0004427343 }
 0x3de   :  { %v3151_v5 = vmul.f32 0.6931472, %v4313_v40  ;;  %4318 = vlog2.f32 %v3194_v12  ;;  %v3570_v8 = vsel %vm3460_vm2, %v3451_v0, 0.0  ;;  %v3260_v4 = vadd.f32 %v3148_v57, %v8684_v39 }
 0x3df   :  { %v3163_v42 = vmul.f32 %v8851_v7, %v3162_v35  ;;  %4320 = vlog2.f32 %v3167_v26  ;;  %v3160_v48 = vmul.f32 0.6931472, %v4309_v45  ;;  %v3452_v27 = vsel %vm235_vm9, %v3259_v14, 0.0 }
 0x3e0   :  { %v2365_v29 = vsub.f32 %v2237_v25, %v2301_v58  ;;  %v3762_v3 = vunpack.c.0.s8 %v8970_v55  ;;  %vm8989_vm3 = vcmp.lt.f32.partialorder %v3164_v52, 0.0004427343  ;;  %v3179_v36 = vmul.f32 -0.5, %v8902_v34 }
 0x3e1   :  { %v3157_v39 = vsel %vm8978_vm15, %v3154_v47, %v3151_v5  ;;  %v3571_v23 = vadd.f32 %v3570_v8, %v3569_v6  ;;  %v2176_v7 = vcvt.s32.f32 %v3763_v9  ;;  %v3453_v2 = vsel %vm236_vm12, %v3260_v4, 0.0 }
 0x3e2   :  { %v2366_v11 = vsub.f32 %v2238_v54, %v2302_v51  ;;  %v3572_v1 = vsel %vm3460_vm2, %v3452_v27, 0.0  ;;  %v3170_v33 = vmul.f32 -0.5, %v8963_v37  ;;  %v3166_v41 = vsel %vm8989_vm3, %v3163_v42, %v3160_v48 }
 0x3e3   :  { %v3261_v53 = vadd.f32 %v3157_v39, %v2365_v29  ;;  %v2175_v63 = vcvt.s32.f32 %v3762_v3  ;;  %v2240_v32 = vmax.f32 %v8750_v24, 0.0  ;;  %v3180_v46 = vadd.f32 1.0, %v3179_v36 }
 0x3e4   :  { %v4315_v61 = vpop.eup %4314  ;;  %v3767_v62 = vunpack.c.3.s8 %v8970_v55  ;;  %v3574_v15 = vsel %vm3460_vm2, %v3453_v2, 0.0  ;;  %v3573_v56 = vadd.f32 %v3572_v1, %v3571_v23  ;;  %v2304_v54 = vmul.f32 %v2176_v7, %v8750_v24 }
 0x3e5   :  { %v3182_v60 = vand.u32 2147483647, %v8902_v34  ;;  %v3262_v16 = vadd.f32 %v3166_v41, %v2366_v11  ;;  %v3197_v51 = vmul.f32 -0.5, %v8943_v50  ;;  %v3171_v44 = vadd.f32 1.0, %v3170_v33 }
 0x3e6   :  { %v4317_v17 = vpop.eup %4316  ;;  %v3454_v45 = vsel %vm237_vm5, %v3261_v53, 0.0  ;;  %v2239_v38 = vmax.f32 %v8849_v21, 0.0  ;;  %v2303_v0 = vmul.f32 %v2175_v63, %v8849_v21  ;;  %v3173_v35 = vand.u32 2147483647, %v8963_v37 }
 0x3e7   :  { %v3185_v12 = vadd.f32 1.0, %v4317_v17  ;;  %v3178_v28 = vmul.f32 0.6931472, %v4315_v61  ;;  %v3181_v24 = vmul.f32 %v8902_v34, %v3180_v46  ;;  %v2178_v57 = vcvt.s32.f32 %v3767_v62 }
 0x3e8   :  { %v2368_v14 = vsub.f32 %v2240_v32, %v2304_v54  ;;  %vm9018_vm14 = vcmp.lt.f32.partialorder %v3182_v60, 0.0004427343  ;;  %v3575_v58 = vadd.f32 %v3574_v15, %v3573_v56  ;;  %v3766_v49 = vunpack.c.2.s8 %v8970_v55 }
 0x3e9   :  { %4322 = vlog2.f32 %v3185_v12  ;;  %v3576_v52 = vsel %vm3460_vm2, %v3454_v45, 0.0  ;;  %v2242_v21 = vmax.f32 %v8801_v19, 0.0  ;;  %v3198_v9 = vadd.f32 1.0, %v3197_v51 }
 0x3ea   :  { %v3172_v47 = vmul.f32 %v8963_v37, %v3171_v44  ;;  %v3455_v34 = vsel %vm238_vm13, %v3262_v16, 0.0  ;;  %v3200_v6 = vand.u32 2147483647, %v8943_v50  ;;  %v2367_v5 = vsub.f32 %v2239_v38, %v2303_v0 }
 0x3eb   :  { %v4319_v40 = vpop.eup %4318  ;;  %vm3174_vm1 = vcmp.lt.f32.partialorder %v3173_v35, 0.0004427343  ;;  %v3184_v55 = vsel %vm9018_vm14, %v3181_v24, %v3178_v28  ;;  %v2306_v22 = vmul.f32 %v2178_v57, %v8801_v19  ;;  %v3188_v4 = vmul.f32 -0.5, %v4317_v17 }
 0x3ec   :  { %v4321_v26 = vpop.eup %4320  ;;  %v3577_v42 = vadd.f32 %v3576_v52, %v3575_v58  ;;  %v2177_v48 = vcvt.s32.f32 %v3766_v49  ;;  %v3578_v37 = vsel %vm3460_vm2, %v3455_v34, 0.0  ;;  %v3196_v27 = vmul.f32 0.6931472, %v4319_v40 }
 0x3ed   :  { %v3169_v8 = vmul.f32 0.6931472, %v4321_v26  ;;  %v3199_v29 = vmul.f32 %v8943_v50, %v3198_v9  ;;  %v3264_v3 = vadd.f32 %v3184_v55, %v2368_v14  ;;  %vm3201_vm12 = vcmp.lt.f32.partialorder %v3200_v6, 0.0004427343 }
 0x3ee   :  { %v2370_v36 = vsub.f32 %v2242_v21, %v2306_v22  ;;  %v2241_v39 = vmax.f32 %v8900_v31, 0.0  ;;  %v3189_v23 = vadd.f32 1.0, %v3188_v4  ;;  %v3579_v7 = vadd.f32 %v3578_v37, %v3577_v42 }
 0x3ef   :  { %v3175_v18 = vsel %vm3174_vm1, %v3172_v47, %v3169_v8  ;;  %v2305_v2 = vmul.f32 %v2177_v48, %v8900_v31  ;;  %v3191_v11 = vand.u32 2147483647, %v4317_v17  ;;  %v3202_v1 = vsel %vm3201_vm12, %v3199_v29, %v3196_v27 }
 0x3f0   :  { %v3263_v20 = vadd.f32 %v3175_v18, %v2367_v5  ;;  %v3457_v50 = vsel %vm240_vm7, %v3264_v3, 0.0  ;;  %v3190_v41 = vmul.f32 %v4317_v17, %v3189_v23  ;;  %v3266_v63 = vadd.f32 %v3202_v1, %v2370_v36 }
 0x3f1   :  { %v2369_v32 = vsub.f32 %v2241_v39, %v2305_v2  ;;  %vm3192_vm9 = vcmp.lt.f32.partialorder %v3191_v11, 0.0004427343  ;;  %v3582_v59 = vsel %vm3460_vm2, %v3457_v50, 0.0  ;;  %v3602_v10 = vstv %s3600_s19 }
 0x3f2   :  { %v3456_v19 = vsel %vm239_vm4, %v3263_v20, 0.0  ;;  %v3459_v31 = vsel %vm242_vm11, %v3266_v63, 0.0  ;;  %v3608_v13 = vstv %s3607_s20  ;;  %4324 = vrcp.f32 %v3602_v10 }
 0x3f3   :  { %v3580_v33 = vsel %vm3460_vm2, %v3456_v19, 0.0  ;;  %v3586_v54 = vsel %vm3460_vm2, %v3459_v31, 0.0  ;;  %4326 = vrcp.f32 %v3608_v13 }
 0x3f4   :  { %v3581_v61 = vadd.f32 %v3580_v33, %v3579_v7 }
 0x3f6   :  { %v4323_v53 = vpop.eup %4322  ;;  %v3583_v56 = vadd.f32 %v3582_v59, %v3581_v61 }
 0x3f7   :  { %v3187_v46 = vmul.f32 0.6931472, %v4323_v53 }
 0x3f9   :  { %v3193_v62 = vsel %vm3192_vm9, %v3190_v41, %v3187_v46 }
 0x3fa   :  { %v3265_v15 = vadd.f32 %v3193_v62, %v2369_v32 }
 0x3fc   :  { %v3458_v30 = vsel %vm241_vm0, %v3265_v15, 0.0 }
 0x3fd   :  { %v3584_v17 = vsel %vm3460_vm2, %v3458_v30, 0.0 }
 0x3fe   :  { %v3585_v60 = vadd.f32 %v3584_v17, %v3583_v56 }
 0x3ff   :  { %v4325_v58 = vpop.eup %4324 }
 0x400   :  { %v3587_v16 = vadd.f32 %v3586_v54, %v3585_v60  ;;  %v4327_v40 = vpop.eup %4326 }
 0x402   :  { %3588 = vadd.xlane.f32.xlu0 %v3587_v16 }
 0x466   :  { %v1912_v51 = vpop.xlane.xlu1 %1911 }
 0x467   :  { %v1913_v44 = vrot.slane %v1912_v51, 4 }
 0x469   :  { %v1914_v12 = vadd.f32 %v1913_v44, %v1912_v51 }
 0x46b   :  { %v1915_v45 = vrot.slane %v1914_v12, 2 }
 0x46d   :  { %v1916_v38 = vadd.f32 %v1915_v45, %v1914_v12 }
 0x46f   :  { %v1917_v43 = vrot.slane %v1916_v38, 1 }
 0x471   :  { %v1918_v0 = vadd.f32 %v1917_v43, %v1916_v38 }
 0x473   :  { %3799 = vpush %v1918_v0 }
 0x48b   :  { %v3589_v35 = vpop.xlane.xlu0 %3588 }
 0x48c   :  { %v3590_v28 = vrot.slane %v3589_v35, 4 }
 0x48e   :  { %v3591_v24 = vadd.f32 %v3590_v28, %v3589_v35 }
 0x490   :  { %v3592_v57 = vrot.slane %v3591_v24, 2 }
 0x492   :  { %v3593_v14 = vadd.f32 %v3592_v57, %v3591_v24 }
 0x494   :  { %v3594_v25 = vrot.slane %v3593_v14, 1 }
 0x496   :  { %v3595_v49 = vadd.f32 %v3594_v25, %v3593_v14 }
 0x498   :  { %3801 = vpush %v3595_v49 }
 0x499   :  { %3803 = vpush %v4325_v58 }
 0x49a   :  { %3805 = vpush %v4327_v40 }
 0x4a4   :  { %s3800_s1 = spop %3799 }
 0x4c9   :  { %s3802_s23 = spop %3801 }
 0x4ca   :  { %s3804_s24 = spop %3803 }
 0x4cb   :  { %s3605_s2 = smul.f32 %s3804_s24, %s3800_s1  ;;  %s3806_s25 = spop %3805 }
 0x4cc   :  { %s3611_s26 = smul.f32 %s3806_s25, %s3802_s23 }
 0x4cd   :  { %s3613_s27 = smul.f32 %s3612_s21, %s3605_s2  ;;  %3620 = sst [smem:[#allocation7 + $0x1]] %s3605_s2 }
 0x4ce   :  { %s3615_s28 = smul.f32 %s3639_s22, %s3611_s26  ;;  %3622 = sst [smem:[#allocation7 + $0x2]] %s3611_s26 }
 0x4d0   :  { %s3616_s29 = sadd.f32 %s3615_s28, %s3613_s27 }
 0x4d2   :  { %3618 = sst [smem:[#allocation7]] %s3616_s29 }
 0x4d3   :  { %3630 = dma.smem_to_hbm %s4421_s0, 16, %s9065_s6, [#allocation5]  }
 0x4d4   :  { %4417 = dma.done.wait [#allocation5], 16  }
 0x4d5   :  { %4418 = vsyncadd [#allocation5], 4294967280 }
 0x4d6   :  { %3634 = sfence }
 0x4d7   :  { %3635 = vsyncpa [#allocation5], 1 }
 0x4d8   :  { %3636 = vsyncpa [#allocation6], 1 }

</bundles_post_ra>
